<compile_context>
chip_gen: v7x
topology: tpu7x:2x2x1
jax: 0.10.0
libtpu: 0.0.40
codegen_flags: <defaults>
</compile_context>

<pallas_src>
import jax
import jax.numpy as jnp
import numpy as np
from jax.experimental import pallas as pl
from jax.experimental.pallas import tpu as pltpu  # noqa: F401  (not needed: no grid/scratch)

# ------------- small, self-consistent model dims (AdaCare semantics) -------
B = 2            # batch
T = 8            # time steps
NCODE = 4        # medical codes per visit (embedding summed over this axis)
VOCAB = 20       # vocab_size
H = 32           # hidden_dim == input_dim (required by the module)
D = H            # input_dim
K = 16           # kernel_num
RC = 4           # r_c (conv recalibration reduction)
RV = 4           # r_v (input recalibration reduction)
ATT = 16         # w1 hidden size (original uses 64)
DX = D + 3 * K   # GRUCell input size (= 80)
TB = T * B       # flattened time-major rows (= 16)


def _mm(x, w):
    """2-D matmul on the MXU with f32 accumulation."""
    return jnp.dot(x, w, preferred_element_type=jnp.float32)


# --------------------------- single fused kernel ----------------------------
def adacare_kernel(emb_ref, noise_ref,
                   w1cat_ref, w0cat_ref, bcat_ref,
                   wcc_ref, bcc_ref, wcr_ref, bcr_ref,
                   wic_ref, bic_ref, wir_ref, bir_ref,
                   gwih_ref, gwhh_ref, gbih_ref, gbhh_ref,
                   lwih_ref, lwhh_ref, lbih_ref, lbhh_ref,
                   whk_ref, bhk_ref, w1e_ref, w1h_ref, b1_ref,
                   w2_ref, b2_ref, wfh_ref, wfg_ref, bf_ref,
                   wo_ref, bo_ref,
                   out_ref):
    x = emb_ref[...]                                   # [T*B, D], row = t*B + b

    # ---- causal dilated convs (kernel_size=2, dilations 1/3/5) + ReLU ------
    # current tap for all 3 dilations in one matmul; same for the shifted tap.
    y1 = _mm(x, w1cat_ref[...])                        # [TB, 3K]
    y0 = _mm(x, w0cat_ref[...])                        # [TB, 3K]

    def shift(blk, d):
        # out[t] = blk[t - d] with zero padding (causal), time-major rows.
        return jnp.concatenate(
            [jnp.zeros((d * B, K), jnp.float32), blk[:TB - d * B, :]], axis=0)

    y0s = jnp.concatenate([shift(y0[:, 0:K], 1),
                           shift(y0[:, K:2 * K], 3),
                           shift(y0[:, 2 * K:3 * K], 5)], axis=-1)
    conv = jnp.maximum(y1 + y0s + bcat_ref[...], 0.0)  # [TB, 3K]

    # ---- SE recalibration. Reference calls Recalibration(x[:, :, :t+1]) per
    # step but gates with a function of the *last* timestep only and consumes
    # only the last column -> exactly this vectorized per-timestep gate. ------
    gc = jax.nn.sigmoid(
        _mm(jnp.maximum(_mm(conv, wcc_ref[...]) + bcc_ref[...], 0.0),
            wcr_ref[...]) + bcr_ref[...])
    gi = jax.nn.sigmoid(
        _mm(jnp.maximum(_mm(x, wic_ref[...]) + bic_ref[...], 0.0),
            wir_ref[...]) + bir_ref[...])
    xcat = jnp.concatenate([conv * gc, x * gi], axis=-1)     # [TB, DX]

    # ---- GRUCell over time (input->hidden matmul hoisted out of the loop) --
    gx_all = _mm(xcat, gwih_ref[...]) + gbih_ref[...]        # [TB, 3H]
    gwhh = gwhh_ref[...]
    gbhh = gbhh_ref[...]
    h = jnp.zeros((B, H), jnp.float32)
    hs = []
    for t in range(T):                                       # unrolled, static slices
        gx = gx_all[t * B:(t + 1) * B, :]
        gh = _mm(h, gwhh) + gbhh
        r = jax.nn.sigmoid(gx[:, :H] + gh[:, :H])
        z = jax.nn.sigmoid(gx[:, H:2 * H] + gh[:, H:2 * H])
        n = jnp.tanh(gx[:, 2 * H:] + r * gh[:, 2 * H:])
        h = (1.0 - z) * n + z * h
        hs.append(h)
    h_all = jnp.concatenate(hs, axis=0)                      # [TB, H]  (h_reshape)

    # ---- hiddenstate_learner: single-layer LSTM, i2h matmul hoisted --------
    lx_all = _mm(h_all, lwih_ref[...]) + lbih_ref[...]       # [TB, 4H]
    lwhh = lwhh_ref[...]
    lbhh = lbhh_ref[...]
    hh = jnp.zeros((B, H), jnp.float32)
    cc = jnp.zeros((B, H), jnp.float32)
    hids = []
    for t in range(T):
        g = lx_all[t * B:(t + 1) * B, :] + _mm(hh, lwhh) + lbhh
        i = jax.nn.sigmoid(g[:, :H])
        f = jax.nn.sigmoid(g[:, H:2 * H])
        gg = jnp.tanh(g[:, 2 * H:3 * H])
        o = jax.nn.sigmoid(g[:, 3 * H:])
        cc = f * cc + i * gg
        hh = o * jnp.tanh(cc)
        hids.append(hh)
    hid_all = jnp.concatenate(hids, axis=0)                  # [TB, H]

    # ---- alignment attention + GEN + fuse + maxpool + output head ----------
    e_k = h_all[0:B, :]                                      # h_reshape[:, 0] (as in reference)
    e_b = jnp.concatenate([e_k] * T, axis=0)                 # [TB, H]
    whk = _mm(hid_all, whk_ref[...]) + bhk_ref[...]          # w_hk(hiddenstate)
    z1 = jnp.tanh(_mm(e_b, w1e_ref[...]) + _mm(whk, w1h_ref[...]) + b1_ref[...])
    logits = _mm(z1, w2_ref[...]) + b2_ref[...]              # [TB, 2]
    # softmax over a 2-wide axis == sigmoid of the logit difference
    a0 = jax.nn.sigmoid(logits[:, 0:1] - logits[:, 1:2])
    mix = e_b * a0 + whk * (1.0 - a0)                        # [TB, H]
    # aligned_e_t[:, 0] = h[:, 0]; aligned_e_t[:, i] uses hiddenstate[:, i-1]
    aligned = jnp.concatenate([e_k, mix[:TB - B, :]], axis=0)

    # TODO(synk): UNetModel diffusion denoiser (configs/ehr.yml UNet) has no
    # clean Pallas equivalent; predicted_noise is treated as zero, so
    # GEN_h_reshape = aligned_e_t + normal_noise.
    gen = aligned + noise_ref[...]

    # fuse(cat(h, GEN)) with the weight split into two blocks.
    # TODO(synk): nn.Dropout(p=0.5) skipped (inference); MaxPoolLayer == max
    # over the time axis.
    fused = _mm(h_all, wfh_ref[...]) + _mm(gen, wfg_ref[...]) + bf_ref[...]
    pooled = fused[0:B, :]
    for t in range(1, T):
        pooled = jnp.maximum(pooled, fused[t * B:(t + 1) * B, :])   # [B, H]
    out_ref[...] = _mm(pooled, wo_ref[...]) + bo_ref[...]           # [B, 2]


# ------------------------------- wrapper ------------------------------------
PARAM_KEYS = ["w1cat", "w0cat", "bcat",
              "wcc", "bcc", "wcr", "bcr", "wic", "bic", "wir", "bir",
              "gru_wih", "gru_whh", "gru_bih", "gru_bhh",
              "lstm_wih", "lstm_whh", "lstm_bih", "lstm_bhh",
              "whk", "bhk", "w1e", "w1h", "b1", "w2", "b2",
              "wfh", "wfg", "bf", "wo", "bo"]


def adacare_forward(emb_tm, noise_tm, params):
    # Single grid point; every operand fits whole in VMEM (default BlockSpecs).
    return pl.pallas_call(
        adacare_kernel,
        out_shape=jax.ShapeDtypeStruct((B, 2), jnp.float32),
    )(emb_tm, noise_tm, *[params[k] for k in PARAM_KEYS])


# ------------------------------- params -------------------------------------
def init_params(key):
    ks = iter(jax.random.split(key, 64))

    def w(shape, scale=None):
        if scale is None:
            scale = 1.0 / np.sqrt(shape[0])
        return (scale * jax.random.normal(next(ks), shape)).astype(jnp.float32)

    p = {}
    emb = w((VOCAB + 1, H), 0.1)
    p["embedding"] = emb.at[VOCAB].set(0.0)          # padding_idx=-1 -> last row zero
    # causal convs: current tap (w1) and shifted tap (w0), pre-concatenated
    # across the three dilations -> one matmul per tap.
    p["w1cat"] = w((D, 3 * K))
    p["w0cat"] = w((D, 3 * K))
    p["bcat"] = w((1, 3 * K), 0.01)
    # Recalibration (conv branch: channel=3K, reduction=RC)
    p["wcc"] = w((3 * K, 3 * K // RC)); p["bcc"] = w((1, 3 * K // RC), 0.01)
    p["wcr"] = w((3 * K // RC, 3 * K)); p["bcr"] = w((1, 3 * K), 0.01)
    # Recalibration (input branch: channel=D, reduction=RV, activation=sigmoid)
    p["wic"] = w((D, D // RV)); p["bic"] = w((1, D // RV), 0.01)
    p["wir"] = w((D // RV, D)); p["bir"] = w((1, D), 0.01)
    # GRUCell (gate order r, z, n) / LSTM (gate order i, f, g, o)
    p["gru_wih"] = w((DX, 3 * H)); p["gru_whh"] = w((H, 3 * H))
    p["gru_bih"] = w((1, 3 * H), 0.01); p["gru_bhh"] = w((1, 3 * H), 0.01)
    p["lstm_wih"] = w((H, 4 * H)); p["lstm_whh"] = w((H, 4 * H))
    p["lstm_bih"] = w((1, 4 * H), 0.01); p["lstm_bhh"] = w((1, 4 * H), 0.01)
    # alignment attention
    p["whk"] = w((H, H)); p["bhk"] = w((1, H), 0.01)
    p["w1e"] = w((H, ATT)); p["w1h"] = w((H, ATT)); p["b1"] = w((1, ATT), 0.01)
    p["w2"] = w((ATT, 2)); p["b2"] = w((1, 2), 0.01)
    # fuse + output head
    p["wfh"] = w((H, H)); p["wfg"] = w((H, H)); p["bf"] = w((1, H), 0.01)
    p["wo"] = w((H, 2)); p["bo"] = w((1, 2), 0.01)
    return p


# -------------------------------- main ---------------------------------------
if __name__ == "__main__":
    key = jax.random.PRNGKey(0)
    k_tok, k_noise, k_t, k_par = jax.random.split(key, 4)
    params = init_params(k_par)

    # input: integer code tensor [B, T, NCODE]
    tokens = jax.random.randint(k_tok, (B, T, NCODE), 0, VOCAB + 1)

    # glue: embedding lookup + sum over codes, laid out time-major [T*B, D]
    tokens_tm = jnp.transpose(tokens, (1, 0, 2))                    # [T, B, NCODE]
    emb_tm = params["embedding"][tokens_tm].sum(axis=2).astype(jnp.float32)
    emb_tm = emb_tm.reshape(TB, D)                                  # [T*B, D]

    # diffusion glue (deterministic): beta schedule / timestep / gaussian
    # noise. alpha only feeds the skipped UNet denoiser, so it does not
    # affect the output.
    num_steps = 50
    betas = jnp.linspace(1e-4, 0.02, num_steps, dtype=jnp.float32)
    tstep = jax.random.randint(k_t, (B,), 0, num_steps)
    _alpha = jnp.cumprod(1.0 - betas)[tstep]
    noise_tm = jax.random.normal(k_noise, (T, B, H), dtype=jnp.float32).reshape(TB, H)

    out = adacare_forward(emb_tm, noise_tm, params)                 # [B, 2]
    out = jax.block_until_ready(out)
    assert out.shape == (B, 2) and out.dtype == jnp.float32
    print("KERNEL_OK")
</pallas_src>

<mosaic_0001>
module attributes {stable_mosaic.version = 11 : i64} {
  func.func @adacare_kernel(%arg0: memref<16x32xf32, #tpu.memory_space<vmem>>, %arg1: memref<16x32xf32, #tpu.memory_space<vmem>>, %arg2: memref<32x48xf32, #tpu.memory_space<vmem>>, %arg3: memref<32x48xf32, #tpu.memory_space<vmem>>, %arg4: memref<1x48xf32, #tpu.memory_space<vmem>>, %arg5: memref<48x12xf32, #tpu.memory_space<vmem>>, %arg6: memref<1x12xf32, #tpu.memory_space<vmem>>, %arg7: memref<12x48xf32, #tpu.memory_space<vmem>>, %arg8: memref<1x48xf32, #tpu.memory_space<vmem>>, %arg9: memref<32x8xf32, #tpu.memory_space<vmem>>, %arg10: memref<1x8xf32, #tpu.memory_space<vmem>>, %arg11: memref<8x32xf32, #tpu.memory_space<vmem>>, %arg12: memref<1x32xf32, #tpu.memory_space<vmem>>, %arg13: memref<80x96xf32, #tpu.memory_space<vmem>>, %arg14: memref<32x96xf32, #tpu.memory_space<vmem>>, %arg15: memref<1x96xf32, #tpu.memory_space<vmem>>, %arg16: memref<1x96xf32, #tpu.memory_space<vmem>>, %arg17: memref<32x128xf32, #tpu.memory_space<vmem>>, %arg18: memref<32x128xf32, #tpu.memory_space<vmem>>, %arg19: memref<1x128xf32, #tpu.memory_space<vmem>>, %arg20: memref<1x128xf32, #tpu.memory_space<vmem>>, %arg21: memref<32x32xf32, #tpu.memory_space<vmem>>, %arg22: memref<1x32xf32, #tpu.memory_space<vmem>>, %arg23: memref<32x16xf32, #tpu.memory_space<vmem>>, %arg24: memref<32x16xf32, #tpu.memory_space<vmem>>, %arg25: memref<1x16xf32, #tpu.memory_space<vmem>>, %arg26: memref<16x2xf32, #tpu.memory_space<vmem>>, %arg27: memref<1x2xf32, #tpu.memory_space<vmem>>, %arg28: memref<32x32xf32, #tpu.memory_space<vmem>>, %arg29: memref<32x32xf32, #tpu.memory_space<vmem>>, %arg30: memref<1x32xf32, #tpu.memory_space<vmem>>, %arg31: memref<32x2xf32, #tpu.memory_space<vmem>>, %arg32: memref<1x2xf32, #tpu.memory_space<vmem>>, %arg33: memref<2x2xf32, #tpu.memory_space<vmem>>) attributes {dimension_semantics = [], scalar_prefetch = 0 : i64, scratch_operands = 0 : i64, tpu.core_type = #tpu.core_type<tc>} {
    %c0 = arith.constant 0 : index
    %c0_0 = arith.constant 0 : index
    %0 = vector.load %arg0[%c0, %c0_0] : memref<16x32xf32, #tpu.memory_space<vmem>>, vector<16x32xf32>
    %c0_1 = arith.constant 0 : index
    %c0_2 = arith.constant 0 : index
    %1 = vector.load %arg2[%c0_1, %c0_2] : memref<32x48xf32, #tpu.memory_space<vmem>>, vector<32x48xf32>
    %cst = arith.constant dense<0.000000e+00> : vector<16x48xf32>
    %2 = tpu.matmul %0, %1, %cst {dimension_numbers = #tpu.dot_dimension_numbers<[1], [0], [0], [1], [0, 0, 1, 1], [], []>} : vector<16x32xf32>, vector<32x48xf32>, vector<16x48xf32> -> vector<16x48xf32>
    %c0_3 = arith.constant 0 : index
    %c0_4 = arith.constant 0 : index
    %3 = vector.load %arg3[%c0_3, %c0_4] : memref<32x48xf32, #tpu.memory_space<vmem>>, vector<32x48xf32>
    %cst_5 = arith.constant dense<0.000000e+00> : vector<16x48xf32>
    %4 = tpu.matmul %0, %3, %cst_5 {dimension_numbers = #tpu.dot_dimension_numbers<[1], [0], [0], [1], [0, 0, 1, 1], [], []>} : vector<16x32xf32>, vector<32x48xf32>, vector<16x48xf32> -> vector<16x48xf32>
    %5 = vector.extract_strided_slice %4 {offsets = [0, 0], sizes = [16, 16], strides = [1, 1]} : vector<16x48xf32> to vector<16x16xf32>
    %cst_6 = arith.constant 0.000000e+00 : f32
    %6 = vector.broadcast %cst_6 : f32 to vector<2x16xf32>
    %7 = vector.extract_strided_slice %5 {offsets = [0, 0], sizes = [14, 16], strides = [1, 1]} : vector<16x16xf32> to vector<14x16xf32>
    %8 = tpu.concatenate %6, %7 in 0 : vector<2x16xf32>, vector<14x16xf32> -> vector<16x16xf32>
    %9 = vector.extract_strided_slice %4 {offsets = [0, 16], sizes = [16, 16], strides = [1, 1]} : vector<16x48xf32> to vector<16x16xf32>
    %cst_7 = arith.constant 0.000000e+00 : f32
    %10 = vector.broadcast %cst_7 : f32 to vector<6x16xf32>
    %11 = vector.extract_strided_slice %9 {offsets = [0, 0], sizes = [10, 16], strides = [1, 1]} : vector<16x16xf32> to vector<10x16xf32>
    %12 = tpu.concatenate %10, %11 in 0 : vector<6x16xf32>, vector<10x16xf32> -> vector<16x16xf32>
    %13 = vector.extract_strided_slice %4 {offsets = [0, 32], sizes = [16, 16], strides = [1, 1]} : vector<16x48xf32> to vector<16x16xf32>
    %cst_8 = arith.constant 0.000000e+00 : f32
    %14 = vector.broadcast %cst_8 : f32 to vector<10x16xf32>
    %15 = vector.extract_strided_slice %13 {offsets = [0, 0], sizes = [6, 16], strides = [1, 1]} : vector<16x16xf32> to vector<6x16xf32>
    %16 = tpu.concatenate %14, %15 in 0 : vector<10x16xf32>, vector<6x16xf32> -> vector<16x16xf32>
    %17 = tpu.concatenate %8, %12, %16 in 1 : vector<16x16xf32>, vector<16x16xf32>, vector<16x16xf32> -> vector<16x48xf32>
    %18 = arith.addf %2, %17 : vector<16x48xf32>
    %c0_9 = arith.constant 0 : index
    %c0_10 = arith.constant 0 : index
    %19 = vector.load %arg4[%c0_9, %c0_10] : memref<1x48xf32, #tpu.memory_space<vmem>>, vector<1x48xf32>
    %20 = vector.broadcast %19 : vector<1x48xf32> to vector<16x48xf32>
    %21 = arith.addf %18, %20 : vector<16x48xf32>
    %cst_11 = arith.constant 0.000000e+00 : f32
    %22 = vector.broadcast %cst_11 : f32 to vector<16x48xf32>
    %23 = arith.maximumf %21, %22 : vector<16x48xf32>
    %c0_12 = arith.constant 0 : index
    %c0_13 = arith.constant 0 : index
    %24 = vector.load %arg5[%c0_12, %c0_13] : memref<48x12xf32, #tpu.memory_space<vmem>>, vector<48x12xf32>
    %cst_14 = arith.constant dense<0.000000e+00> : vector<16x12xf32>
    %25 = tpu.matmul %23, %24, %cst_14 {dimension_numbers = #tpu.dot_dimension_numbers<[1], [0], [0], [1], [0, 0, 1, 1], [], []>} : vector<16x48xf32>, vector<48x12xf32>, vector<16x12xf32> -> vector<16x12xf32>
    %c0_15 = arith.constant 0 : index
    %c0_16 = arith.constant 0 : index
    %26 = vector.load %arg6[%c0_15, %c0_16] : memref<1x12xf32, #tpu.memory_space<vmem>>, vector<1x12xf32>
    %27 = vector.broadcast %26 : vector<1x12xf32> to vector<16x12xf32>
    %28 = arith.addf %25, %27 : vector<16x12xf32>
    %cst_17 = arith.constant 0.000000e+00 : f32
    %29 = vector.broadcast %cst_17 : f32 to vector<16x12xf32>
    %30 = arith.maximumf %28, %29 : vector<16x12xf32>
    %c0_18 = arith.constant 0 : index
    %c0_19 = arith.constant 0 : index
    %31 = vector.load %arg7[%c0_18, %c0_19] : memref<12x48xf32, #tpu.memory_space<vmem>>, vector<12x48xf32>
    %cst_20 = arith.constant dense<0.000000e+00> : vector<16x48xf32>
    %32 = tpu.matmul %30, %31, %cst_20 {dimension_numbers = #tpu.dot_dimension_numbers<[1], [0], [0], [1], [0, 0, 1, 1], [], []>} : vector<16x12xf32>, vector<12x48xf32>, vector<16x48xf32> -> vector<16x48xf32>
    %c0_21 = arith.constant 0 : index
    %c0_22 = arith.constant 0 : index
    %33 = vector.load %arg8[%c0_21, %c0_22] : memref<1x48xf32, #tpu.memory_space<vmem>>, vector<1x48xf32>
    %34 = vector.broadcast %33 : vector<1x48xf32> to vector<16x48xf32>
    %35 = arith.addf %32, %34 : vector<16x48xf32>
    %36 = arith.negf %35 : vector<16x48xf32>
    %37 = math.exp %36 : vector<16x48xf32>
    %cst_23 = arith.constant 1.000000e+00 : f32
    %38 = vector.broadcast %cst_23 : f32 to vector<16x48xf32>
    %39 = arith.addf %38, %37 : vector<16x48xf32>
    %40 = arith.divf %38, %39 : vector<16x48xf32>
    %c0_24 = arith.constant 0 : index
    %c0_25 = arith.constant 0 : index
    %41 = vector.load %arg9[%c0_24, %c0_25] : memref<32x8xf32, #tpu.memory_space<vmem>>, vector<32x8xf32>
    %cst_26 = arith.constant dense<0.000000e+00> : vector<16x8xf32>
    %42 = tpu.matmul %0, %41, %cst_26 {dimension_numbers = #tpu.dot_dimension_numbers<[1], [0], [0], [1], [0, 0, 1, 1], [], []>} : vector<16x32xf32>, vector<32x8xf32>, vector<16x8xf32> -> vector<16x8xf32>
    %c0_27 = arith.constant 0 : index
    %c0_28 = arith.constant 0 : index
    %43 = vector.load %arg10[%c0_27, %c0_28] : memref<1x8xf32, #tpu.memory_space<vmem>>, vector<1x8xf32>
    %44 = vector.broadcast %43 : vector<1x8xf32> to vector<16x8xf32>
    %45 = arith.addf %42, %44 : vector<16x8xf32>
    %cst_29 = arith.constant 0.000000e+00 : f32
    %46 = vector.broadcast %cst_29 : f32 to vector<16x8xf32>
    %47 = arith.maximumf %45, %46 : vector<16x8xf32>
    %c0_30 = arith.constant 0 : index
    %c0_31 = arith.constant 0 : index
    %48 = vector.load %arg11[%c0_30, %c0_31] : memref<8x32xf32, #tpu.memory_space<vmem>>, vector<8x32xf32>
    %cst_32 = arith.constant dense<0.000000e+00> : vector<16x32xf32>
    %49 = tpu.matmul %47, %48, %cst_32 {dimension_numbers = #tpu.dot_dimension_numbers<[1], [0], [0], [1], [0, 0, 1, 1], [], []>} : vector<16x8xf32>, vector<8x32xf32>, vector<16x32xf32> -> vector<16x32xf32>
    %c0_33 = arith.constant 0 : index
    %c0_34 = arith.constant 0 : index
    %50 = vector.load %arg12[%c0_33, %c0_34] : memref<1x32xf32, #tpu.memory_space<vmem>>, vector<1x32xf32>
    %51 = vector.broadcast %50 : vector<1x32xf32> to vector<16x32xf32>
    %52 = arith.addf %49, %51 : vector<16x32xf32>
    %53 = arith.negf %52 : vector<16x32xf32>
    %54 = math.exp %53 : vector<16x32xf32>
    %cst_35 = arith.constant 1.000000e+00 : f32
    %55 = vector.broadcast %cst_35 : f32 to vector<16x32xf32>
    %56 = arith.addf %55, %54 : vector<16x32xf32>
    %57 = arith.divf %55, %56 : vector<16x32xf32>
    %58 = arith.mulf %23, %40 : vector<16x48xf32>
    %59 = arith.mulf %0, %57 : vector<16x32xf32>
    %60 = tpu.concatenate %58, %59 in 1 : vector<16x48xf32>, vector<16x32xf32> -> vector<16x80xf32>
    %c0_36 = arith.constant 0 : index
    %c0_37 = arith.constant 0 : index
    %61 = vector.load %arg13[%c0_36, %c0_37] : memref<80x96xf32, #tpu.memory_space<vmem>>, vector<80x96xf32>
    %cst_38 = arith.constant dense<0.000000e+00> : vector<16x96xf32>
    %62 = tpu.matmul %60, %61, %cst_38 {dimension_numbers = #tpu.dot_dimension_numbers<[1], [0], [0], [1], [0, 0, 1, 1], [], []>} : vector<16x80xf32>, vector<80x96xf32>, vector<16x96xf32> -> vector<16x96xf32>
    %c0_39 = arith.constant 0 : index
    %c0_40 = arith.constant 0 : index
    %63 = vector.load %arg15[%c0_39, %c0_40] : memref<1x96xf32, #tpu.memory_space<vmem>>, vector<1x96xf32>
    %64 = vector.broadcast %63 : vector<1x96xf32> to vector<16x96xf32>
    %65 = arith.addf %62, %64 : vector<16x96xf32>
    %c0_41 = arith.constant 0 : index
    %c0_42 = arith.constant 0 : index
    %66 = vector.load %arg14[%c0_41, %c0_42] : memref<32x96xf32, #tpu.memory_space<vmem>>, vector<32x96xf32>
    %c0_43 = arith.constant 0 : index
    %c0_44 = arith.constant 0 : index
    %67 = vector.load %arg16[%c0_43, %c0_44] : memref<1x96xf32, #tpu.memory_space<vmem>>, vector<1x96xf32>
    %cst_45 = arith.constant 0.000000e+00 : f32
    %68 = vector.broadcast %cst_45 : f32 to vector<2x32xf32>
    %69 = vector.extract_strided_slice %65 {offsets = [0, 0], sizes = [2, 96], strides = [1, 1]} : vector<16x96xf32> to vector<2x96xf32>
    %cst_46 = arith.constant dense<0.000000e+00> : vector<2x96xf32>
    %70 = tpu.matmul %68, %66, %cst_46 {dimension_numbers = #tpu.dot_dimension_numbers<[1], [0], [0], [1], [0, 0, 1, 1], [], []>} : vector<2x32xf32>, vector<32x96xf32>, vector<2x96xf32> -> vector<2x96xf32>
    %71 = vector.broadcast %67 : vector<1x96xf32> to vector<2x96xf32>
    %72 = arith.addf %70, %71 : vector<2x96xf32>
    %73 = vector.extract_strided_slice %69 {offsets = [0, 0], sizes = [2, 32], strides = [1, 1]} : vector<2x96xf32> to vector<2x32xf32>
    %74 = vector.extract_strided_slice %72 {offsets = [0, 0], sizes = [2, 32], strides = [1, 1]} : vector<2x96xf32> to vector<2x32xf32>
    %75 = arith.addf %73, %74 : vector<2x32xf32>
    %76 = arith.negf %75 : vector<2x32xf32>
    %77 = math.exp %76 : vector<2x32xf32>
    %cst_47 = arith.constant 1.000000e+00 : f32
    %78 = vector.broadcast %cst_47 : f32 to vector<2x32xf32>
    %79 = arith.addf %78, %77 : vector<2x32xf32>
    %80 = arith.divf %78, %79 : vector<2x32xf32>
    %81 = vector.extract_strided_slice %69 {offsets = [0, 32], sizes = [2, 32], strides = [1, 1]} : vector<2x96xf32> to vector<2x32xf32>
    %82 = vector.extract_strided_slice %72 {offsets = [0, 32], sizes = [2, 32], strides = [1, 1]} : vector<2x96xf32> to vector<2x32xf32>
    %83 = arith.addf %81, %82 : vector<2x32xf32>
    %84 = arith.negf %83 : vector<2x32xf32>
    %85 = math.exp %84 : vector<2x32xf32>
    %cst_48 = arith.constant 1.000000e+00 : f32
    %86 = vector.broadcast %cst_48 : f32 to vector<2x32xf32>
    %87 = arith.addf %86, %85 : vector<2x32xf32>
    %88 = arith.divf %86, %87 : vector<2x32xf32>
    %89 = vector.extract_strided_slice %69 {offsets = [0, 64], sizes = [2, 32], strides = [1, 1]} : vector<2x96xf32> to vector<2x32xf32>
    %90 = vector.extract_strided_slice %72 {offsets = [0, 64], sizes = [2, 32], strides = [1, 1]} : vector<2x96xf32> to vector<2x32xf32>
    %91 = arith.mulf %80, %90 : vector<2x32xf32>
    %92 = arith.addf %89, %91 : vector<2x32xf32>
    %93 = math.tanh %92 : vector<2x32xf32>
    %cst_49 = arith.constant 1.000000e+00 : f32
    %94 = vector.broadcast %cst_49 : f32 to vector<2x32xf32>
    %95 = arith.subf %94, %88 : vector<2x32xf32>
    %96 = arith.mulf %95, %93 : vector<2x32xf32>
    %97 = arith.mulf %88, %68 : vector<2x32xf32>
    %98 = arith.addf %96, %97 : vector<2x32xf32>
    %99 = vector.extract_strided_slice %65 {offsets = [2, 0], sizes = [2, 96], strides = [1, 1]} : vector<16x96xf32> to vector<2x96xf32>
    %cst_50 = arith.constant dense<0.000000e+00> : vector<2x96xf32>
    %100 = tpu.matmul %98, %66, %cst_50 {dimension_numbers = #tpu.dot_dimension_numbers<[1], [0], [0], [1], [0, 0, 1, 1], [], []>} : vector<2x32xf32>, vector<32x96xf32>, vector<2x96xf32> -> vector<2x96xf32>
    %101 = vector.broadcast %67 : vector<1x96xf32> to vector<2x96xf32>
    %102 = arith.addf %100, %101 : vector<2x96xf32>
    %103 = vector.extract_strided_slice %99 {offsets = [0, 0], sizes = [2, 32], strides = [1, 1]} : vector<2x96xf32> to vector<2x32xf32>
    %104 = vector.extract_strided_slice %102 {offsets = [0, 0], sizes = [2, 32], strides = [1, 1]} : vector<2x96xf32> to vector<2x32xf32>
    %105 = arith.addf %103, %104 : vector<2x32xf32>
    %106 = arith.negf %105 : vector<2x32xf32>
    %107 = math.exp %106 : vector<2x32xf32>
    %cst_51 = arith.constant 1.000000e+00 : f32
    %108 = vector.broadcast %cst_51 : f32 to vector<2x32xf32>
    %109 = arith.addf %108, %107 : vector<2x32xf32>
    %110 = arith.divf %108, %109 : vector<2x32xf32>
    %111 = vector.extract_strided_slice %99 {offsets = [0, 32], sizes = [2, 32], strides = [1, 1]} : vector<2x96xf32> to vector<2x32xf32>
    %112 = vector.extract_strided_slice %102 {offsets = [0, 32], sizes = [2, 32], strides = [1, 1]} : vector<2x96xf32> to vector<2x32xf32>
    %113 = arith.addf %111, %112 : vector<2x32xf32>
    %114 = arith.negf %113 : vector<2x32xf32>
    %115 = math.exp %114 : vector<2x32xf32>
    %cst_52 = arith.constant 1.000000e+00 : f32
    %116 = vector.broadcast %cst_52 : f32 to vector<2x32xf32>
    %117 = arith.addf %116, %115 : vector<2x32xf32>
    %118 = arith.divf %116, %117 : vector<2x32xf32>
    %119 = vector.extract_strided_slice %99 {offsets = [0, 64], sizes = [2, 32], strides = [1, 1]} : vector<2x96xf32> to vector<2x32xf32>
    %120 = vector.extract_strided_slice %102 {offsets = [0, 64], sizes = [2, 32], strides = [1, 1]} : vector<2x96xf32> to vector<2x32xf32>
    %121 = arith.mulf %110, %120 : vector<2x32xf32>
    %122 = arith.addf %119, %121 : vector<2x32xf32>
    %123 = math.tanh %122 : vector<2x32xf32>
    %cst_53 = arith.constant 1.000000e+00 : f32
    %124 = vector.broadcast %cst_53 : f32 to vector<2x32xf32>
    %125 = arith.subf %124, %118 : vector<2x32xf32>
    %126 = arith.mulf %125, %123 : vector<2x32xf32>
    %127 = arith.mulf %118, %98 : vector<2x32xf32>
    %128 = arith.addf %126, %127 : vector<2x32xf32>
    %129 = vector.extract_strided_slice %65 {offsets = [4, 0], sizes = [2, 96], strides = [1, 1]} : vector<16x96xf32> to vector<2x96xf32>
    %cst_54 = arith.constant dense<0.000000e+00> : vector<2x96xf32>
    %130 = tpu.matmul %128, %66, %cst_54 {dimension_numbers = #tpu.dot_dimension_numbers<[1], [0], [0], [1], [0, 0, 1, 1], [], []>} : vector<2x32xf32>, vector<32x96xf32>, vector<2x96xf32> -> vector<2x96xf32>
    %131 = vector.broadcast %67 : vector<1x96xf32> to vector<2x96xf32>
    %132 = arith.addf %130, %131 : vector<2x96xf32>
    %133 = vector.extract_strided_slice %129 {offsets = [0, 0], sizes = [2, 32], strides = [1, 1]} : vector<2x96xf32> to vector<2x32xf32>
    %134 = vector.extract_strided_slice %132 {offsets = [0, 0], sizes = [2, 32], strides = [1, 1]} : vector<2x96xf32> to vector<2x32xf32>
    %135 = arith.addf %133, %134 : vector<2x32xf32>
    %136 = arith.negf %135 : vector<2x32xf32>
    %137 = math.exp %136 : vector<2x32xf32>
    %cst_55 = arith.constant 1.000000e+00 : f32
    %138 = vector.broadcast %cst_55 : f32 to vector<2x32xf32>
    %139 = arith.addf %138, %137 : vector<2x32xf32>
    %140 = arith.divf %138, %139 : vector<2x32xf32>
    %141 = vector.extract_strided_slice %129 {offsets = [0, 32], sizes = [2, 32], strides = [1, 1]} : vector<2x96xf32> to vector<2x32xf32>
    %142 = vector.extract_strided_slice %132 {offsets = [0, 32], sizes = [2, 32], strides = [1, 1]} : vector<2x96xf32> to vector<2x32xf32>
    %143 = arith.addf %141, %142 : vector<2x32xf32>
    %144 = arith.negf %143 : vector<2x32xf32>
    %145 = math.exp %144 : vector<2x32xf32>
    %cst_56 = arith.constant 1.000000e+00 : f32
    %146 = vector.broadcast %cst_56 : f32 to vector<2x32xf32>
    %147 = arith.addf %146, %145 : vector<2x32xf32>
    %148 = arith.divf %146, %147 : vector<2x32xf32>
    %149 = vector.extract_strided_slice %129 {offsets = [0, 64], sizes = [2, 32], strides = [1, 1]} : vector<2x96xf32> to vector<2x32xf32>
    %150 = vector.extract_strided_slice %132 {offsets = [0, 64], sizes = [2, 32], strides = [1, 1]} : vector<2x96xf32> to vector<2x32xf32>
    %151 = arith.mulf %140, %150 : vector<2x32xf32>
    %152 = arith.addf %149, %151 : vector<2x32xf32>
    %153 = math.tanh %152 : vector<2x32xf32>
    %cst_57 = arith.constant 1.000000e+00 : f32
    %154 = vector.broadcast %cst_57 : f32 to vector<2x32xf32>
    %155 = arith.subf %154, %148 : vector<2x32xf32>
    %156 = arith.mulf %155, %153 : vector<2x32xf32>
    %157 = arith.mulf %148, %128 : vector<2x32xf32>
    %158 = arith.addf %156, %157 : vector<2x32xf32>
    %159 = vector.extract_strided_slice %65 {offsets = [6, 0], sizes = [2, 96], strides = [1, 1]} : vector<16x96xf32> to vector<2x96xf32>
    %cst_58 = arith.constant dense<0.000000e+00> : vector<2x96xf32>
    %160 = tpu.matmul %158, %66, %cst_58 {dimension_numbers = #tpu.dot_dimension_numbers<[1], [0], [0], [1], [0, 0, 1, 1], [], []>} : vector<2x32xf32>, vector<32x96xf32>, vector<2x96xf32> -> vector<2x96xf32>
    %161 = vector.broadcast %67 : vector<1x96xf32> to vector<2x96xf32>
    %162 = arith.addf %160, %161 : vector<2x96xf32>
    %163 = vector.extract_strided_slice %159 {offsets = [0, 0], sizes = [2, 32], strides = [1, 1]} : vector<2x96xf32> to vector<2x32xf32>
    %164 = vector.extract_strided_slice %162 {offsets = [0, 0], sizes = [2, 32], strides = [1, 1]} : vector<2x96xf32> to vector<2x32xf32>
    %165 = arith.addf %163, %164 : vector<2x32xf32>
    %166 = arith.negf %165 : vector<2x32xf32>
    %167 = math.exp %166 : vector<2x32xf32>
    %cst_59 = arith.constant 1.000000e+00 : f32
    %168 = vector.broadcast %cst_59 : f32 to vector<2x32xf32>
    %169 = arith.addf %168, %167 : vector<2x32xf32>
    %170 = arith.divf %168, %169 : vector<2x32xf32>
    %171 = vector.extract_strided_slice %159 {offsets = [0, 32], sizes = [2, 32], strides = [1, 1]} : vector<2x96xf32> to vector<2x32xf32>
    %172 = vector.extract_strided_slice %162 {offsets = [0, 32], sizes = [2, 32], strides = [1, 1]} : vector<2x96xf32> to vector<2x32xf32>
    %173 = arith.addf %171, %172 : vector<2x32xf32>
    %174 = arith.negf %173 : vector<2x32xf32>
    %175 = math.exp %174 : vector<2x32xf32>
    %cst_60 = arith.constant 1.000000e+00 : f32
    %176 = vector.broadcast %cst_60 : f32 to vector<2x32xf32>
    %177 = arith.addf %176, %175 : vector<2x32xf32>
    %178 = arith.divf %176, %177 : vector<2x32xf32>
    %179 = vector.extract_strided_slice %159 {offsets = [0, 64], sizes = [2, 32], strides = [1, 1]} : vector<2x96xf32> to vector<2x32xf32>
    %180 = vector.extract_strided_slice %162 {offsets = [0, 64], sizes = [2, 32], strides = [1, 1]} : vector<2x96xf32> to vector<2x32xf32>
    %181 = arith.mulf %170, %180 : vector<2x32xf32>
    %182 = arith.addf %179, %181 : vector<2x32xf32>
    %183 = math.tanh %182 : vector<2x32xf32>
    %cst_61 = arith.constant 1.000000e+00 : f32
    %184 = vector.broadcast %cst_61 : f32 to vector<2x32xf32>
    %185 = arith.subf %184, %178 : vector<2x32xf32>
    %186 = arith.mulf %185, %183 : vector<2x32xf32>
    %187 = arith.mulf %178, %158 : vector<2x32xf32>
    %188 = arith.addf %186, %187 : vector<2x32xf32>
    %189 = vector.extract_strided_slice %65 {offsets = [8, 0], sizes = [2, 96], strides = [1, 1]} : vector<16x96xf32> to vector<2x96xf32>
    %cst_62 = arith.constant dense<0.000000e+00> : vector<2x96xf32>
    %190 = tpu.matmul %188, %66, %cst_62 {dimension_numbers = #tpu.dot_dimension_numbers<[1], [0], [0], [1], [0, 0, 1, 1], [], []>} : vector<2x32xf32>, vector<32x96xf32>, vector<2x96xf32> -> vector<2x96xf32>
    %191 = vector.broadcast %67 : vector<1x96xf32> to vector<2x96xf32>
    %192 = arith.addf %190, %191 : vector<2x96xf32>
    %193 = vector.extract_strided_slice %189 {offsets = [0, 0], sizes = [2, 32], strides = [1, 1]} : vector<2x96xf32> to vector<2x32xf32>
    %194 = vector.extract_strided_slice %192 {offsets = [0, 0], sizes = [2, 32], strides = [1, 1]} : vector<2x96xf32> to vector<2x32xf32>
    %195 = arith.addf %193, %194 : vector<2x32xf32>
    %196 = arith.negf %195 : vector<2x32xf32>
    %197 = math.exp %196 : vector<2x32xf32>
    %cst_63 = arith.constant 1.000000e+00 : f32
    %198 = vector.broadcast %cst_63 : f32 to vector<2x32xf32>
    %199 = arith.addf %198, %197 : vector<2x32xf32>
    %200 = arith.divf %198, %199 : vector<2x32xf32>
    %201 = vector.extract_strided_slice %189 {offsets = [0, 32], sizes = [2, 32], strides = [1, 1]} : vector<2x96xf32> to vector<2x32xf32>
    %202 = vector.extract_strided_slice %192 {offsets = [0, 32], sizes = [2, 32], strides = [1, 1]} : vector<2x96xf32> to vector<2x32xf32>
    %203 = arith.addf %201, %202 : vector<2x32xf32>
    %204 = arith.negf %203 : vector<2x32xf32>
    %205 = math.exp %204 : vector<2x32xf32>
    %cst_64 = arith.constant 1.000000e+00 : f32
    %206 = vector.broadcast %cst_64 : f32 to vector<2x32xf32>
    %207 = arith.addf %206, %205 : vector<2x32xf32>
    %208 = arith.divf %206, %207 : vector<2x32xf32>
    %209 = vector.extract_strided_slice %189 {offsets = [0, 64], sizes = [2, 32], strides = [1, 1]} : vector<2x96xf32> to vector<2x32xf32>
    %210 = vector.extract_strided_slice %192 {offsets = [0, 64], sizes = [2, 32], strides = [1, 1]} : vector<2x96xf32> to vector<2x32xf32>
    %211 = arith.mulf %200, %210 : vector<2x32xf32>
    %212 = arith.addf %209, %211 : vector<2x32xf32>
    %213 = math.tanh %212 : vector<2x32xf32>
    %cst_65 = arith.constant 1.000000e+00 : f32
    %214 = vector.broadcast %cst_65 : f32 to vector<2x32xf32>
    %215 = arith.subf %214, %208 : vector<2x32xf32>
    %216 = arith.mulf %215, %213 : vector<2x32xf32>
    %217 = arith.mulf %208, %188 : vector<2x32xf32>
    %218 = arith.addf %216, %217 : vector<2x32xf32>
    %219 = vector.extract_strided_slice %65 {offsets = [10, 0], sizes = [2, 96], strides = [1, 1]} : vector<16x96xf32> to vector<2x96xf32>
    %cst_66 = arith.constant dense<0.000000e+00> : vector<2x96xf32>
    %220 = tpu.matmul %218, %66, %cst_66 {dimension_numbers = #tpu.dot_dimension_numbers<[1], [0], [0], [1], [0, 0, 1, 1], [], []>} : vector<2x32xf32>, vector<32x96xf32>, vector<2x96xf32> -> vector<2x96xf32>
    %221 = vector.broadcast %67 : vector<1x96xf32> to vector<2x96xf32>
    %222 = arith.addf %220, %221 : vector<2x96xf32>
    %223 = vector.extract_strided_slice %219 {offsets = [0, 0], sizes = [2, 32], strides = [1, 1]} : vector<2x96xf32> to vector<2x32xf32>
    %224 = vector.extract_strided_slice %222 {offsets = [0, 0], sizes = [2, 32], strides = [1, 1]} : vector<2x96xf32> to vector<2x32xf32>
    %225 = arith.addf %223, %224 : vector<2x32xf32>
    %226 = arith.negf %225 : vector<2x32xf32>
    %227 = math.exp %226 : vector<2x32xf32>
    %cst_67 = arith.constant 1.000000e+00 : f32
    %228 = vector.broadcast %cst_67 : f32 to vector<2x32xf32>
    %229 = arith.addf %228, %227 : vector<2x32xf32>
    %230 = arith.divf %228, %229 : vector<2x32xf32>
    %231 = vector.extract_strided_slice %219 {offsets = [0, 32], sizes = [2, 32], strides = [1, 1]} : vector<2x96xf32> to vector<2x32xf32>
    %232 = vector.extract_strided_slice %222 {offsets = [0, 32], sizes = [2, 32], strides = [1, 1]} : vector<2x96xf32> to vector<2x32xf32>
    %233 = arith.addf %231, %232 : vector<2x32xf32>
    %234 = arith.negf %233 : vector<2x32xf32>
    %235 = math.exp %234 : vector<2x32xf32>
    %cst_68 = arith.constant 1.000000e+00 : f32
    %236 = vector.broadcast %cst_68 : f32 to vector<2x32xf32>
    %237 = arith.addf %236, %235 : vector<2x32xf32>
    %238 = arith.divf %236, %237 : vector<2x32xf32>
    %239 = vector.extract_strided_slice %219 {offsets = [0, 64], sizes = [2, 32], strides = [1, 1]} : vector<2x96xf32> to vector<2x32xf32>
    %240 = vector.extract_strided_slice %222 {offsets = [0, 64], sizes = [2, 32], strides = [1, 1]} : vector<2x96xf32> to vector<2x32xf32>
    %241 = arith.mulf %230, %240 : vector<2x32xf32>
    %242 = arith.addf %239, %241 : vector<2x32xf32>
    %243 = math.tanh %242 : vector<2x32xf32>
    %cst_69 = arith.constant 1.000000e+00 : f32
    %244 = vector.broadcast %cst_69 : f32 to vector<2x32xf32>
    %245 = arith.subf %244, %238 : vector<2x32xf32>
    %246 = arith.mulf %245, %243 : vector<2x32xf32>
    %247 = arith.mulf %238, %218 : vector<2x32xf32>
    %248 = arith.addf %246, %247 : vector<2x32xf32>
    %249 = vector.extract_strided_slice %65 {offsets = [12, 0], sizes = [2, 96], strides = [1, 1]} : vector<16x96xf32> to vector<2x96xf32>
    %cst_70 = arith.constant dense<0.000000e+00> : vector<2x96xf32>
    %250 = tpu.matmul %248, %66, %cst_70 {dimension_numbers = #tpu.dot_dimension_numbers<[1], [0], [0], [1], [0, 0, 1, 1], [], []>} : vector<2x32xf32>, vector<32x96xf32>, vector<2x96xf32> -> vector<2x96xf32>
    %251 = vector.broadcast %67 : vector<1x96xf32> to vector<2x96xf32>
    %252 = arith.addf %250, %251 : vector<2x96xf32>
    %253 = vector.extract_strided_slice %249 {offsets = [0, 0], sizes = [2, 32], strides = [1, 1]} : vector<2x96xf32> to vector<2x32xf32>
    %254 = vector.extract_strided_slice %252 {offsets = [0, 0], sizes = [2, 32], strides = [1, 1]} : vector<2x96xf32> to vector<2x32xf32>
    %255 = arith.addf %253, %254 : vector<2x32xf32>
    %256 = arith.negf %255 : vector<2x32xf32>
    %257 = math.exp %256 : vector<2x32xf32>
    %cst_71 = arith.constant 1.000000e+00 : f32
    %258 = vector.broadcast %cst_71 : f32 to vector<2x32xf32>
    %259 = arith.addf %258, %257 : vector<2x32xf32>
    %260 = arith.divf %258, %259 : vector<2x32xf32>
    %261 = vector.extract_strided_slice %249 {offsets = [0, 32], sizes = [2, 32], strides = [1, 1]} : vector<2x96xf32> to vector<2x32xf32>
    %262 = vector.extract_strided_slice %252 {offsets = [0, 32], sizes = [2, 32], strides = [1, 1]} : vector<2x96xf32> to vector<2x32xf32>
    %263 = arith.addf %261, %262 : vector<2x32xf32>
    %264 = arith.negf %263 : vector<2x32xf32>
    %265 = math.exp %264 : vector<2x32xf32>
    %cst_72 = arith.constant 1.000000e+00 : f32
    %266 = vector.broadcast %cst_72 : f32 to vector<2x32xf32>
    %267 = arith.addf %266, %265 : vector<2x32xf32>
    %268 = arith.divf %266, %267 : vector<2x32xf32>
    %269 = vector.extract_strided_slice %249 {offsets = [0, 64], sizes = [2, 32], strides = [1, 1]} : vector<2x96xf32> to vector<2x32xf32>
    %270 = vector.extract_strided_slice %252 {offsets = [0, 64], sizes = [2, 32], strides = [1, 1]} : vector<2x96xf32> to vector<2x32xf32>
    %271 = arith.mulf %260, %270 : vector<2x32xf32>
    %272 = arith.addf %269, %271 : vector<2x32xf32>
    %273 = math.tanh %272 : vector<2x32xf32>
    %cst_73 = arith.constant 1.000000e+00 : f32
    %274 = vector.broadcast %cst_73 : f32 to vector<2x32xf32>
    %275 = arith.subf %274, %268 : vector<2x32xf32>
    %276 = arith.mulf %275, %273 : vector<2x32xf32>
    %277 = arith.mulf %268, %248 : vector<2x32xf32>
    %278 = arith.addf %276, %277 : vector<2x32xf32>
    %279 = vector.extract_strided_slice %65 {offsets = [14, 0], sizes = [2, 96], strides = [1, 1]} : vector<16x96xf32> to vector<2x96xf32>
    %cst_74 = arith.constant dense<0.000000e+00> : vector<2x96xf32>
    %280 = tpu.matmul %278, %66, %cst_74 {dimension_numbers = #tpu.dot_dimension_numbers<[1], [0], [0], [1], [0, 0, 1, 1], [], []>} : vector<2x32xf32>, vector<32x96xf32>, vector<2x96xf32> -> vector<2x96xf32>
    %281 = vector.broadcast %67 : vector<1x96xf32> to vector<2x96xf32>
    %282 = arith.addf %280, %281 : vector<2x96xf32>
    %283 = vector.extract_strided_slice %279 {offsets = [0, 0], sizes = [2, 32], strides = [1, 1]} : vector<2x96xf32> to vector<2x32xf32>
    %284 = vector.extract_strided_slice %282 {offsets = [0, 0], sizes = [2, 32], strides = [1, 1]} : vector<2x96xf32> to vector<2x32xf32>
    %285 = arith.addf %283, %284 : vector<2x32xf32>
    %286 = arith.negf %285 : vector<2x32xf32>
    %287 = math.exp %286 : vector<2x32xf32>
    %cst_75 = arith.constant 1.000000e+00 : f32
    %288 = vector.broadcast %cst_75 : f32 to vector<2x32xf32>
    %289 = arith.addf %288, %287 : vector<2x32xf32>
    %290 = arith.divf %288, %289 : vector<2x32xf32>
    %291 = vector.extract_strided_slice %279 {offsets = [0, 32], sizes = [2, 32], strides = [1, 1]} : vector<2x96xf32> to vector<2x32xf32>
    %292 = vector.extract_strided_slice %282 {offsets = [0, 32], sizes = [2, 32], strides = [1, 1]} : vector<2x96xf32> to vector<2x32xf32>
    %293 = arith.addf %291, %292 : vector<2x32xf32>
    %294 = arith.negf %293 : vector<2x32xf32>
    %295 = math.exp %294 : vector<2x32xf32>
    %cst_76 = arith.constant 1.000000e+00 : f32
    %296 = vector.broadcast %cst_76 : f32 to vector<2x32xf32>
    %297 = arith.addf %296, %295 : vector<2x32xf32>
    %298 = arith.divf %296, %297 : vector<2x32xf32>
    %299 = vector.extract_strided_slice %279 {offsets = [0, 64], sizes = [2, 32], strides = [1, 1]} : vector<2x96xf32> to vector<2x32xf32>
    %300 = vector.extract_strided_slice %282 {offsets = [0, 64], sizes = [2, 32], strides = [1, 1]} : vector<2x96xf32> to vector<2x32xf32>
    %301 = arith.mulf %290, %300 : vector<2x32xf32>
    %302 = arith.addf %299, %301 : vector<2x32xf32>
    %303 = math.tanh %302 : vector<2x32xf32>
    %cst_77 = arith.constant 1.000000e+00 : f32
    %304 = vector.broadcast %cst_77 : f32 to vector<2x32xf32>
    %305 = arith.subf %304, %298 : vector<2x32xf32>
    %306 = arith.mulf %305, %303 : vector<2x32xf32>
    %307 = arith.mulf %298, %278 : vector<2x32xf32>
    %308 = arith.addf %306, %307 : vector<2x32xf32>
    %309 = tpu.concatenate %98, %128, %158, %188, %218, %248, %278, %308 in 0 : vector<2x32xf32>, vector<2x32xf32>, vector<2x32xf32>, vector<2x32xf32>, vector<2x32xf32>, vector<2x32xf32>, vector<2x32xf32>, vector<2x32xf32> -> vector<16x32xf32>
    %c0_78 = arith.constant 0 : index
    %c0_79 = arith.constant 0 : index
    %310 = vector.load %arg17[%c0_78, %c0_79] : memref<32x128xf32, #tpu.memory_space<vmem>>, vector<32x128xf32>
    %cst_80 = arith.constant dense<0.000000e+00> : vector<16x128xf32>
    %311 = tpu.matmul %309, %310, %cst_80 {dimension_numbers = #tpu.dot_dimension_numbers<[1], [0], [0], [1], [0, 0, 1, 1], [], []>} : vector<16x32xf32>, vector<32x128xf32>, vector<16x128xf32> -> vector<16x128xf32>
    %c0_81 = arith.constant 0 : index
    %c0_82 = arith.constant 0 : index
    %312 = vector.load %arg19[%c0_81, %c0_82] : memref<1x128xf32, #tpu.memory_space<vmem>>, vector<1x128xf32>
    %313 = vector.broadcast %312 : vector<1x128xf32> to vector<16x128xf32>
    %314 = arith.addf %311, %313 : vector<16x128xf32>
    %c0_83 = arith.constant 0 : index
    %c0_84 = arith.constant 0 : index
    %315 = vector.load %arg18[%c0_83, %c0_84] : memref<32x128xf32, #tpu.memory_space<vmem>>, vector<32x128xf32>
    %c0_85 = arith.constant 0 : index
    %c0_86 = arith.constant 0 : index
    %316 = vector.load %arg20[%c0_85, %c0_86] : memref<1x128xf32, #tpu.memory_space<vmem>>, vector<1x128xf32>
    %cst_87 = arith.constant 0.000000e+00 : f32
    %317 = vector.broadcast %cst_87 : f32 to vector<2x32xf32>
    %cst_88 = arith.constant 0.000000e+00 : f32
    %318 = vector.broadcast %cst_88 : f32 to vector<2x32xf32>
    %319 = vector.extract_strided_slice %314 {offsets = [0, 0], sizes = [2, 128], strides = [1, 1]} : vector<16x128xf32> to vector<2x128xf32>
    %cst_89 = arith.constant dense<0.000000e+00> : vector<2x128xf32>
    %320 = tpu.matmul %317, %315, %cst_89 {dimension_numbers = #tpu.dot_dimension_numbers<[1], [0], [0], [1], [0, 0, 1, 1], [], []>} : vector<2x32xf32>, vector<32x128xf32>, vector<2x128xf32> -> vector<2x128xf32>
    %321 = arith.addf %319, %320 : vector<2x128xf32>
    %322 = vector.broadcast %316 : vector<1x128xf32> to vector<2x128xf32>
    %323 = arith.addf %321, %322 : vector<2x128xf32>
    %324 = vector.extract_strided_slice %323 {offsets = [0, 0], sizes = [2, 32], strides = [1, 1]} : vector<2x128xf32> to vector<2x32xf32>
    %325 = arith.negf %324 : vector<2x32xf32>
    %326 = math.exp %325 : vector<2x32xf32>
    %cst_90 = arith.constant 1.000000e+00 : f32
    %327 = vector.broadcast %cst_90 : f32 to vector<2x32xf32>
    %328 = arith.addf %327, %326 : vector<2x32xf32>
    %329 = arith.divf %327, %328 : vector<2x32xf32>
    %330 = vector.extract_strided_slice %323 {offsets = [0, 32], sizes = [2, 32], strides = [1, 1]} : vector<2x128xf32> to vector<2x32xf32>
    %331 = arith.negf %330 : vector<2x32xf32>
    %332 = math.exp %331 : vector<2x32xf32>
    %cst_91 = arith.constant 1.000000e+00 : f32
    %333 = vector.broadcast %cst_91 : f32 to vector<2x32xf32>
    %334 = arith.addf %333, %332 : vector<2x32xf32>
    %335 = arith.divf %333, %334 : vector<2x32xf32>
    %336 = vector.extract_strided_slice %323 {offsets = [0, 64], sizes = [2, 32], strides = [1, 1]} : vector<2x128xf32> to vector<2x32xf32>
    %337 = math.tanh %336 : vector<2x32xf32>
    %338 = vector.extract_strided_slice %323 {offsets = [0, 96], sizes = [2, 32], strides = [1, 1]} : vector<2x128xf32> to vector<2x32xf32>
    %339 = arith.negf %338 : vector<2x32xf32>
    %340 = math.exp %339 : vector<2x32xf32>
    %cst_92 = arith.constant 1.000000e+00 : f32
    %341 = vector.broadcast %cst_92 : f32 to vector<2x32xf32>
    %342 = arith.addf %341, %340 : vector<2x32xf32>
    %343 = arith.divf %341, %342 : vector<2x32xf32>
    %344 = arith.mulf %335, %318 : vector<2x32xf32>
    %345 = arith.mulf %329, %337 : vector<2x32xf32>
    %346 = arith.addf %344, %345 : vector<2x32xf32>
    %347 = math.tanh %346 : vector<2x32xf32>
    %348 = arith.mulf %343, %347 : vector<2x32xf32>
    %349 = vector.extract_strided_slice %314 {offsets = [2, 0], sizes = [2, 128], strides = [1, 1]} : vector<16x128xf32> to vector<2x128xf32>
    %cst_93 = arith.constant dense<0.000000e+00> : vector<2x128xf32>
    %350 = tpu.matmul %348, %315, %cst_93 {dimension_numbers = #tpu.dot_dimension_numbers<[1], [0], [0], [1], [0, 0, 1, 1], [], []>} : vector<2x32xf32>, vector<32x128xf32>, vector<2x128xf32> -> vector<2x128xf32>
    %351 = arith.addf %349, %350 : vector<2x128xf32>
    %352 = vector.broadcast %316 : vector<1x128xf32> to vector<2x128xf32>
    %353 = arith.addf %351, %352 : vector<2x128xf32>
    %354 = vector.extract_strided_slice %353 {offsets = [0, 0], sizes = [2, 32], strides = [1, 1]} : vector<2x128xf32> to vector<2x32xf32>
    %355 = arith.negf %354 : vector<2x32xf32>
    %356 = math.exp %355 : vector<2x32xf32>
    %cst_94 = arith.constant 1.000000e+00 : f32
    %357 = vector.broadcast %cst_94 : f32 to vector<2x32xf32>
    %358 = arith.addf %357, %356 : vector<2x32xf32>
    %359 = arith.divf %357, %358 : vector<2x32xf32>
    %360 = vector.extract_strided_slice %353 {offsets = [0, 32], sizes = [2, 32], strides = [1, 1]} : vector<2x128xf32> to vector<2x32xf32>
    %361 = arith.negf %360 : vector<2x32xf32>
    %362 = math.exp %361 : vector<2x32xf32>
    %cst_95 = arith.constant 1.000000e+00 : f32
    %363 = vector.broadcast %cst_95 : f32 to vector<2x32xf32>
    %364 = arith.addf %363, %362 : vector<2x32xf32>
    %365 = arith.divf %363, %364 : vector<2x32xf32>
    %366 = vector.extract_strided_slice %353 {offsets = [0, 64], sizes = [2, 32], strides = [1, 1]} : vector<2x128xf32> to vector<2x32xf32>
    %367 = math.tanh %366 : vector<2x32xf32>
    %368 = vector.extract_strided_slice %353 {offsets = [0, 96], sizes = [2, 32], strides = [1, 1]} : vector<2x128xf32> to vector<2x32xf32>
    %369 = arith.negf %368 : vector<2x32xf32>
    %370 = math.exp %369 : vector<2x32xf32>
    %cst_96 = arith.constant 1.000000e+00 : f32
    %371 = vector.broadcast %cst_96 : f32 to vector<2x32xf32>
    %372 = arith.addf %371, %370 : vector<2x32xf32>
    %373 = arith.divf %371, %372 : vector<2x32xf32>
    %374 = arith.mulf %365, %346 : vector<2x32xf32>
    %375 = arith.mulf %359, %367 : vector<2x32xf32>
    %376 = arith.addf %374, %375 : vector<2x32xf32>
    %377 = math.tanh %376 : vector<2x32xf32>
    %378 = arith.mulf %373, %377 : vector<2x32xf32>
    %379 = vector.extract_strided_slice %314 {offsets = [4, 0], sizes = [2, 128], strides = [1, 1]} : vector<16x128xf32> to vector<2x128xf32>
    %cst_97 = arith.constant dense<0.000000e+00> : vector<2x128xf32>
    %380 = tpu.matmul %378, %315, %cst_97 {dimension_numbers = #tpu.dot_dimension_numbers<[1], [0], [0], [1], [0, 0, 1, 1], [], []>} : vector<2x32xf32>, vector<32x128xf32>, vector<2x128xf32> -> vector<2x128xf32>
    %381 = arith.addf %379, %380 : vector<2x128xf32>
    %382 = vector.broadcast %316 : vector<1x128xf32> to vector<2x128xf32>
    %383 = arith.addf %381, %382 : vector<2x128xf32>
    %384 = vector.extract_strided_slice %383 {offsets = [0, 0], sizes = [2, 32], strides = [1, 1]} : vector<2x128xf32> to vector<2x32xf32>
    %385 = arith.negf %384 : vector<2x32xf32>
    %386 = math.exp %385 : vector<2x32xf32>
    %cst_98 = arith.constant 1.000000e+00 : f32
    %387 = vector.broadcast %cst_98 : f32 to vector<2x32xf32>
    %388 = arith.addf %387, %386 : vector<2x32xf32>
    %389 = arith.divf %387, %388 : vector<2x32xf32>
    %390 = vector.extract_strided_slice %383 {offsets = [0, 32], sizes = [2, 32], strides = [1, 1]} : vector<2x128xf32> to vector<2x32xf32>
    %391 = arith.negf %390 : vector<2x32xf32>
    %392 = math.exp %391 : vector<2x32xf32>
    %cst_99 = arith.constant 1.000000e+00 : f32
    %393 = vector.broadcast %cst_99 : f32 to vector<2x32xf32>
    %394 = arith.addf %393, %392 : vector<2x32xf32>
    %395 = arith.divf %393, %394 : vector<2x32xf32>
    %396 = vector.extract_strided_slice %383 {offsets = [0, 64], sizes = [2, 32], strides = [1, 1]} : vector<2x128xf32> to vector<2x32xf32>
    %397 = math.tanh %396 : vector<2x32xf32>
    %398 = vector.extract_strided_slice %383 {offsets = [0, 96], sizes = [2, 32], strides = [1, 1]} : vector<2x128xf32> to vector<2x32xf32>
    %399 = arith.negf %398 : vector<2x32xf32>
    %400 = math.exp %399 : vector<2x32xf32>
    %cst_100 = arith.constant 1.000000e+00 : f32
    %401 = vector.broadcast %cst_100 : f32 to vector<2x32xf32>
    %402 = arith.addf %401, %400 : vector<2x32xf32>
    %403 = arith.divf %401, %402 : vector<2x32xf32>
    %404 = arith.mulf %395, %376 : vector<2x32xf32>
    %405 = arith.mulf %389, %397 : vector<2x32xf32>
    %406 = arith.addf %404, %405 : vector<2x32xf32>
    %407 = math.tanh %406 : vector<2x32xf32>
    %408 = arith.mulf %403, %407 : vector<2x32xf32>
    %409 = vector.extract_strided_slice %314 {offsets = [6, 0], sizes = [2, 128], strides = [1, 1]} : vector<16x128xf32> to vector<2x128xf32>
    %cst_101 = arith.constant dense<0.000000e+00> : vector<2x128xf32>
    %410 = tpu.matmul %408, %315, %cst_101 {dimension_numbers = #tpu.dot_dimension_numbers<[1], [0], [0], [1], [0, 0, 1, 1], [], []>} : vector<2x32xf32>, vector<32x128xf32>, vector<2x128xf32> -> vector<2x128xf32>
    %411 = arith.addf %409, %410 : vector<2x128xf32>
    %412 = vector.broadcast %316 : vector<1x128xf32> to vector<2x128xf32>
    %413 = arith.addf %411, %412 : vector<2x128xf32>
    %414 = vector.extract_strided_slice %413 {offsets = [0, 0], sizes = [2, 32], strides = [1, 1]} : vector<2x128xf32> to vector<2x32xf32>
    %415 = arith.negf %414 : vector<2x32xf32>
    %416 = math.exp %415 : vector<2x32xf32>
    %cst_102 = arith.constant 1.000000e+00 : f32
    %417 = vector.broadcast %cst_102 : f32 to vector<2x32xf32>
    %418 = arith.addf %417, %416 : vector<2x32xf32>
    %419 = arith.divf %417, %418 : vector<2x32xf32>
    %420 = vector.extract_strided_slice %413 {offsets = [0, 32], sizes = [2, 32], strides = [1, 1]} : vector<2x128xf32> to vector<2x32xf32>
    %421 = arith.negf %420 : vector<2x32xf32>
    %422 = math.exp %421 : vector<2x32xf32>
    %cst_103 = arith.constant 1.000000e+00 : f32
    %423 = vector.broadcast %cst_103 : f32 to vector<2x32xf32>
    %424 = arith.addf %423, %422 : vector<2x32xf32>
    %425 = arith.divf %423, %424 : vector<2x32xf32>
    %426 = vector.extract_strided_slice %413 {offsets = [0, 64], sizes = [2, 32], strides = [1, 1]} : vector<2x128xf32> to vector<2x32xf32>
    %427 = math.tanh %426 : vector<2x32xf32>
    %428 = vector.extract_strided_slice %413 {offsets = [0, 96], sizes = [2, 32], strides = [1, 1]} : vector<2x128xf32> to vector<2x32xf32>
    %429 = arith.negf %428 : vector<2x32xf32>
    %430 = math.exp %429 : vector<2x32xf32>
    %cst_104 = arith.constant 1.000000e+00 : f32
    %431 = vector.broadcast %cst_104 : f32 to vector<2x32xf32>
    %432 = arith.addf %431, %430 : vector<2x32xf32>
    %433 = arith.divf %431, %432 : vector<2x32xf32>
    %434 = arith.mulf %425, %406 : vector<2x32xf32>
    %435 = arith.mulf %419, %427 : vector<2x32xf32>
    %436 = arith.addf %434, %435 : vector<2x32xf32>
    %437 = math.tanh %436 : vector<2x32xf32>
    %438 = arith.mulf %433, %437 : vector<2x32xf32>
    %439 = vector.extract_strided_slice %314 {offsets = [8, 0], sizes = [2, 128], strides = [1, 1]} : vector<16x128xf32> to vector<2x128xf32>
    %cst_105 = arith.constant dense<0.000000e+00> : vector<2x128xf32>
    %440 = tpu.matmul %438, %315, %cst_105 {dimension_numbers = #tpu.dot_dimension_numbers<[1], [0], [0], [1], [0, 0, 1, 1], [], []>} : vector<2x32xf32>, vector<32x128xf32>, vector<2x128xf32> -> vector<2x128xf32>
    %441 = arith.addf %439, %440 : vector<2x128xf32>
    %442 = vector.broadcast %316 : vector<1x128xf32> to vector<2x128xf32>
    %443 = arith.addf %441, %442 : vector<2x128xf32>
    %444 = vector.extract_strided_slice %443 {offsets = [0, 0], sizes = [2, 32], strides = [1, 1]} : vector<2x128xf32> to vector<2x32xf32>
    %445 = arith.negf %444 : vector<2x32xf32>
    %446 = math.exp %445 : vector<2x32xf32>
    %cst_106 = arith.constant 1.000000e+00 : f32
    %447 = vector.broadcast %cst_106 : f32 to vector<2x32xf32>
    %448 = arith.addf %447, %446 : vector<2x32xf32>
    %449 = arith.divf %447, %448 : vector<2x32xf32>
    %450 = vector.extract_strided_slice %443 {offsets = [0, 32], sizes = [2, 32], strides = [1, 1]} : vector<2x128xf32> to vector<2x32xf32>
    %451 = arith.negf %450 : vector<2x32xf32>
    %452 = math.exp %451 : vector<2x32xf32>
    %cst_107 = arith.constant 1.000000e+00 : f32
    %453 = vector.broadcast %cst_107 : f32 to vector<2x32xf32>
    %454 = arith.addf %453, %452 : vector<2x32xf32>
    %455 = arith.divf %453, %454 : vector<2x32xf32>
    %456 = vector.extract_strided_slice %443 {offsets = [0, 64], sizes = [2, 32], strides = [1, 1]} : vector<2x128xf32> to vector<2x32xf32>
    %457 = math.tanh %456 : vector<2x32xf32>
    %458 = vector.extract_strided_slice %443 {offsets = [0, 96], sizes = [2, 32], strides = [1, 1]} : vector<2x128xf32> to vector<2x32xf32>
    %459 = arith.negf %458 : vector<2x32xf32>
    %460 = math.exp %459 : vector<2x32xf32>
    %cst_108 = arith.constant 1.000000e+00 : f32
    %461 = vector.broadcast %cst_108 : f32 to vector<2x32xf32>
    %462 = arith.addf %461, %460 : vector<2x32xf32>
    %463 = arith.divf %461, %462 : vector<2x32xf32>
    %464 = arith.mulf %455, %436 : vector<2x32xf32>
    %465 = arith.mulf %449, %457 : vector<2x32xf32>
    %466 = arith.addf %464, %465 : vector<2x32xf32>
    %467 = math.tanh %466 : vector<2x32xf32>
    %468 = arith.mulf %463, %467 : vector<2x32xf32>
    %469 = vector.extract_strided_slice %314 {offsets = [10, 0], sizes = [2, 128], strides = [1, 1]} : vector<16x128xf32> to vector<2x128xf32>
    %cst_109 = arith.constant dense<0.000000e+00> : vector<2x128xf32>
    %470 = tpu.matmul %468, %315, %cst_109 {dimension_numbers = #tpu.dot_dimension_numbers<[1], [0], [0], [1], [0, 0, 1, 1], [], []>} : vector<2x32xf32>, vector<32x128xf32>, vector<2x128xf32> -> vector<2x128xf32>
    %471 = arith.addf %469, %470 : vector<2x128xf32>
    %472 = vector.broadcast %316 : vector<1x128xf32> to vector<2x128xf32>
    %473 = arith.addf %471, %472 : vector<2x128xf32>
    %474 = vector.extract_strided_slice %473 {offsets = [0, 0], sizes = [2, 32], strides = [1, 1]} : vector<2x128xf32> to vector<2x32xf32>
    %475 = arith.negf %474 : vector<2x32xf32>
    %476 = math.exp %475 : vector<2x32xf32>
    %cst_110 = arith.constant 1.000000e+00 : f32
    %477 = vector.broadcast %cst_110 : f32 to vector<2x32xf32>
    %478 = arith.addf %477, %476 : vector<2x32xf32>
    %479 = arith.divf %477, %478 : vector<2x32xf32>
    %480 = vector.extract_strided_slice %473 {offsets = [0, 32], sizes = [2, 32], strides = [1, 1]} : vector<2x128xf32> to vector<2x32xf32>
    %481 = arith.negf %480 : vector<2x32xf32>
    %482 = math.exp %481 : vector<2x32xf32>
    %cst_111 = arith.constant 1.000000e+00 : f32
    %483 = vector.broadcast %cst_111 : f32 to vector<2x32xf32>
    %484 = arith.addf %483, %482 : vector<2x32xf32>
    %485 = arith.divf %483, %484 : vector<2x32xf32>
    %486 = vector.extract_strided_slice %473 {offsets = [0, 64], sizes = [2, 32], strides = [1, 1]} : vector<2x128xf32> to vector<2x32xf32>
    %487 = math.tanh %486 : vector<2x32xf32>
    %488 = vector.extract_strided_slice %473 {offsets = [0, 96], sizes = [2, 32], strides = [1, 1]} : vector<2x128xf32> to vector<2x32xf32>
    %489 = arith.negf %488 : vector<2x32xf32>
    %490 = math.exp %489 : vector<2x32xf32>
    %cst_112 = arith.constant 1.000000e+00 : f32
    %491 = vector.broadcast %cst_112 : f32 to vector<2x32xf32>
    %492 = arith.addf %491, %490 : vector<2x32xf32>
    %493 = arith.divf %491, %492 : vector<2x32xf32>
    %494 = arith.mulf %485, %466 : vector<2x32xf32>
    %495 = arith.mulf %479, %487 : vector<2x32xf32>
    %496 = arith.addf %494, %495 : vector<2x32xf32>
    %497 = math.tanh %496 : vector<2x32xf32>
    %498 = arith.mulf %493, %497 : vector<2x32xf32>
    %499 = vector.extract_strided_slice %314 {offsets = [12, 0], sizes = [2, 128], strides = [1, 1]} : vector<16x128xf32> to vector<2x128xf32>
    %cst_113 = arith.constant dense<0.000000e+00> : vector<2x128xf32>
    %500 = tpu.matmul %498, %315, %cst_113 {dimension_numbers = #tpu.dot_dimension_numbers<[1], [0], [0], [1], [0, 0, 1, 1], [], []>} : vector<2x32xf32>, vector<32x128xf32>, vector<2x128xf32> -> vector<2x128xf32>
    %501 = arith.addf %499, %500 : vector<2x128xf32>
    %502 = vector.broadcast %316 : vector<1x128xf32> to vector<2x128xf32>
    %503 = arith.addf %501, %502 : vector<2x128xf32>
    %504 = vector.extract_strided_slice %503 {offsets = [0, 0], sizes = [2, 32], strides = [1, 1]} : vector<2x128xf32> to vector<2x32xf32>
    %505 = arith.negf %504 : vector<2x32xf32>
    %506 = math.exp %505 : vector<2x32xf32>
    %cst_114 = arith.constant 1.000000e+00 : f32
    %507 = vector.broadcast %cst_114 : f32 to vector<2x32xf32>
    %508 = arith.addf %507, %506 : vector<2x32xf32>
    %509 = arith.divf %507, %508 : vector<2x32xf32>
    %510 = vector.extract_strided_slice %503 {offsets = [0, 32], sizes = [2, 32], strides = [1, 1]} : vector<2x128xf32> to vector<2x32xf32>
    %511 = arith.negf %510 : vector<2x32xf32>
    %512 = math.exp %511 : vector<2x32xf32>
    %cst_115 = arith.constant 1.000000e+00 : f32
    %513 = vector.broadcast %cst_115 : f32 to vector<2x32xf32>
    %514 = arith.addf %513, %512 : vector<2x32xf32>
    %515 = arith.divf %513, %514 : vector<2x32xf32>
    %516 = vector.extract_strided_slice %503 {offsets = [0, 64], sizes = [2, 32], strides = [1, 1]} : vector<2x128xf32> to vector<2x32xf32>
    %517 = math.tanh %516 : vector<2x32xf32>
    %518 = vector.extract_strided_slice %503 {offsets = [0, 96], sizes = [2, 32], strides = [1, 1]} : vector<2x128xf32> to vector<2x32xf32>
    %519 = arith.negf %518 : vector<2x32xf32>
    %520 = math.exp %519 : vector<2x32xf32>
    %cst_116 = arith.constant 1.000000e+00 : f32
    %521 = vector.broadcast %cst_116 : f32 to vector<2x32xf32>
    %522 = arith.addf %521, %520 : vector<2x32xf32>
    %523 = arith.divf %521, %522 : vector<2x32xf32>
    %524 = arith.mulf %515, %496 : vector<2x32xf32>
    %525 = arith.mulf %509, %517 : vector<2x32xf32>
    %526 = arith.addf %524, %525 : vector<2x32xf32>
    %527 = math.tanh %526 : vector<2x32xf32>
    %528 = arith.mulf %523, %527 : vector<2x32xf32>
    %529 = vector.extract_strided_slice %314 {offsets = [14, 0], sizes = [2, 128], strides = [1, 1]} : vector<16x128xf32> to vector<2x128xf32>
    %cst_117 = arith.constant dense<0.000000e+00> : vector<2x128xf32>
    %530 = tpu.matmul %528, %315, %cst_117 {dimension_numbers = #tpu.dot_dimension_numbers<[1], [0], [0], [1], [0, 0, 1, 1], [], []>} : vector<2x32xf32>, vector<32x128xf32>, vector<2x128xf32> -> vector<2x128xf32>
    %531 = arith.addf %529, %530 : vector<2x128xf32>
    %532 = vector.broadcast %316 : vector<1x128xf32> to vector<2x128xf32>
    %533 = arith.addf %531, %532 : vector<2x128xf32>
    %534 = vector.extract_strided_slice %533 {offsets = [0, 0], sizes = [2, 32], strides = [1, 1]} : vector<2x128xf32> to vector<2x32xf32>
    %535 = arith.negf %534 : vector<2x32xf32>
    %536 = math.exp %535 : vector<2x32xf32>
    %cst_118 = arith.constant 1.000000e+00 : f32
    %537 = vector.broadcast %cst_118 : f32 to vector<2x32xf32>
    %538 = arith.addf %537, %536 : vector<2x32xf32>
    %539 = arith.divf %537, %538 : vector<2x32xf32>
    %540 = vector.extract_strided_slice %533 {offsets = [0, 32], sizes = [2, 32], strides = [1, 1]} : vector<2x128xf32> to vector<2x32xf32>
    %541 = arith.negf %540 : vector<2x32xf32>
    %542 = math.exp %541 : vector<2x32xf32>
    %cst_119 = arith.constant 1.000000e+00 : f32
    %543 = vector.broadcast %cst_119 : f32 to vector<2x32xf32>
    %544 = arith.addf %543, %542 : vector<2x32xf32>
    %545 = arith.divf %543, %544 : vector<2x32xf32>
    %546 = vector.extract_strided_slice %533 {offsets = [0, 64], sizes = [2, 32], strides = [1, 1]} : vector<2x128xf32> to vector<2x32xf32>
    %547 = math.tanh %546 : vector<2x32xf32>
    %548 = vector.extract_strided_slice %533 {offsets = [0, 96], sizes = [2, 32], strides = [1, 1]} : vector<2x128xf32> to vector<2x32xf32>
    %549 = arith.negf %548 : vector<2x32xf32>
    %550 = math.exp %549 : vector<2x32xf32>
    %cst_120 = arith.constant 1.000000e+00 : f32
    %551 = vector.broadcast %cst_120 : f32 to vector<2x32xf32>
    %552 = arith.addf %551, %550 : vector<2x32xf32>
    %553 = arith.divf %551, %552 : vector<2x32xf32>
    %554 = arith.mulf %545, %526 : vector<2x32xf32>
    %555 = arith.mulf %539, %547 : vector<2x32xf32>
    %556 = arith.addf %554, %555 : vector<2x32xf32>
    %557 = math.tanh %556 : vector<2x32xf32>
    %558 = arith.mulf %553, %557 : vector<2x32xf32>
    %559 = tpu.concatenate %348, %378, %408, %438, %468, %498, %528, %558 in 0 : vector<2x32xf32>, vector<2x32xf32>, vector<2x32xf32>, vector<2x32xf32>, vector<2x32xf32>, vector<2x32xf32>, vector<2x32xf32>, vector<2x32xf32> -> vector<16x32xf32>
    %560 = vector.extract_strided_slice %309 {offsets = [0, 0], sizes = [2, 32], strides = [1, 1]} : vector<16x32xf32> to vector<2x32xf32>
    %561 = tpu.concatenate %560, %560, %560, %560, %560, %560, %560, %560 in 0 : vector<2x32xf32>, vector<2x32xf32>, vector<2x32xf32>, vector<2x32xf32>, vector<2x32xf32>, vector<2x32xf32>, vector<2x32xf32>, vector<2x32xf32> -> vector<16x32xf32>
    %c0_121 = arith.constant 0 : index
    %c0_122 = arith.constant 0 : index
    %562 = vector.load %arg21[%c0_121, %c0_122] : memref<32x32xf32, #tpu.memory_space<vmem>>, vector<32x32xf32>
    %cst_123 = arith.constant dense<0.000000e+00> : vector<16x32xf32>
    %563 = tpu.matmul %559, %562, %cst_123 {dimension_numbers = #tpu.dot_dimension_numbers<[1], [0], [0], [1], [0, 0, 1, 1], [], []>} : vector<16x32xf32>, vector<32x32xf32>, vector<16x32xf32> -> vector<16x32xf32>
    %c0_124 = arith.constant 0 : index
    %c0_125 = arith.constant 0 : index
    %564 = vector.load %arg22[%c0_124, %c0_125] : memref<1x32xf32, #tpu.memory_space<vmem>>, vector<1x32xf32>
    %565 = vector.broadcast %564 : vector<1x32xf32> to vector<16x32xf32>
    %566 = arith.addf %563, %565 : vector<16x32xf32>
    %c0_126 = arith.constant 0 : index
    %c0_127 = arith.constant 0 : index
    %567 = vector.load %arg23[%c0_126, %c0_127] : memref<32x16xf32, #tpu.memory_space<vmem>>, vector<32x16xf32>
    %cst_128 = arith.constant dense<0.000000e+00> : vector<16x16xf32>
    %568 = tpu.matmul %561, %567, %cst_128 {dimension_numbers = #tpu.dot_dimension_numbers<[1], [0], [0], [1], [0, 0, 1, 1], [], []>} : vector<16x32xf32>, vector<32x16xf32>, vector<16x16xf32> -> vector<16x16xf32>
    %c0_129 = arith.constant 0 : index
    %c0_130 = arith.constant 0 : index
    %569 = vector.load %arg24[%c0_129, %c0_130] : memref<32x16xf32, #tpu.memory_space<vmem>>, vector<32x16xf32>
    %cst_131 = arith.constant dense<0.000000e+00> : vector<16x16xf32>
    %570 = tpu.matmul %566, %569, %cst_131 {dimension_numbers = #tpu.dot_dimension_numbers<[1], [0], [0], [1], [0, 0, 1, 1], [], []>} : vector<16x32xf32>, vector<32x16xf32>, vector<16x16xf32> -> vector<16x16xf32>
    %571 = arith.addf %568, %570 : vector<16x16xf32>
    %c0_132 = arith.constant 0 : index
    %c0_133 = arith.constant 0 : index
    %572 = vector.load %arg25[%c0_132, %c0_133] : memref<1x16xf32, #tpu.memory_space<vmem>>, vector<1x16xf32>
    %573 = vector.broadcast %572 : vector<1x16xf32> to vector<16x16xf32>
    %574 = arith.addf %571, %573 : vector<16x16xf32>
    %575 = math.tanh %574 : vector<16x16xf32>
    %c0_134 = arith.constant 0 : index
    %c0_135 = arith.constant 0 : index
    %576 = vector.load %arg26[%c0_134, %c0_135] : memref<16x2xf32, #tpu.memory_space<vmem>>, vector<16x2xf32>
    %cst_136 = arith.constant dense<0.000000e+00> : vector<16x2xf32>
    %577 = tpu.matmul %575, %576, %cst_136 {dimension_numbers = #tpu.dot_dimension_numbers<[1], [0], [0], [1], [0, 0, 1, 1], [], []>} : vector<16x16xf32>, vector<16x2xf32>, vector<16x2xf32> -> vector<16x2xf32>
    %c0_137 = arith.constant 0 : index
    %c0_138 = arith.constant 0 : index
    %578 = vector.load %arg27[%c0_137, %c0_138] : memref<1x2xf32, #tpu.memory_space<vmem>>, vector<1x2xf32>
    %579 = vector.broadcast %578 : vector<1x2xf32> to vector<16x2xf32>
    %580 = arith.addf %577, %579 : vector<16x2xf32>
    %581 = vector.extract_strided_slice %580 {offsets = [0, 0], sizes = [16, 1], strides = [1, 1]} : vector<16x2xf32> to vector<16x1xf32>
    %582 = vector.extract_strided_slice %580 {offsets = [0, 1], sizes = [16, 1], strides = [1, 1]} : vector<16x2xf32> to vector<16x1xf32>
    %583 = arith.subf %581, %582 : vector<16x1xf32>
    %584 = arith.negf %583 : vector<16x1xf32>
    %585 = math.exp %584 : vector<16x1xf32>
    %cst_139 = arith.constant 1.000000e+00 : f32
    %586 = vector.broadcast %cst_139 : f32 to vector<16x1xf32>
    %587 = arith.addf %586, %585 : vector<16x1xf32>
    %588 = arith.divf %586, %587 : vector<16x1xf32>
    %589 = vector.broadcast %588 : vector<16x1xf32> to vector<16x32xf32>
    %590 = arith.mulf %561, %589 : vector<16x32xf32>
    %cst_140 = arith.constant 1.000000e+00 : f32
    %591 = vector.broadcast %cst_140 : f32 to vector<16x1xf32>
    %592 = arith.subf %591, %588 : vector<16x1xf32>
    %593 = vector.broadcast %592 : vector<16x1xf32> to vector<16x32xf32>
    %594 = arith.mulf %566, %593 : vector<16x32xf32>
    %595 = arith.addf %590, %594 : vector<16x32xf32>
    %596 = vector.extract_strided_slice %595 {offsets = [0, 0], sizes = [14, 32], strides = [1, 1]} : vector<16x32xf32> to vector<14x32xf32>
    %597 = tpu.concatenate %560, %596 in 0 : vector<2x32xf32>, vector<14x32xf32> -> vector<16x32xf32>
    %c0_141 = arith.constant 0 : index
    %c0_142 = arith.constant 0 : index
    %598 = vector.load %arg1[%c0_141, %c0_142] : memref<16x32xf32, #tpu.memory_space<vmem>>, vector<16x32xf32>
    %599 = arith.addf %597, %598 : vector<16x32xf32>
    %c0_143 = arith.constant 0 : index
    %c0_144 = arith.constant 0 : index
    %600 = vector.load %arg28[%c0_143, %c0_144] : memref<32x32xf32, #tpu.memory_space<vmem>>, vector<32x32xf32>
    %cst_145 = arith.constant dense<0.000000e+00> : vector<16x32xf32>
    %601 = tpu.matmul %309, %600, %cst_145 {dimension_numbers = #tpu.dot_dimension_numbers<[1], [0], [0], [1], [0, 0, 1, 1], [], []>} : vector<16x32xf32>, vector<32x32xf32>, vector<16x32xf32> -> vector<16x32xf32>
    %c0_146 = arith.constant 0 : index
    %c0_147 = arith.constant 0 : index
    %602 = vector.load %arg29[%c0_146, %c0_147] : memref<32x32xf32, #tpu.memory_space<vmem>>, vector<32x32xf32>
    %cst_148 = arith.constant dense<0.000000e+00> : vector<16x32xf32>
    %603 = tpu.matmul %599, %602, %cst_148 {dimension_numbers = #tpu.dot_dimension_numbers<[1], [0], [0], [1], [0, 0, 1, 1], [], []>} : vector<16x32xf32>, vector<32x32xf32>, vector<16x32xf32> -> vector<16x32xf32>
    %604 = arith.addf %601, %603 : vector<16x32xf32>
    %c0_149 = arith.constant 0 : index
    %c0_150 = arith.constant 0 : index
    %605 = vector.load %arg30[%c0_149, %c0_150] : memref<1x32xf32, #tpu.memory_space<vmem>>, vector<1x32xf32>
    %606 = vector.broadcast %605 : vector<1x32xf32> to vector<16x32xf32>
    %607 = arith.addf %604, %606 : vector<16x32xf32>
    %608 = vector.extract_strided_slice %607 {offsets = [0, 0], sizes = [2, 32], strides = [1, 1]} : vector<16x32xf32> to vector<2x32xf32>
    %609 = vector.extract_strided_slice %607 {offsets = [2, 0], sizes = [2, 32], strides = [1, 1]} : vector<16x32xf32> to vector<2x32xf32>
    %610 = arith.maximumf %608, %609 : vector<2x32xf32>
    %611 = vector.extract_strided_slice %607 {offsets = [4, 0], sizes = [2, 32], strides = [1, 1]} : vector<16x32xf32> to vector<2x32xf32>
    %612 = arith.maximumf %610, %611 : vector<2x32xf32>
    %613 = vector.extract_strided_slice %607 {offsets = [6, 0], sizes = [2, 32], strides = [1, 1]} : vector<16x32xf32> to vector<2x32xf32>
    %614 = arith.maximumf %612, %613 : vector<2x32xf32>
    %615 = vector.extract_strided_slice %607 {offsets = [8, 0], sizes = [2, 32], strides = [1, 1]} : vector<16x32xf32> to vector<2x32xf32>
    %616 = arith.maximumf %614, %615 : vector<2x32xf32>
    %617 = vector.extract_strided_slice %607 {offsets = [10, 0], sizes = [2, 32], strides = [1, 1]} : vector<16x32xf32> to vector<2x32xf32>
    %618 = arith.maximumf %616, %617 : vector<2x32xf32>
    %619 = vector.extract_strided_slice %607 {offsets = [12, 0], sizes = [2, 32], strides = [1, 1]} : vector<16x32xf32> to vector<2x32xf32>
    %620 = arith.maximumf %618, %619 : vector<2x32xf32>
    %621 = vector.extract_strided_slice %607 {offsets = [14, 0], sizes = [2, 32], strides = [1, 1]} : vector<16x32xf32> to vector<2x32xf32>
    %622 = arith.maximumf %620, %621 : vector<2x32xf32>
    %c0_151 = arith.constant 0 : index
    %c0_152 = arith.constant 0 : index
    %623 = vector.load %arg31[%c0_151, %c0_152] : memref<32x2xf32, #tpu.memory_space<vmem>>, vector<32x2xf32>
    %cst_153 = arith.constant dense<0.000000e+00> : vector<2x2xf32>
    %624 = tpu.matmul %622, %623, %cst_153 {dimension_numbers = #tpu.dot_dimension_numbers<[1], [0], [0], [1], [0, 0, 1, 1], [], []>} : vector<2x32xf32>, vector<32x2xf32>, vector<2x2xf32> -> vector<2x2xf32>
    %c0_154 = arith.constant 0 : index
    %c0_155 = arith.constant 0 : index
    %625 = vector.load %arg32[%c0_154, %c0_155] : memref<1x2xf32, #tpu.memory_space<vmem>>, vector<1x2xf32>
    %626 = vector.broadcast %625 : vector<1x2xf32> to vector<2x2xf32>
    %627 = arith.addf %624, %626 : vector<2x2xf32>
    %c0_156 = arith.constant 0 : index
    %c0_157 = arith.constant 0 : index
    %628 = vector.load %arg33[%c0_156, %c0_157] : memref<2x2xf32, #tpu.memory_space<vmem>>, vector<2x2xf32>
    tpu.vector_store %arg33[%c0_156, %c0_157], %627 {strides = array<i32>} : memref<2x2xf32, #tpu.memory_space<vmem>>, vector<2x2xf32>,
    return
  }
}

</mosaic_0001>

<bundles_post_ra>
// kernel: tpu_custom_call.1
= control target key start
LH: loop header
LB: loop body
LE: loop exit
PB: predicated region body
PF: predicated region fallthrough
CT: control target
= control target key end

     0   :  { %s4966_s6 = smov 1   ;;  %s4967_s10 = smov 2   ;;  %s5733_s0 = inlined_call_operand.smem [shape: u32[34], index: -1, kind: input, shape index: {}] }
   0x1   :  { %s5035_s5 = sld [smem:[%s5733_s0]]   ;;  %s4968_s14 = smov 3  }
   0x2   :  { %s5040_s9 = sld [smem:[%s5733_s0 + %s4966_s6]]   ;;  %s4969_s18 = smov 4  }
   0x3   :  { %s5045_s13 = sld [smem:[%s5733_s0 + %s4967_s10]]   ;;  %s4970_s22 = smov 5  }
   0x4   :  { %s5050_s17 = sld [smem:[%s5733_s0 + %s4968_s14]]   ;;  %s4971_s26 = smov 6  }
   0x5   :  { %s5055_s21 = sld [smem:[%s5733_s0 + %s4969_s18]]   ;;  %s4972_s30 = smov 7  }
   0x6   :  { %s5060_s25 = sld [smem:[%s5733_s0 + %s4970_s22]]   ;;  %s4973_s4 = smov 8  }
   0x7   :  { %s5065_s29 = sld [smem:[%s5733_s0 + %s4971_s26]]   ;;  %s4974_s10 = smov 9  }
   0x8   :  { %s5070_s3 = sld [smem:[%s5733_s0 + %s4972_s30]]   ;;  %s4975_s15 = smov 10  }
   0x9   :  { %5747 = sst [smem:[#allocation32_spill]] %s5045_s13  ;;  %s4976_s20 = smov 11  }
   0xa   :  { %s5075_s8 = sld [smem:[%s5733_s0 + %s4973_s4]]   ;;  %s4977_s26 = smov 12  }
   0xb   :  { %s5080_s14 = sld [smem:[%s5733_s0 + %s4974_s10]]   ;;  %s4978_s1 = smov 13  }
   0xc   :  { %5748 = sst [smem:[#allocation33_spill]] %s5060_s25  ;;  %s4979_s7 = smov 14  }
   0xd   :  { %s5085_s19 = sld [smem:[%s5733_s0 + %s4975_s15]]   ;;  %s4980_s15 = smov 15  }
   0xe   :  { %s5090_s24 = sld [smem:[%s5733_s0 + %s4976_s20]]   ;;  %s4981_s22 = smov 16  }
   0xf   :  { %s5095_s30 = sld [smem:[%s5733_s0 + %s4977_s26]]   ;;  %s4982_s28 = smov 17  }
  0x10   :  { %s5100_s6 = sld [smem:[%s5733_s0 + %s4978_s1]]  }
  0x11   :  { %5749 = sst [smem:[#allocation34_spill]] %s5080_s14 }
  0x12   :  { %s5105_s12 = sld [smem:[%s5733_s0 + %s4979_s7]]   ;;  %s4983_s7 = smov 18  }
  0x13   :  { %s5110_s20 = sld [smem:[%s5733_s0 + %s4980_s15]]   ;;  %s4984_s15 = smov 19  }
  0x14   :  { %s5115_s27 = sld [smem:[%s5733_s0 + %s4981_s22]]   ;;  %s4985_s22 = smov 20  }
  0x15   :  { %s5120_s4 = sld [smem:[%s5733_s0 + %s4982_s28]]   ;;  %s4986_s28 = smov 21  }
  0x16   :  { %5750 = sst [smem:[#allocation35_spill]] %s5100_s6 }
  0x17   :  { %s5125_s6 = sld [smem:[%s5733_s0 + %s4983_s7]]   ;;  %s4987_s7 = smov 22  }
  0x18   :  { %5751 = sst [smem:[#allocation36_spill]] %s5105_s12 }
  0x19   :  { %5752 = sst [smem:[#allocation37_spill]] %s5110_s20 }
  0x1a   :  { %s5130_s20 = sld [smem:[%s5733_s0 + %s4984_s15]]   ;;  %s4988_s15 = smov 23  }
  0x1b   :  { %5753 = sst [smem:[#allocation38_spill]] %s5120_s4 }
  0x1c   :  { %s5135_s12 = sld [smem:[%s5733_s0 + %s4985_s22]]   ;;  %s4989_s22 = smov 24  }
  0x1d   :  { %5754 = sst [smem:[#allocation39_spill]] %s5125_s6 }
  0x1e   :  { %s5140_s4 = sld [smem:[%s5733_s0 + %s4986_s28]]   ;;  %s4990_s28 = smov 25  }
  0x1f   :  { %s5145_s6 = sld [smem:[%s5733_s0 + %s4987_s7]]   ;;  %s4991_s7 = smov 26  }
  0x20   :  { %s5150_s14 = sld [smem:[%s5733_s0 + %s4988_s15]]   ;;  %s4992_s15 = smov 27  }
  0x21   :  { %s5155_s25 = sld [smem:[%s5733_s0 + %s4989_s22]]   ;;  %s4993_s22 = smov 28  }
  0x22   :  { %s5165_s13 = sld [smem:[%s5733_s0 + %s4991_s7]]   ;;  %s4995_s7 = smov 30  }
  0x24   :  { %5755 = sst [smem:[#allocation40_spill]] %s5140_s4 }
  0x25   :  { %s5160_s4 = sld [smem:[%s5733_s0 + %s4990_s28]]   ;;  %s4994_s28 = smov 29  }
  0x26   :  { %5756 = sst [smem:[#allocation41_spill]] %s5150_s14 }
  0x27   :  { %5757 = sst [smem:[#allocation42_spill]] %s5155_s25 }
  0x28   :  { %5759 = sst [smem:[#allocation44_spill]] %s5165_s13 }
  0x29   :  { %s5170_s14 = sld [smem:[%s5733_s0 + %s4992_s15]]   ;;  %s4996_s15 = smov 31  }
  0x2a   :  { %s5175_s25 = sld [smem:[%s5733_s0 + %s4993_s22]]   ;;  %s4997_s22 = smov 32  }
  0x2b   :  { %5758 = sst [smem:[#allocation43_spill]] %s5160_s4 }
  0x2c   :  { %s5180_s4 = sld [smem:[%s5733_s0 + %s4994_s28]]   ;;  %s4998_s28 = smov 33  }
  0x2d   :  { %s5185_s13 = sld [smem:[%s5733_s0 + %s4995_s7]]  }
  0x2f   :  { %5760 = sst [smem:[#allocation45_spill]] %s5170_s14 }
  0x30   :  { %5761 = sst [smem:[#allocation46_spill]] %s5175_s25 }
  0x31   :  { %s5190_s14 = sld [smem:[%s5733_s0 + %s4996_s15]]  }
  0x32   :  { %5762 = sst [smem:[#allocation47_spill]] %s5180_s4 }
  0x33   :  { %s5195_s25 = sld [smem:[%s5733_s0 + %s4997_s22]]  }
  0x34   :  { %s5200_s4 = sld [smem:[%s5733_s0 + %s4998_s28]]  }
  0x35   :  { %72 = vsyncpa [#allocation3], 0 }
  0x36   :  { %73 = vsyncpa [#allocation6], 0 }
  0x37   :  { %74 = vsyncpa [#allocation9], 0 }
  0x38   :  { %75 = vsyncpa [#allocation12], 0 }
  0x39   :  { %76 = vsyncpa [#allocation15], 0 }
  0x3a   :  { %77 = vsyncpa [#allocation18], 0 }
  0x3b   :  { %78 = vsyncpa [#allocation21], 0 }
  0x3c   :  { %79 = vsyncpa [#allocation4], 0  ;;  %s4999_s7 = smov [#allocation5]   ;;  %s5000_s11 = smov [#allocation8]  }
  0x3d   :  { %s97_s10 = sshll.u32 %s4999_s7, 4  ;;  %s126_s15 = sshll.u32 %s5000_s11, 4  ;;  %s98_s10 = int_to_ptr.vmem [resolvable:$true] %s97_s10  ;;  %s5202_s15 = int_to_ptr.vmem [resolvable:$true] %s126_s15 }
  0x3e   :  { %s4642_s0 = scalar_lea.hbm %s5040_s9, 256 }
  0x3f   :  { %p4643_p0 = scmp.ne.s32.totalorder %s5040_s9, %s4642_s0  ;;  %p4646_p1 = scmp.lt.u32.totalorder %s4642_s0, %s5040_s9 }
  0x41   :  { %p4648_p2 = pnand %p4646_p1, %p4643_p0 }
  0x43   :  { %4651 = shalt.err (!%p4648_p2)
}
  0x44   :  { %s4652_s16 = scalar_lea.vmem %s98_s10, 256  ;;  %p4657_p4 = scmp.lt.s32.totalorder %s98_s10, %s98_s10 }
  0x45   :  { %p4653_p3 = scmp.ne.s32.totalorder %s98_s10, %s4652_s16  ;;  %p4658_p5 = scmp.lt.s32.totalorder %s4652_s16, %s4652_s16 }
  0x47   :  { %p4659_p6 = por %p4658_p5, %p4657_p4 }
  0x49   :  { %p4660_p7 = pnand %p4659_p6, %p4653_p3 }
  0x4b   :  { %4663 = shalt.err (!%p4660_p7)
}
  0x4c   :  { %s5001_s18 = smov 128   ;;  %s5002_s22 = smov 8  }
  0x4d   :  { %103 = dma.hbm_to_vmem [thread:$0]  %s5040_s9, 256, %s98_s10, [#allocation6], %s5001_s18, %s5001_s18, %s5002_s22  }
  0x4e   :  { %s4664_s23 = scalar_lea.hbm %s5065_s29, 16 }
  0x4f   :  { %p4665_p8 = scmp.ne.s32.totalorder %s5065_s29, %s4664_s23  ;;  %p4668_p9 = scmp.lt.u32.totalorder %s4664_s23, %s5065_s29 }
  0x51   :  { %p4670_p10 = pnand %p4668_p9, %p4665_p8 }
  0x53   :  { %4673 = shalt.err (!%p4670_p10)
}
  0x54   :  { %s4674_s26 = scalar_lea.vmem %s5202_s15, 16  ;;  %s4678_s28 = scalar_lea.vmem %s5202_s15, 32 }
  0x55   :  { %p4675_p11 = scmp.ne.s32.totalorder %s5202_s15, %s4674_s26  ;;  %p4679_p12 = scmp.lt.s32.totalorder %s5202_s15, %s5202_s15 }
  0x56   :  { %p4680_p13 = scmp.lt.s32.totalorder %s4678_s28, %s4674_s26 }
  0x58   :  { %p4681_p0 = por %p4680_p13, %p4679_p12 }
  0x5a   :  { %p4682_p1 = pnand %p4681_p0, %p4675_p11 }
  0x5c   :  { %4685 = shalt.err (!%p4682_p1)
}
  0x5d   :  { %129 = dma.hbm_to_vmem [thread:$0]  %s5065_s29, 16, %s5202_s15, [#allocation9]  }
  0x5e   :  { %s5003_s9 = smov [#allocation11]   ;;  %s5004_s2 = smov [#allocation14]  }
  0x5f   :  { %s148_s1 = sshll.u32 %s5003_s9, 4  ;;  %s170_s7 = sshll.u32 %s5004_s2, 4  ;;  %s149_s1 = int_to_ptr.vmem [resolvable:$true] %s148_s1  ;;  %s171_s7 = int_to_ptr.vmem [resolvable:$true] %s170_s7 }
  0x60   :  { %s4686_s10 = scalar_lea.hbm %s5075_s8, 16 }
  0x61   :  { %p4687_p2 = scmp.ne.s32.totalorder %s5075_s8, %s4686_s10  ;;  %p4690_p3 = scmp.lt.u32.totalorder %s4686_s10, %s5075_s8 }
  0x63   :  { %p4692_p4 = pnand %p4690_p3, %p4687_p2 }
  0x65   :  { %4695 = shalt.err (!%p4692_p4)
}
  0x66   :  { %s4696_s11 = scalar_lea.vmem %s149_s1, 16  ;;  %s4700_s0 = scalar_lea.vmem %s149_s1, 32 }
  0x67   :  { %p4697_p5 = scmp.ne.s32.totalorder %s149_s1, %s4696_s11  ;;  %p4701_p6 = scmp.lt.s32.totalorder %s149_s1, %s149_s1 }
  0x68   :  { %p4702_p7 = scmp.lt.s32.totalorder %s4700_s0, %s4696_s11 }
  0x6a   :  { %p4703_p8 = por %p4702_p7, %p4701_p6 }
  0x6c   :  { %p4704_p9 = pnand %p4703_p8, %p4697_p5 }
  0x6e   :  { %4707 = shalt.err (!%p4704_p9)
}
  0x6f   :  { %151 = dma.hbm_to_vmem [thread:$0]  %s5075_s8, 16, %s149_s1, [#allocation12]  }
  0x70   :  { %s4708_s29 = scalar_lea.hbm %s5090_s24, 128 }
  0x71   :  { %p4709_p10 = scmp.ne.s32.totalorder %s5090_s24, %s4708_s29  ;;  %p4712_p11 = scmp.lt.u32.totalorder %s4708_s29, %s5090_s24 }
  0x73   :  { %p4714_p12 = pnand %p4712_p11, %p4709_p10 }
  0x75   :  { %4717 = shalt.err (!%p4714_p12)
}
  0x76   :  { %s4718_s15 = scalar_lea.vmem %s171_s7, 128  ;;  %p4723_p0 = scmp.lt.s32.totalorder %s171_s7, %s171_s7 }
  0x77   :  { %p4719_p13 = scmp.ne.s32.totalorder %s171_s7, %s4718_s15  ;;  %p4724_p1 = scmp.lt.s32.totalorder %s4718_s15, %s4718_s15 }
  0x79   :  { %p4725_p2 = por %p4724_p1, %p4723_p0 }
  0x7b   :  { %p4726_p3 = pnand %p4725_p2, %p4719_p13 }
  0x7d   :  { %4729 = shalt.err (!%p4726_p3)
}
  0x7e   :  { %173 = dma.hbm_to_vmem [thread:$0]  %s5090_s24, 128, %s171_s7, [#allocation15]  }
  0x7f   :  { %s5005_s16 = smov [#allocation17]   ;;  %s5006_s8 = smov [#allocation20]  }
  0x80   :  { %s196_s23 = sshll.u32 %s5005_s16, 4  ;;  %s220_s26 = sshll.u32 %s5006_s8, 4  ;;  %s197_s23 = int_to_ptr.vmem [resolvable:$true] %s196_s23  ;;  %s221_s26 = int_to_ptr.vmem [resolvable:$true] %s220_s26 }
  0x81   :  { %s4730_s28 = scalar_lea.hbm %s5115_s27, 16 }
  0x82   :  { %p4731_p4 = scmp.ne.s32.totalorder %s5115_s27, %s4730_s28  ;;  %p4734_p5 = scmp.lt.u32.totalorder %s4730_s28, %s5115_s27 }
  0x84   :  { %p4736_p6 = pnand %p4734_p5, %p4731_p4 }
  0x86   :  { %4739 = shalt.err (!%p4736_p6)
}
  0x87   :  { %s4740_s9 = scalar_lea.vmem %s197_s23, 16  ;;  %s4744_s1 = scalar_lea.vmem %s197_s23, 32 }
  0x88   :  { %p4741_p7 = scmp.ne.s32.totalorder %s197_s23, %s4740_s9  ;;  %p4745_p8 = scmp.lt.s32.totalorder %s197_s23, %s197_s23 }
  0x89   :  { %p4746_p9 = scmp.lt.s32.totalorder %s4744_s1, %s4740_s9 }
  0x8b   :  { %p4747_p10 = por %p4746_p9, %p4745_p8 }
  0x8d   :  { %p4748_p11 = pnand %p4747_p10, %p4741_p7 }
  0x8f   :  { %4751 = shalt.err (!%p4748_p11)
}
  0x90   :  { %199 = dma.hbm_to_vmem [thread:$0]  %s5115_s27, 16, %s197_s23, [#allocation18]  }
  0x91   :  { %s4752_s24 = scalar_lea.hbm %s5135_s12, 16 }
  0x92   :  { %p4753_p12 = scmp.ne.s32.totalorder %s5135_s12, %s4752_s24  ;;  %p4756_p13 = scmp.lt.u32.totalorder %s4752_s24, %s5135_s12 }
  0x94   :  { %p4758_p0 = pnand %p4756_p13, %p4753_p12 }
  0x96   :  { %4761 = shalt.err (!%p4758_p0)
}
  0x97   :  { %s4762_s2 = scalar_lea.vmem %s221_s26, 16  ;;  %s4766_s7 = scalar_lea.vmem %s221_s26, 32 }
  0x98   :  { %p4763_p1 = scmp.ne.s32.totalorder %s221_s26, %s4762_s2  ;;  %p4767_p2 = scmp.lt.s32.totalorder %s221_s26, %s221_s26 }
  0x99   :  { %p4768_p3 = scmp.lt.s32.totalorder %s4766_s7, %s4762_s2 }
  0x9b   :  { %p4769_p4 = por %p4768_p3, %p4767_p2 }
  0x9d   :  { %p4770_p5 = pnand %p4769_p4, %p4763_p1 }
  0x9f   :  { %4773 = shalt.err (!%p4770_p5)
}
  0xa0   :  { %223 = dma.hbm_to_vmem [thread:$0]  %s5135_s12, 16, %s221_s26, [#allocation21]  }
  0xa1   :  { %s5007_s10 = smov [#allocation2]   ;;  %s5008_s11 = smov [#allocation7]  }
  0xa2   :  { %s85_s27 = sshll.u32 %s5007_s10, 4  ;;  %s114_s0 = sshll.u32 %s5008_s11, 4  ;;  %s86_s27 = int_to_ptr.vmem [resolvable:$true] %s85_s27  ;;  %s115_s0 = int_to_ptr.vmem [resolvable:$true] %s114_s0 }
  0xa3   :  { %s4774_s29 = scalar_lea.hbm %s5035_s5, 256 }
  0xa4   :  { %p4775_p6 = scmp.ne.s32.totalorder %s5035_s5, %s4774_s29  ;;  %p4778_p7 = scmp.lt.u32.totalorder %s4774_s29, %s5035_s5 }
  0xa6   :  { %p4780_p8 = pnand %p4778_p7, %p4775_p6 }
  0xa8   :  { %4783 = shalt.err (!%p4780_p8)
}
  0xa9   :  { %s4784_s15 = scalar_lea.vmem %s86_s27, 256  ;;  %p4789_p10 = scmp.lt.s32.totalorder %s86_s27, %s86_s27 }
  0xaa   :  { %p4785_p9 = scmp.ne.s32.totalorder %s86_s27, %s4784_s15  ;;  %p4790_p11 = scmp.lt.s32.totalorder %s4784_s15, %s4784_s15 }
  0xac   :  { %p4791_p12 = por %p4790_p11, %p4789_p10 }
  0xae   :  { %p4792_p13 = pnand %p4791_p12, %p4785_p9 }
  0xb0   :  { %4795 = shalt.err (!%p4792_p13)
}
  0xb1   :  { %91 = dma.hbm_to_vmem [thread:$0]  %s5035_s5, 256, %s86_s27, [#allocation3], %s5001_s18, %s5001_s18, %s5002_s22  }
  0xb2   :  { %s4796_s12 = scalar_lea.hbm %s5055_s21, 16 }
  0xb3   :  { %p4797_p0 = scmp.ne.s32.totalorder %s5055_s21, %s4796_s12  ;;  %p4800_p1 = scmp.lt.u32.totalorder %s4796_s12, %s5055_s21 }
  0xb5   :  { %p4802_p2 = pnand %p4800_p1, %p4797_p0 }
  0xb7   :  { %4805 = shalt.err (!%p4802_p2)
}
  0xb8   :  { %s4806_s16 = scalar_lea.vmem %s115_s0, 16  ;;  %s4810_s23 = scalar_lea.vmem %s115_s0, 32 }
  0xb9   :  { %p4807_p3 = scmp.ne.s32.totalorder %s115_s0, %s4806_s16  ;;  %p4811_p4 = scmp.lt.s32.totalorder %s115_s0, %s115_s0 }
  0xba   :  { %p4812_p5 = scmp.lt.s32.totalorder %s4810_s23, %s4806_s16 }
  0xbc   :  { %p4813_p6 = por %p4812_p5, %p4811_p4 }
  0xbe   :  { %p4814_p7 = pnand %p4813_p6, %p4807_p3 }
  0xc0   :  { %4817 = shalt.err (!%p4814_p7)
}
  0xc1   :  { %117 = dma.hbm_to_vmem [thread:$0]  %s5055_s21, 16, %s115_s0, [#allocation6]  }
  0xc2   :  { %s5009_s8 = smov [#allocation10]   ;;  %s5010_s26 = smov [#allocation13]  }
  0xc3   :  { %s135_s5 = sshll.u32 %s5009_s8, 4  ;;  %s160_s28 = sshll.u32 %s5010_s26, 4  ;;  %s136_s5 = int_to_ptr.vmem [resolvable:$true] %s135_s5  ;;  %s161_s28 = int_to_ptr.vmem [resolvable:$true] %s160_s28 }
  0xc4   :  { %s4818_s9 = scalar_lea.hbm %s5070_s3, 256 }
  0xc5   :  { %p4819_p8 = scmp.ne.s32.totalorder %s5070_s3, %s4818_s9  ;;  %p4822_p9 = scmp.lt.u32.totalorder %s4818_s9, %s5070_s3 }
  0xc7   :  { %p4824_p10 = pnand %p4822_p9, %p4819_p8 }
  0xc9   :  { %4827 = shalt.err (!%p4824_p10)
}
  0xca   :  { %s4828_s1 = scalar_lea.vmem %s136_s5, 256  ;;  %p4833_p12 = scmp.lt.s32.totalorder %s136_s5, %s136_s5 }
  0xcb   :  { %p4829_p11 = scmp.ne.s32.totalorder %s136_s5, %s4828_s1  ;;  %p4834_p13 = scmp.lt.s32.totalorder %s4828_s1, %s4828_s1 }
  0xcd   :  { %p4835_p0 = por %p4834_p13, %p4833_p12 }
  0xcf   :  { %p4836_p1 = pnand %p4835_p0, %p4829_p11 }
  0xd1   :  { %4839 = shalt.err (!%p4836_p1)
}
  0xd2   :  { %141 = dma.hbm_to_vmem [thread:$0]  %s5070_s3, 256, %s136_s5, [#allocation9], %s5001_s18, %s5001_s18, %s5002_s22  }
  0xd3   :  { %s4840_s21 = scalar_lea.hbm %s5085_s19, 16 }
  0xd4   :  { %p4841_p2 = scmp.ne.s32.totalorder %s5085_s19, %s4840_s21  ;;  %p4844_p3 = scmp.lt.u32.totalorder %s4840_s21, %s5085_s19 }
  0xd6   :  { %p4846_p4 = pnand %p4844_p3, %p4841_p2 }
  0xd8   :  { %4849 = shalt.err (!%p4846_p4)
}
  0xd9   :  { %s4850_s24 = scalar_lea.vmem %s161_s28, 16  ;;  %s4854_s2 = scalar_lea.vmem %s161_s28, 32 }
  0xda   :  { %p4851_p5 = scmp.ne.s32.totalorder %s161_s28, %s4850_s24  ;;  %p4855_p6 = scmp.lt.s32.totalorder %s161_s28, %s161_s28 }
  0xdb   :  { %p4856_p7 = scmp.lt.s32.totalorder %s4854_s2, %s4850_s24 }
  0xdd   :  { %p4857_p8 = por %p4856_p7, %p4855_p6 }
  0xdf   :  { %p4858_p9 = pnand %p4857_p8, %p4851_p5 }
  0xe1   :  { %4861 = shalt.err (!%p4858_p9)
}
  0xe2   :  { %163 = dma.hbm_to_vmem [thread:$0]  %s5085_s19, 16, %s161_s28, [#allocation12]  }
  0xe3   :  { %s5011_s7 = smov [#allocation16]   ;;  %s5012_s18 = smov [#allocation19]  }
  0xe4   :  { %s180_s3 = sshll.u32 %s5011_s7, 4  ;;  %s210_s22 = sshll.u32 %s5012_s18, 4  ;;  %s181_s3 = int_to_ptr.vmem [resolvable:$true] %s180_s3  ;;  %s211_s22 = int_to_ptr.vmem [resolvable:$true] %s210_s22 }
  0xe5   :  { %s4862_s10 = scalar_lea.hbm %s5095_s30, 16 }
  0xe6   :  { %p4863_p10 = scmp.ne.s32.totalorder %s5095_s30, %s4862_s10  ;;  %p4866_p11 = scmp.lt.u32.totalorder %s4862_s10, %s5095_s30 }
  0xe8   :  { %p4868_p12 = pnand %p4866_p11, %p4863_p10 }
  0xea   :  { %4871 = shalt.err (!%p4868_p12)
}
  0xeb   :  { %s4872_s27 = scalar_lea.vmem %s181_s3, 16  ;;  %s4876_s11 = scalar_lea.vmem %s181_s3, 32 }
  0xec   :  { %p4873_p13 = scmp.ne.s32.totalorder %s181_s3, %s4872_s27  ;;  %p4877_p0 = scmp.lt.s32.totalorder %s181_s3, %s181_s3 }
  0xed   :  { %p4878_p1 = scmp.lt.s32.totalorder %s4876_s11, %s4872_s27 }
  0xef   :  { %p4879_p2 = por %p4878_p1, %p4877_p0 }
  0xf1   :  { %p4880_p3 = pnand %p4879_p2, %p4873_p13 }
  0xf3   :  { %4883 = shalt.err (!%p4880_p3)
}
  0xf4   :  { %183 = dma.hbm_to_vmem [thread:$0]  %s5095_s30, 16, %s181_s3, [#allocation15]  }
  0xf5   :  { %s4884_s19 = scalar_lea.hbm %s5130_s20, 16 }
  0xf6   :  { %p4885_p4 = scmp.ne.s32.totalorder %s5130_s20, %s4884_s19  ;;  %p4888_p5 = scmp.lt.u32.totalorder %s4884_s19, %s5130_s20 }
  0xf8   :  { %p4890_p6 = pnand %p4888_p5, %p4885_p4 }
  0xfa   :  { %4893 = shalt.err (!%p4890_p6)
}
  0xfb   :  { %s4894_s0 = scalar_lea.vmem %s211_s22, 16  ;;  %s4898_s29 = scalar_lea.vmem %s211_s22, 32 }
  0xfc   :  { %p4895_p7 = scmp.ne.s32.totalorder %s211_s22, %s4894_s0  ;;  %p4899_p8 = scmp.lt.s32.totalorder %s211_s22, %s211_s22 }
  0xfd   :  { %p4900_p9 = scmp.lt.s32.totalorder %s4898_s29, %s4894_s0 }
  0xff   :  { %p4901_p10 = por %p4900_p9, %p4899_p8 }
 0x101   :  { %p4902_p11 = pnand %p4901_p10, %p4895_p7 }
 0x103   :  { %4905 = shalt.err (!%p4902_p11)
}
 0x104   :  { %213 = dma.hbm_to_vmem [thread:$0]  %s5130_s20, 16, %s211_s22, [#allocation18]  }
 0x105   :  { %s5013_s15 = smov [#allocation22]   ;;  %s4906_s12 = scalar_lea.hbm %s5145_s6, 16 }
 0x106   :  { %s232_s30 = sshll.u32 %s5013_s15, 4  ;;  %p4907_p12 = scmp.ne.s32.totalorder %s5145_s6, %s4906_s12  ;;  %s233_s30 = int_to_ptr.vmem [resolvable:$true] %s232_s30 }
 0x107   :  { %p4910_p13 = scmp.lt.u32.totalorder %s4906_s12, %s5145_s6 }
 0x109   :  { %p4912_p0 = pnand %p4910_p13, %p4907_p12 }
 0x10b   :  { %4915 = shalt.err (!%p4912_p0)
}
 0x10c   :  { %s4916_s16 = scalar_lea.vmem %s233_s30, 16  ;;  %s4920_s23 = scalar_lea.vmem %s233_s30, 32 }
 0x10d   :  { %p4917_p1 = scmp.ne.s32.totalorder %s233_s30, %s4916_s16  ;;  %p4921_p2 = scmp.lt.s32.totalorder %s233_s30, %s233_s30 }
 0x10e   :  { %p4922_p3 = scmp.lt.s32.totalorder %s4920_s23, %s4916_s16 }
 0x110   :  { %p4923_p4 = por %p4922_p3, %p4921_p2 }
 0x112   :  { %p4924_p5 = pnand %p4923_p4, %p4917_p1 }
 0x114   :  { %4927 = shalt.err (!%p4924_p5)
}
 0x115   :  { %235 = dma.hbm_to_vmem [thread:$0]  %s5145_s6, 16, %s233_s30, [#allocation21]  }
 0x116   :  { %4950 = dma.done.wait [#allocation3], 256  }
 0x117   :  { %4951 = vsyncadd [#allocation3], 4294967040 }
 0x118   :  { %4952 = dma.done.wait [#allocation6], 272  }
 0x119   :  { %4953 = vsyncadd [#allocation6], 4294967024 }
 0x11a   :  { %4954 = dma.done.wait [#allocation9], 272  }
 0x11b   :  { %4955 = vsyncadd [#allocation9], 4294967024 }
 0x11c   :  { %4956 = dma.done.wait [#allocation12], 32  }
 0x11d   :  { %4957 = vsyncadd [#allocation12], 4294967264 }
 0x11e   :  { %4958 = dma.done.wait [#allocation15], 144  }
 0x11f   :  { %4959 = vsyncadd [#allocation15], 4294967152 }
 0x120   :  { %4960 = dma.done.wait [#allocation18], 32  }
 0x121   :  { %4961 = vsyncadd [#allocation18], 4294967264 }
 0x122   :  { %4962 = dma.done.wait [#allocation21], 32  }
 0x123   :  { %4963 = vsyncadd [#allocation21], 4294967264  ;;  %vm305_vm0 = vcmask 261120   ;;  %s5763_s6 = sld [smem:[#allocation32_spill]]  ;;  %v301_v0 = vld [vmem:[%s5050_s17] sm:$0xff]  ;;  %v302_v1 = vld [vmem:[%s5050_s17 + $0x8] sm:$0xff] }
 0x124   :  { %v303_v2 = vld [vmem:[%s5050_s17 + $0x10] sm:$0xff]  ;;  %v4219_v3 = vpack.c.bf16 %v302_v1, %v301_v0  ;;  %v304_v4 = vld [vmem:[%s5050_s17 + $0x18] sm:$0xff]  ;;  %v5275_v5 = vld [vmem:[#allocation2] sm:$0xff]  ;;  %s5764_s17 = sld [smem:[#allocation33_spill]]  ;;  %vm396_vm1 = vcmask 1045504   ;;  %vm389_vm2 = vcmask 1041408  }
 0x125   :  { %v4223_v6 = vpack.c.bf16 %v304_v4, %v303_v2  ;;  %3884 = vmatprep.mubr.msk.f32.mxu0 %vm305_vm0, %v5275_v5  ;;  %3895 = vmatprep.mubr.msk.f32.mxu1 %vm305_vm0, %v5275_v5  ;;  %v5281_v7 = vld [vmem:[#allocation2 + $0x8] sm:$0xff]  ;;  %s5014_s20 = smov 112   ;;  %s5015_s8 = smov 96   ;;  %v5017_v37 = vmov 0.0   ;;  %vm425_vm3 = vcmask 130048   ;;  %vm529_vm4 = vcmask 392192  }
 0x126   :  { %4220 = vmatprep.subr.bf16.mxu0 %v4219_v3  ;;  %s5016_s5 = smov 16   ;;  %s5018_s26 = smov 32   ;;  %v3630_v45 = vld [vmem:[#allocation7] ss:$0 sm:$0xff]  ;;  %v613_v55 = vld [vmem:[#allocation10] sm:$0xff]  ;;  %vm629_vm5 = vcmask 1043456  }
 0x127   :  { %4222 = vmatpush3.bf16.msra.mxu0 %v4219_v3  ;;  %s5765_s28 = sld [smem:[#allocation34_spill]]  ;;  %v614_v56 = vld [vmem:[#allocation10 + $0x8] sm:$0xf]  ;;  %vm5019_vm6 = vmmov 1   ;;  %v3631_v61 = vld [vmem:[#allocation8] ss:$0 sm:$0xff] }
 0x128   :  { %4224 = vmatprep.subr.bf16.mxu0 %v4223_v6  ;;  %v4247_v57 = vpack.c.bf16 %v614_v56, %v613_v55  ;;  %vm4248_vm7 = vmpackc.low %vm629_vm5, %vm5019_vm6  ;;  %vm622_vm8 = vcmask 97280   ;;  %s5766_s9 = sld [smem:[#allocation36_spill]]  ;;  %s5767_s1 = sld [smem:[#allocation35_spill]]  ;;  %vm816_vm9 = vcmask 64512   ;;  %vm5021_vm10 = vmmov 0  }
 0x129   :  { %v297_v8 = vld [vmem:[%s5763_s6] sm:$0xff]  ;;  %v298_v9 = vld [vmem:[%s5763_s6 + $0x8] sm:$0xff]  ;;  %v299_v10 = vld [vmem:[%s5763_s6 + $0x10] sm:$0xff]  ;;  %s5022_s21 = smov 48   ;;  %s5023_s24 = smov 64   ;;  %vm941_vm11 = vcmask 654336  }
 0x12a   :  { %v4227_v11 = vpack.c.bf16 %v298_v9, %v297_v8  ;;  %v300_v12 = vld [vmem:[%s5763_s6 + $0x18] sm:$0xff]  ;;  %v516_v22 = vld [vmem:[%s5764_s17] sm:$0xff]  ;;  %v517_v23 = vld [vmem:[%s5764_s17 + $0x8] sm:$0xff]  ;;  %s5768_s2 = sld [smem:[#allocation37_spill]]  ;;  %s5769_s7 = sld [smem:[#allocation38_spill]]  ;;  %vm3570_vm12 = vcmask 9216  }
 0x12b   :  { %4226 = vmatpush3.bf16.msra.mxu0 %v4223_v6  ;;  %v4231_v13 = vpack.c.bf16 %v300_v12, %v299_v10  ;;  %v4235_v24 = vpack.c.bf16 %v517_v23, %v516_v22  ;;  %v518_v26 = vld [vmem:[%s5764_s17 + $0x10] sm:$0xff]  ;;  %v519_v27 = vld [vmem:[%s5764_s17 + $0x18] sm:$0xff]  ;;  %v520_v30 = vld [vmem:[%s5764_s17 + $0x20] sm:$0xff]  ;;  %v5020_v22 = vmov 0.0|0.0   ;;  %s5770_s3 = sld [smem:[#allocation39_spill]]  ;;  %s5771_s18 = sld [smem:[#allocation40_spill]] }
 0x12c   :  { %4228 = vmatprep.subr.bf16.mxu1 %v4227_v11  ;;  %v4239_v29 = vpack.c.bf16 %v519_v27, %v518_v26  ;;  %v521_v31 = vld [vmem:[%s5764_s17 + $0x28] sm:$0xff]  ;;  %v808_v9 = vld [vmem:[#allocation14] sm:$0xff]  ;;  %v3640_v12 = vld [vmem:[#allocation13] ss:$0 sm:$0xff]  ;;  %s5772_s22 = sld [smem:[#allocation42_spill]]  ;;  %s5773_s10 = sld [smem:[#allocation41_spill]] }
 0x12d   :  { %4230 = vmatpush3.bf16.msra.mxu1 %v4227_v11  ;;  %4236 = vmatprep.subr.bf16.mxu0 %v4235_v24  ;;  %v4243_v32 = vpack.c.bf16 %v521_v31, %v520_v30  ;;  %v720_v58 = vld [vmem:[%s5765_s28] sm:$0xff]  ;;  %v721_v59 = vld [vmem:[%s5765_s28 + $0x8] sm:$0xff]  ;;  %v722_v2 = vld [vmem:[%s5765_s28 + $0x10] sm:$0xff]  ;;  %s5774_s27 = sld [smem:[#allocation44_spill]]  ;;  %s5775_s11 = sld [smem:[#allocation43_spill]] }
 0x12e   :  { %3885 = vmatmul.mubr.msk.f32.vlgmr.msra.gmra.mrb[0].mxu0 %vm305_vm0, %v5281_v7  ;;  %4232 = vmatprep.subr.bf16.mxu1 %v4231_v13  ;;  %v4253_v60 = vpack.c.bf16 %v721_v59, %v720_v58  ;;  %v723_v3 = vld [vmem:[%s5765_s28 + $0x18] sm:$0xff]  ;;  %v925_v26 = vld [vmem:[%s5767_s1 + $0x8] sm:$0xff]  ;;  %s5776_s19 = sld [smem:[#allocation45_spill]]  ;;  %s5024_s0 = smov 127  }
 0x12f   :  { %4238 = vmatpush3.bf16.msra.mxu0 %v4235_v24  ;;  %v4257_v8 = vpack.c.bf16 %v723_v3, %v722_v2  ;;  %v1026_v24 = vld [vmem:[%s5766_s9 + $0x18] sm:$0xff]  ;;  %v5372_v2 = vld [vmem:[#allocation17] ss:$0 sm:$0xff]  ;;  %s5777_s29 = sld [smem:[#allocation47_spill]]  ;;  %s5778_s15 = sld [smem:[#allocation46_spill]] }
 0x130   :  { %4240 = vmatprep.subr.bf16.mxu0 %v4239_v29 }
 0x131   :  { %4234 = vmatpush3.bf16.msra.mxu1 %v4231_v13 }
 0x132   :  { %4249 = vmatprep.subr.msk.bf16.mxu1 %vm4248_vm7, %v4247_v57 }
 0x133   :  { %4242 = vmatpush3.bf16.msra.mxu0 %v4239_v29  ;;  %v927_v29 = vld [vmem:[%s5767_s1 + $0x18] sm:$0xff] }
 0x134   :  { %3896 = vmatmul.mubr.msk.f32.vlgmr.msra.gmra.mrb[0].mxu1 %vm305_vm0, %v5281_v7  ;;  %4244 = vmatprep.subr.bf16.mxu0 %v4243_v32 }
 0x135   :  { %4252 = vmatpush3.bf16.msk.msra.mxu1 %vm4248_vm7, %v4247_v57 }
 0x136   :  { %4254 = vmatprep.subr.bf16.mxu1 %v4253_v60 }
 0x137   :  { %4246 = vmatpush3.bf16.msra.mxu0 %v4243_v32  ;;  %v928_v32 = vld [vmem:[%s5767_s1 + $0x20] sm:$0xff] }
 0x138   :  { %3931 = vmatprep.subr.mxu0 %v808_v9 }
 0x201   :  { %v3886_v14 = vpop.f32.mrb[0].mxu0 }
 0x202   :  { %v391_v15 = vrot.slane %v3886_v14, 6  ;;  %v398_v16 = vrot.slane %v3886_v14, 2  ;;  %v378_v17 = vpop.f32.mrb[1].mxu0 }
 0x203   :  { %v390_v18 = vrot.slane %v378_v17, 6  ;;  %v397_v19 = vrot.slane %v378_v17, 2 }
 0x205   :  { %400 = vrot.lane.b32.xlu0 %v397_v19, %s5014_s20  ;;  %406 = vrot.lane.b32.xlu1 %v390_v18, %s5015_s8  ;;  %v399_v20 = vsel %vm396_vm1, %v397_v19, %v398_v16  ;;  %v392_v21 = vsel %vm389_vm2, %v390_v18, %v391_v15  ;;  %v395_v40 = vsel %vm389_vm2, 0.0, %v390_v18  ;;  %v1023_v19 = vld [vmem:[%s5766_s9] sm:$0xff] }
 0x207   :  { %v3897_v25 = vpop.f32.mrb[0].mxu1 }
 0x208   :  { %v496_v28 = vpop.f32.mrb[1].mxu1 }
 0x209   :  { %402 = vrot.lane.b32.xlu0 %v399_v20, %s5014_s20  ;;  %v1024_v20 = vld [vmem:[%s5766_s9 + $0x8] sm:$0xff] }
 0x20a   :  { %v5339_v23 = vpack.c.bf16 %v1024_v20, %v1023_v19 }
 0x277   :  { %v401_v33 = vpop.permute.xlu0 %400  ;;  %v407_v36 = vpop.permute.xlu1 %406 }
 0x278   :  { %v405_v34 = vsel %vm396_vm1, 0.0, %v401_v33  ;;  %v409_v38 = vsel %vm389_vm2, 0.0, %v407_v36  ;;  %v929_v33 = vld [vmem:[%s5767_s1 + $0x28] sm:$0xff]  ;;  %v931_v36 = vld [vmem:[%s5767_s1 + $0x38] sm:$0xff] }
 0x279   :  { %411 = vrot.lane.b32.xlu1 %v405_v34, %s5016_s5  ;;  %v4269_v34 = vpack.c.bf16 %v929_v33, %v928_v32 }
 0x27b   :  { %v403_v35 = vpop.permute.xlu0 %402 }
 0x27c   :  { %413 = vrot.lane.b32.xlu0 %v403_v35, %s5016_s5  ;;  %v930_v35 = vld [vmem:[%s5767_s1 + $0x30] sm:$0xff] }
 0x27d   :  { %419 = vrot.lane.b32.xlu1 %v5017_v37, %s5018_s26 }
 0x280   :  { %421 = vrot.lane.b32.xlu0 %v409_v38, %s5018_s26  ;;  %v4273_v38 = vpack.c.bf16 %v931_v36, %v930_v35 }
 0x2eb   :  { %v412_v39 = vpop.permute.xlu1 %411 }
 0x2ec   :  { %v426_v42 = vsel %vm425_vm3, %v395_v40, %v412_v39  ;;  %v932_v39 = vld [vmem:[%s5767_s1 + $0x40] sm:$0xff]  ;;  %v933_v40 = vld [vmem:[%s5767_s1 + $0x48] sm:$0xff] }
 0x2ee   :  { %v414_v41 = vpop.permute.xlu0 %413 }
 0x2ef   :  { %v420_v43 = vpop.permute.xlu1 %419  ;;  %v427_v47 = vsel %vm425_vm3, %v392_v21, %v414_v41  ;;  %v1025_v21 = vld [vmem:[%s5766_s9 + $0x10] sm:$0xff]  ;;  %v4277_v41 = vpack.c.bf16 %v933_v40, %v932_v39 }
 0x2f0   :  { %v428_v44 = vsel %vm305_vm0, %v426_v42, %v420_v43  ;;  %v5349_v30 = vpack.c.bf16 %v1026_v24, %v1025_v21  ;;  %v3643_v42 = vld [vmem:[#allocation16] ss:$0 sm:$0xff] }
 0x2f1   :  { %v497_v46 = vadd.f32 %v496_v28, %v428_v44  ;;  %v926_v28 = vld [vmem:[%s5767_s1 + $0x10] sm:$0xff] }
 0x2f2   :  { %v422_v48 = vpop.permute.xlu0 %421  ;;  %v4265_v31 = vpack.c.bf16 %v927_v29, %v926_v28 }
 0x2f3   :  { %v5309_v49 = vadd.f32 %v3630_v45, %v497_v46  ;;  %v429_v50 = vsel %vm305_vm0, %v427_v47, %v422_v48 }
 0x2f4   :  { %v502_v51 = vadd.f32 %v3897_v25, %v429_v50  ;;  %v924_v25 = vld [vmem:[%s5767_s1] sm:$0xff] }
 0x2f5   :  { %v514_v52 = vmax.f32 %v5309_v49, 0.0  ;;  %v4261_v27 = vpack.c.bf16 %v925_v26, %v924_v25  ;;  %v3648_v49 = vld [vmem:[%s5768_s2] ss:$0 sm:$0xff] }
 0x2f6   :  { %v5313_v53 = vadd.f32 %v3630_v45, %v502_v51 }
 0x2f7   :  { %3910 = vmatprep.mubr.msk.f32.mxu0 %vm529_vm4, %v514_v52 }
 0x2f8   :  { %v515_v54 = vmax.f32 %v5313_v53, 0.0 }
 0x2fa   :  { %3911 = vmatmul.mubr.msk.f32.vlgmr.msra.gmra.mrb[2].mxu0 %vm529_vm4, %v515_v54 }
 0x2fb   :  { %3932 = vmatpush3.msra.mxu0 %v808_v9 }
 0x2fc   :  { %4281 = vmatprep.subr.bf16.mxu0 %v5020_v22 }
 0x3cd   :  { %v3912_v62 = vpop.f32.mrb[2].mxu0 }
 0x3ce   :  { %v608_v63 = vadd.f32 %v3912_v62, %v3631_v61  ;;  %v602_v0 = vpop.f32.mrb[3].mxu0 }
 0x3cf   :  { %v603_v1 = vadd.f32 %v3631_v61, %v602_v0  ;;  %v3634_v61 = vld [vmem:[#allocation11] ss:$0 sm:$0xff] }
 0x3d0   :  { %v612_v6 = vmax.f32 %v608_v63, 0.0 }
 0x3d1   :  { %v611_v4 = vmax.f32 %v603_v1, 0.0 }
 0x3d3   :  { %3917 = vmatprep.mubr.msk.f32.mxu1 %vm622_vm8, %v611_v4 }
 0x3d4   :  { %3918 = vmatmul.mubr.msk.f32.vlgmr.msra.gmra.mrb[2].mxu1 %vm622_vm8, %v612_v6 }
 0x3d5   :  { %4256 = vmatpush3.bf16.msra.mxu1 %v4253_v60  ;;  %3928 = vmatprep.mubr.msk.f32.mxu1 %vm305_vm0, %v5275_v5 }
 0x3d6   :  { %4258 = vmatprep.subr.bf16.mxu1 %v4257_v8 }
 0x3d9   :  { %4260 = vmatpush3.bf16.msra.mxu1 %v4257_v8 }
 0x3da   :  { %4262 = vmatprep.subr.bf16.mxu1 %v4261_v27 }
 0x3dc   :  { %3929 = vmatmul.mubr.msk.f32.vlgmr.msra.gmra.mrb[4].mxu1 %vm305_vm0, %v5281_v7 }
 0x3dd   :  { %4264 = vmatpush3.bf16.msra.mxu1 %v4261_v27 }
 0x3de   :  { %4266 = vmatprep.subr.bf16.mxu1 %v4265_v31 }
 0x3e1   :  { %4268 = vmatpush3.bf16.msra.mxu1 %v4265_v31 }
 0x3e2   :  { %4270 = vmatprep.subr.bf16.mxu1 %v4269_v34 }
 0x3e5   :  { %4272 = vmatpush3.bf16.msra.mxu1 %v4269_v34 }
 0x3e6   :  { %4274 = vmatprep.subr.bf16.mxu1 %v4273_v38 }
 0x3e9   :  { %4276 = vmatpush3.bf16.msra.mxu1 %v4273_v38 }
 0x3ea   :  { %4278 = vmatprep.subr.bf16.mxu1 %v4277_v41 }
 0x3ed   :  { %4280 = vmatpush3.bf16.msra.mxu1 %v4277_v41 }
 0x3ee   :  { %4299 = vmatprep.subr.bf16.mxu1 %v5020_v22 }
 0x4a7   :  { %v5331_v10 = vpop.f32.mrb[2].mxu1 }
 0x4a8   :  { %v5333_v11 = vpop.f32.mrb[3].mxu1  ;;  %v705_v63 = vadd.f32 %v5331_v10, %v3634_v61 }
 0x4a9   :  { %v700_v62 = vadd.f32 %v3634_v61, %v5333_v11 }
 0x4aa   :  { %v3639_v1 = vmul.f32 -1.442695, %v705_v63 }
 0x4ab   :  { %v3638_v0 = vmul.f32 -1.442695, %v700_v62 }
 0x4af   :  { %v3930_v13 = vpop.f32.mrb[4].mxu1 }
 0x4b0   :  { %v803_v14 = vadd.f32 %v3930_v13, %v3640_v12  ;;  %v797_v15 = vpop.f32.mrb[5].mxu1 }
 0x4b1   :  { %v798_v16 = vadd.f32 %v3640_v12, %v797_v15 }
 0x4b2   :  { %v807_v18 = vmax.f32 %v803_v14, 0.0 }
 0x4b3   :  { %v806_v17 = vmax.f32 %v798_v16, 0.0 }
 0x4b5   :  { %3933 = vmatprep.mubr.msk.f32.mxu0 %vm816_vm9, %v806_v17 }
 0x4b6   :  { %3934 = vmatmul.mubr.msk.f32.vlgmr.msra.gmra.mrb[4].mxu0 %vm816_vm9, %v807_v18 }
 0x4b7   :  { %3967 = vmatprep.mubr.msk.f32.mxu0 %vm5021_vm10, %v5017_v37  ;;  %4283 = vmatpush3.bf16.msra.mxu0 %v5339_v23 }
 0x4b8   :  { %4284 = vmatprep.subr.bf16.mxu0 %v5020_v22 }
 0x4bb   :  { %4286 = vmatpush3.bf16.msra.mxu0 %v5349_v30 }
 0x4bc   :  { %4287 = vmatprep.subr.bf16.mxu0 %v5020_v22 }
 0x4be   :  { %3968 = vmatmul.mubr.f32.vlgmr.msra.gmra.mrb[6].mxu0 %v5017_v37 }
 0x4bf   :  { %4289 = vmatpush3.bf16.msra.mxu0 %v5339_v23  ;;  %3978 = vmatprep.mubr.msk.f32.mxu0 %vm5021_vm10, %v5017_v37 }
 0x4c0   :  { %4290 = vmatprep.subr.bf16.mxu0 %v5020_v22 }
 0x4c3   :  { %4292 = vmatpush3.bf16.msra.mxu0 %v5349_v30 }
 0x4c4   :  { %4293 = vmatprep.subr.bf16.mxu0 %v5020_v22 }
 0x589   :  { %v3935_v43 = vpop.f32.mrb[4].mxu0 }
 0x58a   :  { %v895_v44 = vadd.f32 %v3935_v43, %v3643_v42  ;;  %v889_v45 = vpop.f32.mrb[5].mxu0 }
 0x58b   :  { %v890_v46 = vadd.f32 %v3643_v42, %v889_v45 }
 0x58c   :  { %v3647_v47 = vmul.f32 -1.442695, %v895_v44 }
 0x58d   :  { %v3646_v48 = vmul.f32 -1.442695, %v890_v46 }
 0x58e   :  { %4502 = vpow2.f32 %v3647_v47 }
 0x58f   :  { %4504 = vpow2.f32 %v3646_v48 }
 0x591   :  { %v1102_v4 = vpop.f32.mrb[6].mxu0 }
 0x598   :  { %v4503_v50 = vpop.eup %4502 }
 0x599   :  { %v4505_v51 = vpop.eup %4504  ;;  %v905_v55 = vadd.f32 1.0, %v4503_v50 }
 0x59a   :  { %v904_v56 = vadd.f32 1.0, %v4505_v51 }
 0x59b   :  { %4506 = vrcp.f32 %v905_v55 }
 0x59c   :  { %4508 = vrcp.f32 %v904_v56 }
 0x59d   :  { %4510 = vpow2.f32 %v3638_v0 }
 0x59e   :  { %4512 = vpow2.f32 %v3639_v1 }
 0x5a5   :  { %v4507_v57 = vpop.eup %4506 }
 0x5a6   :  { %v4509_v58 = vpop.eup %4508  ;;  %v913_v59 = vmul.f32 %v4507_v57, %v5281_v7  ;;  %v1103_v7 = vadd.f32 %v5372_v2, %v1102_v4 }
 0x5a7   :  { %v912_v60 = vmul.f32 %v4509_v58, %v5275_v5  ;;  %v4511_v3 = vpop.eup %4510  ;;  %v3969_v5 = vpop.f32.mrb[7].mxu0 }
 0x5a8   :  { %918 = vrot.lane.b32.xlu0 %v913_v59, %s5022_s21  ;;  %v4513_v6 = vpop.eup %4512  ;;  %v714_v8 = vadd.f32 1.0, %v4511_v3 }
 0x5a9   :  { %916 = vrot.lane.b32.xlu1 %v912_v60, %s5022_s21  ;;  %v715_v9 = vadd.f32 1.0, %v4513_v6 }
 0x5aa   :  { %4514 = vrcp.f32 %v714_v8 }
 0x5ab   :  { %4516 = vrcp.f32 %v715_v9 }
 0x5ad   :  { %1114 = vrot.lane.b32.xlu1 %v1103_v7, %s5023_s24 }
 0x5b4   :  { %v4515_v10 = vpop.eup %4514 }
 0x5b5   :  { %v4517_v11 = vpop.eup %4516  ;;  %v910_v13 = vmul.f32 %v4515_v10, %v514_v52 }
 0x5b6   :  { %v911_v14 = vmul.f32 %v4517_v11, %v515_v54 }
 0x61a   :  { %v919_v12 = vpop.permute.xlu0 %918 }
 0x61b   :  { %v917_v15 = vpop.permute.xlu1 %916  ;;  %v923_v17 = vsel %vm529_vm4, %v911_v14, %v919_v12 }
 0x61c   :  { %v922_v16 = vsel %vm529_vm4, %v910_v13, %v917_v15 }
 0x61d   :  { %3956 = vmatprep.mubr.msk.f32.mxu1 %vm941_vm11, %v922_v16 }
 0x61e   :  { %3957 = vmatmul.mubr.msk.f32.vlgmr.msra.gmra.mrb[6].mxu1 %vm941_vm11, %v923_v17 }
 0x61f   :  { %4301 = vmatpush3.bf16.msra.mxu1 %v5339_v23  ;;  %4000 = vmatprep.mubr.msk.f32.mxu1 %vm5021_vm10, %v5017_v37  ;;  %v1115_v25 = vpop.permute.xlu1 %1114 }
 0x620   :  { %4302 = vmatprep.subr.bf16.mxu1 %v5020_v22 }
 0x623   :  { %4304 = vmatpush3.bf16.msra.mxu1 %v5349_v30 }
 0x624   :  { %4311 = vmatprep.subr.bf16.mxu1 %v5020_v22 }
 0x6f1   :  { %v3958_v52 = vpop.f32.mrb[6].mxu1 }
 0x6f2   :  { %v5389_v53 = vadd.f32 %v3958_v52, %v3648_v49  ;;  %v1014_v54 = vpop.f32.mrb[7].mxu1 }
 0x6f3   :  { %v5391_v18 = vadd.f32 %v3648_v49, %v1014_v54 }
 0x6f5   :  { %v1106_v19 = vadd.f32 %v1103_v7, %v5391_v18 }
 0x6f7   :  { %v3652_v20 = vmul.f32 -1.442695, %v1106_v19 }
 0x6f9   :  { %4518 = vpow2.f32 %v3652_v20 }
 0x703   :  { %v4519_v21 = vpop.eup %4518 }
 0x704   :  { %v1110_v24 = vadd.f32 1.0, %v4519_v21 }
 0x706   :  { %4520 = vrcp.f32 %v1110_v24 }
 0x710   :  { %v4521_v26 = vpop.eup %4520 }
 0x711   :  { %v1117_v27 = vmul.f32 %v4521_v26, %v1115_v25  ;;  %v1124_v32 = vsub.f32 1.0, %v4521_v26  ;;  %v1130_v34 = vmul.f32 0.0, %v4521_v26 }
 0x713   :  { %1119 = vrot.lane.b32.xlu0 %v1117_v27, %s5023_s24 }
 0x785   :  { %v1120_v28 = vpop.permute.xlu0 %1119 }
 0x786   :  { %v1122_v29 = vadd.f32 %v1120_v28, %v5391_v18 }
 0x788   :  { %4522 = vtanh.f32 %v1122_v29 }
 0x792   :  { %v4523_v31 = vpop.eup %4522 }
 0x793   :  { %1126 = vrot.lane.b32.xlu1 %v4523_v31, %s5015_s8 }
 0x805   :  { %v1127_v33 = vpop.permute.xlu1 %1126 }
 0x806   :  { %v1129_v35 = vmul.f32 %v1127_v33, %v1124_v32 }
 0x808   :  { %v5397_v36 = vadd.f32 %v1130_v34, %v1129_v35 }
 0x80a   :  { %1133 = vrot.lane.b32.xlu0 %v5397_v36, %s5015_s8  ;;  %v1233_v58 = vrot.slane %v5397_v36, 6 }
 0x87c   :  { %v1134_v38 = vpop.permute.xlu0 %1133 }
 0x87d   :  { %3979 = vmatmul.mubr.msk.f32.vlgmr.msra.gmra.mrb[8].mxu0 %vm305_vm0, %v1134_v38 }
 0x87e   :  { %4295 = vmatpush3.bf16.msra.mxu0 %v5339_v23  ;;  %3989 = vmatprep.mubr.msk.f32.mxu0 %vm5021_vm10, %v5017_v37 }
 0x87f   :  { %4296 = vmatprep.subr.bf16.mxu0 %v5020_v22 }
 0x882   :  { %4298 = vmatpush3.bf16.msra.mxu0 %v5349_v30 }
 0x883   :  { %4305 = vmatprep.subr.bf16.mxu0 %v5020_v22 }
 0x950   :  { %v1203_v39 = vpop.f32.mrb[8].mxu0 }
 0x951   :  { %v1204_v40 = vadd.f32 %v5372_v2, %v1203_v39  ;;  %v3980_v41 = vpop.f32.mrb[9].mxu0 }
 0x953   :  { %v1208_v42 = vrot.slane %v1204_v40, 6 }
 0x955   :  { %1217 = vrot.lane.b32.xlu1 %v1208_v42, %s5023_s24  ;;  %v1210_v43 = vadd.f32 %v1208_v42, %v5391_v18 }
 0x957   :  { %v3654_v44 = vmul.f32 -1.442695, %v1210_v43 }
 0x959   :  { %4524 = vpow2.f32 %v3654_v44 }
 0x963   :  { %v4525_v45 = vpop.eup %4524 }
 0x964   :  { %v1214_v46 = vadd.f32 1.0, %v4525_v45 }
 0x966   :  { %4526 = vrcp.f32 %v1214_v46 }
 0x970   :  { %v4527_v47 = vpop.eup %4526 }
 0x971   :  { %v1227_v57 = vsub.f32 1.0, %v4527_v47  ;;  %v1235_v61 = vmul.f32 %v4527_v47, %v1233_v58 }
 0x9c7   :  { %v1218_v48 = vpop.permute.xlu1 %1217 }
 0x9c8   :  { %v1220_v50 = vmul.f32 %v4527_v47, %v1218_v48 }
 0x9ca   :  { %1222 = vrot.lane.b32.xlu0 %v1220_v50, %s5023_s24 }
 0xa3c   :  { %v1223_v51 = vpop.permute.xlu0 %1222 }
 0xa3d   :  { %v1225_v55 = vadd.f32 %v1223_v51, %v5391_v18 }
 0xa3f   :  { %4528 = vtanh.f32 %v1225_v55 }
 0xa49   :  { %v4529_v56 = vpop.eup %4528 }
 0xa4a   :  { %1229 = vrot.lane.b32.xlu1 %v4529_v56, %s5015_s8 }
 0xabc   :  { %v1230_v59 = vpop.permute.xlu1 %1229 }
 0xabd   :  { %v1232_v60 = vmul.f32 %v1230_v59, %v1227_v57 }
 0xabf   :  { %v1236_v62 = vadd.f32 %v1235_v61, %v1232_v60 }
 0xac1   :  { %v1238_v63 = vrot.slane %v1236_v62, 2  ;;  %v1339_v17 = vrot.slane %v1236_v62, 6  ;;  %v1869_v20 = vsel %vm389_vm2, %v5397_v36, %v1236_v62 }
 0xac3   :  { %1239 = vrot.lane.b32.xlu0 %v1238_v63, %s5015_s8 }
 0xb35   :  { %v1240_v0 = vpop.permute.xlu0 %1239 }
 0xb36   :  { %3990 = vmatmul.mubr.msk.f32.vlgmr.msra.gmra.mrb[10].mxu0 %vm305_vm0, %v1240_v0 }
 0xb37   :  { %4307 = vmatpush3.bf16.msra.mxu0 %v5339_v23  ;;  %4011 = vmatprep.mubr.msk.f32.mxu0 %vm5021_vm10, %v5017_v37 }
 0xb38   :  { %4308 = vmatprep.subr.bf16.mxu0 %v5020_v22 }
 0xb3b   :  { %4310 = vmatpush3.bf16.msra.mxu0 %v5349_v30 }
 0xb3c   :  { %4317 = vmatprep.subr.bf16.mxu0 %v5020_v22 }
 0xc09   :  { %v1309_v1 = vpop.f32.mrb[10].mxu0 }
 0xc0a   :  { %v1310_v3 = vadd.f32 %v5372_v2, %v1309_v1  ;;  %v3991_v4 = vpop.f32.mrb[11].mxu0 }
 0xc0c   :  { %v1314_v6 = vrot.slane %v1310_v3, 4 }
 0xc0e   :  { %1323 = vrot.lane.b32.xlu1 %v1314_v6, %s5023_s24  ;;  %v1316_v7 = vadd.f32 %v1314_v6, %v5391_v18 }
 0xc10   :  { %v3656_v5 = vmul.f32 -1.442695, %v1316_v7 }
 0xc12   :  { %4530 = vpow2.f32 %v3656_v5 }
 0xc1c   :  { %v4531_v8 = vpop.eup %4530 }
 0xc1d   :  { %v1320_v9 = vadd.f32 1.0, %v4531_v8 }
 0xc1f   :  { %4532 = vrcp.f32 %v1320_v9 }
 0xc29   :  { %v4533_v10 = vpop.eup %4532 }
 0xc2a   :  { %v1333_v16 = vsub.f32 1.0, %v4533_v10  ;;  %v1341_v52 = vmul.f32 %v4533_v10, %v1339_v17 }
 0xc80   :  { %v1324_v11 = vpop.permute.xlu1 %1323 }
 0xc81   :  { %v1326_v12 = vmul.f32 %v4533_v10, %v1324_v11 }
 0xc83   :  { %1328 = vrot.lane.b32.xlu0 %v1326_v12, %s5023_s24 }
 0xcf5   :  { %v1329_v13 = vpop.permute.xlu0 %1328 }
 0xcf6   :  { %v1331_v14 = vadd.f32 %v1329_v13, %v5391_v18 }
 0xcf8   :  { %4534 = vtanh.f32 %v1331_v14 }
 0xd02   :  { %v4535_v15 = vpop.eup %4534 }
 0xd03   :  { %1335 = vrot.lane.b32.xlu1 %v4535_v15, %s5015_s8 }
 0xd75   :  { %v1336_v49 = vpop.permute.xlu1 %1335 }
 0xd76   :  { %v1338_v54 = vmul.f32 %v1336_v49, %v1333_v16 }
 0xd78   :  { %v1342_v19 = vadd.f32 %v1341_v52, %v1338_v54 }
 0xd7a   :  { %v1870_v21 = vsel %vm629_vm5, %v1869_v20, %v1342_v19  ;;  %v1344_v24 = vrot.slane %v1342_v19, 4  ;;  %v1445_v43 = vrot.slane %v1342_v19, 6 }
 0xd7c   :  { %1345 = vrot.lane.b32.xlu0 %v1344_v24, %s5015_s8 }
 0xdee   :  { %v1346_v25 = vpop.permute.xlu0 %1345 }
 0xdef   :  { %4001 = vmatmul.mubr.msk.f32.vlgmr.msra.gmra.mrb[8].mxu1 %vm305_vm0, %v1346_v25 }
 0xdf0   :  { %4313 = vmatpush3.bf16.msra.mxu1 %v5339_v23  ;;  %4022 = vmatprep.mubr.msk.f32.mxu1 %vm5021_vm10, %v5017_v37 }
 0xdf1   :  { %4314 = vmatprep.subr.bf16.mxu1 %v5020_v22 }
 0xdf4   :  { %4316 = vmatpush3.bf16.msra.mxu1 %v5349_v30 }
 0xdf5   :  { %4323 = vmatprep.subr.bf16.mxu1 %v5020_v22 }
 0xec2   :  { %v1415_v26 = vpop.f32.mrb[8].mxu1 }
 0xec3   :  { %v1416_v27 = vadd.f32 %v5372_v2, %v1415_v26  ;;  %v4002_v28 = vpop.f32.mrb[9].mxu1 }
 0xec5   :  { %v1420_v29 = vrot.slane %v1416_v27, 2 }
 0xec7   :  { %1429 = vrot.lane.b32.xlu1 %v1420_v29, %s5023_s24  ;;  %v1422_v31 = vadd.f32 %v1420_v29, %v5391_v18 }
 0xec9   :  { %v3658_v32 = vmul.f32 -1.442695, %v1422_v31 }
 0xecb   :  { %4536 = vpow2.f32 %v3658_v32 }
 0xed5   :  { %v4537_v33 = vpop.eup %4536 }
 0xed6   :  { %v1426_v34 = vadd.f32 1.0, %v4537_v33 }
 0xed8   :  { %4538 = vrcp.f32 %v1426_v34 }
 0xee2   :  { %v4539_v35 = vpop.eup %4538 }
 0xee3   :  { %v1439_v42 = vsub.f32 1.0, %v4539_v35  ;;  %v1447_v45 = vmul.f32 %v4539_v35, %v1445_v43 }
 0xf39   :  { %v1430_v36 = vpop.permute.xlu1 %1429 }
 0xf3a   :  { %v1432_v38 = vmul.f32 %v4539_v35, %v1430_v36 }
 0xf3c   :  { %1434 = vrot.lane.b32.xlu0 %v1432_v38, %s5023_s24 }
 0xfae   :  { %v1435_v39 = vpop.permute.xlu0 %1434 }
 0xfaf   :  { %v1437_v40 = vadd.f32 %v1435_v39, %v5391_v18 }
 0xfb1   :  { %4540 = vtanh.f32 %v1437_v40 }
 0xfbb   :  { %v4541_v41 = vpop.eup %4540 }
 0xfbc   :  { %1441 = vrot.lane.b32.xlu1 %v4541_v41, %s5015_s8 }
0x102e   :  { %v1442_v44 = vpop.permute.xlu1 %1441 }
0x102f   :  { %v1444_v46 = vmul.f32 %v1442_v44, %v1439_v42 }
0x1031   :  { %v1448_v47 = vadd.f32 %v1447_v45, %v1444_v46 }
0x1033   :  { %v5447_v48 = vsel %vm396_vm1, %v1870_v21, %v1448_v47  ;;  %v1450_v50 = vrot.slane %v1448_v47, 6 }
0x1035   :  { %1451 = vrot.lane.b32.xlu0 %v1450_v50, %s5015_s8 }
0x10a7   :  { %v1452_v51 = vpop.permute.xlu0 %1451 }
0x10a8   :  { %4012 = vmatmul.mubr.msk.f32.vlgmr.msra.gmra.mrb[12].mxu0 %vm305_vm0, %v1452_v51 }
0x10a9   :  { %4319 = vmatpush3.bf16.msra.mxu0 %v5339_v23  ;;  %4033 = vmatprep.mubr.msk.f32.mxu0 %vm5021_vm10, %v5017_v37 }
0x10aa   :  { %4320 = vmatprep.subr.bf16.mxu0 %v5020_v22 }
0x10ad   :  { %4322 = vmatpush3.bf16.msra.mxu0 %v5349_v30 }
0x117b   :  { %v1521_v18 = vpop.f32.mrb[12].mxu0 }
0x117c   :  { %v1522_v55 = vadd.f32 %v5372_v2, %v1521_v18  ;;  %v4013_v56 = vpop.f32.mrb[13].mxu0 }
0x117e   :  { %1533 = vrot.lane.b32.xlu1 %v1522_v55, %s5023_s24  ;;  %v1525_v57 = vadd.f32 %v1522_v55, %v5389_v53 }
0x1180   :  { %v3660_v58 = vmul.f32 -1.442695, %v1525_v57 }
0x1182   :  { %4542 = vpow2.f32 %v3660_v58 }
0x118c   :  { %v4543_v59 = vpop.eup %4542 }
0x118d   :  { %v1529_v60 = vadd.f32 1.0, %v4543_v59 }
0x118f   :  { %4544 = vrcp.f32 %v1529_v60 }
0x1199   :  { %v4545_v61 = vpop.eup %4544 }
0x119a   :  { %v1543_v4 = vsub.f32 1.0, %v4545_v61  ;;  %v1550_v7 = vmul.f32 %v4545_v61, %v1450_v50 }
0x11f0   :  { %v1534_v62 = vpop.permute.xlu1 %1533 }
0x11f1   :  { %v1536_v63 = vmul.f32 %v4545_v61, %v1534_v62 }
0x11f3   :  { %1538 = vrot.lane.b32.xlu0 %v1536_v63, %s5023_s24 }
0x1265   :  { %v1539_v0 = vpop.permute.xlu0 %1538 }
0x1266   :  { %v1541_v1 = vadd.f32 %v1539_v0, %v5389_v53 }
0x1268   :  { %4546 = vtanh.f32 %v1541_v1 }
0x1272   :  { %v4547_v3 = vpop.eup %4546 }
0x1273   :  { %1545 = vrot.lane.b32.xlu1 %v4547_v3, %s5015_s8 }
0x12e5   :  { %v1546_v6 = vpop.permute.xlu1 %1545 }
0x12e6   :  { %v1548_v5 = vmul.f32 %v1546_v6, %v1543_v4 }
0x12e8   :  { %v5462_v8 = vadd.f32 %v1550_v7, %v1548_v5 }
0x12ea   :  { %1553 = vrot.lane.b32.xlu0 %v5462_v8, %s5015_s8  ;;  %v1653_v21 = vrot.slane %v5462_v8, 6 }
0x135c   :  { %v1554_v9 = vpop.permute.xlu0 %1553 }
0x135d   :  { %4023 = vmatmul.mubr.msk.f32.vlgmr.msra.gmra.mrb[10].mxu1 %vm305_vm0, %v1554_v9 }
0x135e   :  { %4325 = vmatpush3.bf16.msra.mxu1 %v5339_v23  ;;  %4044 = vmatprep.mubr.msk.f32.mxu1 %vm5021_vm10, %v5017_v37 }
0x135f   :  { %4326 = vmatprep.subr.bf16.mxu1 %v5020_v22 }
0x1362   :  { %4328 = vmatpush3.bf16.msra.mxu1 %v5349_v30 }
0x1363   :  { %4337 = vmatprep.subr.bf16.mxu1 %v5020_v22 }
0x1430   :  { %v1623_v10 = vpop.f32.mrb[10].mxu1 }
0x1431   :  { %v1624_v11 = vadd.f32 %v5372_v2, %v1623_v10  ;;  %v4024_v12 = vpop.f32.mrb[11].mxu1  ;;  %v1875_v10 = vld [vmem:[%s5769_s7] sm:$0xff] }
0x1432   :  { %v1971_v12 = vld [vmem:[%s5770_s3] sm:$0xff] }
0x1433   :  { %v1628_v13 = vrot.slane %v1624_v11, 6  ;;  %v1876_v11 = vld [vmem:[%s5769_s7 + $0x8] sm:$0xff] }
0x1435   :  { %1637 = vrot.lane.b32.xlu1 %v1628_v13, %s5023_s24  ;;  %v1630_v14 = vadd.f32 %v1628_v13, %v5389_v53  ;;  %v4329_v13 = vpack.c.bf16 %v1876_v11, %v1875_v10 }
0x1437   :  { %v3662_v15 = vmul.f32 -1.442695, %v1630_v14  ;;  %v1972_v14 = vld [vmem:[%s5770_s3 + $0x8] sm:$0xff]  ;;  %4330 = vmatprep.subr.bf16.mxu0 %v4329_v13 }
0x1439   :  { %4548 = vpow2.f32 %v3662_v15  ;;  %v1877_v15 = vld [vmem:[%s5769_s7 + $0x10] sm:$0xff] }
0x1443   :  { %v4549_v23 = vpop.eup %4548 }
0x1444   :  { %v1634_v16 = vadd.f32 1.0, %v4549_v23  ;;  %v1878_v23 = vld [vmem:[%s5769_s7 + $0x18] sm:$0xff] }
0x1446   :  { %4550 = vrcp.f32 %v1634_v16  ;;  %v5512_v16 = vpack.c.bf16 %v1972_v14, %v1971_v12 }
0x1450   :  { %v4551_v17 = vpop.eup %4550 }
0x1451   :  { %v1647_v20 = vsub.f32 1.0, %v4551_v17  ;;  %v1655_v26 = vmul.f32 %v4551_v17, %v1653_v21 }
0x14a7   :  { %v1638_v49 = vpop.permute.xlu1 %1637 }
0x14a8   :  { %v1640_v52 = vmul.f32 %v4551_v17, %v1638_v49  ;;  %v4333_v17 = vpack.c.bf16 %v1878_v23, %v1877_v15  ;;  %v1973_v49 = vld [vmem:[%s5770_s3 + $0x10] sm:$0xff] }
0x14aa   :  { %1642 = vrot.lane.b32.xlu0 %v1640_v52, %s5023_s24  ;;  %v1974_v52 = vld [vmem:[%s5770_s3 + $0x18] sm:$0xff] }
0x151c   :  { %v1643_v30 = vpop.permute.xlu0 %1642 }
0x151d   :  { %v1645_v54 = vadd.f32 %v1643_v30, %v5389_v53 }
0x151f   :  { %4552 = vtanh.f32 %v1645_v54 }
0x1529   :  { %v4553_v19 = vpop.eup %4552 }
0x152a   :  { %1649 = vrot.lane.b32.xlu1 %v4553_v19, %s5015_s8 }
0x159c   :  { %v1650_v24 = vpop.permute.xlu1 %1649 }
0x159d   :  { %v1652_v25 = vmul.f32 %v1650_v24, %v1647_v20 }
0x159f   :  { %v1656_v27 = vadd.f32 %v1655_v26, %v1652_v25 }
0x15a1   :  { %v1658_v28 = vrot.slane %v1656_v27, 2  ;;  %v1759_v47 = vrot.slane %v1656_v27, 6  ;;  %v1872_v56 = vsel %vm389_vm2, %v5462_v8, %v1656_v27 }
0x15a3   :  { %1659 = vrot.lane.b32.xlu0 %v1658_v28, %s5015_s8 }
0x1615   :  { %v1660_v29 = vpop.permute.xlu0 %1659 }
0x1616   :  { %4034 = vmatmul.mubr.msk.f32.vlgmr.msra.gmra.mrb[14].mxu0 %vm305_vm0, %v1660_v29 }
0x1617   :  { %4332 = vmatpush3.bf16.msra.mxu0 %v4329_v13 }
0x1618   :  { %4334 = vmatprep.subr.bf16.mxu0 %v4333_v17 }
0x161b   :  { %4336 = vmatpush3.bf16.msra.mxu0 %v4333_v17 }
0x161c   :  { %4343 = vmatprep.subr.bf16.mxu0 %v5020_v22 }
0x16e9   :  { %v1729_v31 = vpop.f32.mrb[14].mxu0 }
0x16ea   :  { %v1730_v32 = vadd.f32 %v5372_v2, %v1729_v31  ;;  %v4035_v33 = vpop.f32.mrb[15].mxu0  ;;  %v3667_v31 = vld [vmem:[#allocation19] ss:$0 sm:$0xff] }
0x16ec   :  { %v1734_v34 = vrot.slane %v1730_v32, 4 }
0x16ee   :  { %1743 = vrot.lane.b32.xlu1 %v1734_v34, %s5023_s24  ;;  %v1736_v35 = vadd.f32 %v1734_v34, %v5389_v53 }
0x16f0   :  { %v3664_v36 = vmul.f32 -1.442695, %v1736_v35 }
0x16f2   :  { %4554 = vpow2.f32 %v3664_v36  ;;  %v5547_v36 = vld [vmem:[#allocation20] ss:$0 sm:$0xff] }
0x16fc   :  { %v4555_v38 = vpop.eup %4554 }
0x16fd   :  { %v1740_v39 = vadd.f32 1.0, %v4555_v38 }
0x16ff   :  { %4556 = vrcp.f32 %v1740_v39 }
0x1709   :  { %v4557_v40 = vpop.eup %4556 }
0x170a   :  { %v1753_v46 = vsub.f32 1.0, %v4557_v40  ;;  %v1761_v51 = vmul.f32 %v4557_v40, %v1759_v47 }
0x1760   :  { %v1744_v41 = vpop.permute.xlu1 %1743 }
0x1761   :  { %v1746_v42 = vmul.f32 %v4557_v40, %v1744_v41 }
0x1763   :  { %1748 = vrot.lane.b32.xlu0 %v1746_v42, %s5023_s24 }
0x17d5   :  { %v1749_v43 = vpop.permute.xlu0 %1748 }
0x17d6   :  { %v1751_v44 = vadd.f32 %v1749_v43, %v5389_v53 }
0x17d8   :  { %4558 = vtanh.f32 %v1751_v44 }
0x17e2   :  { %v4559_v45 = vpop.eup %4558 }
0x17e3   :  { %1755 = vrot.lane.b32.xlu1 %v4559_v45, %s5015_s8 }
0x1855   :  { %v1756_v50 = vpop.permute.xlu1 %1755 }
0x1856   :  { %v1758_v18 = vmul.f32 %v1756_v50, %v1753_v46 }
0x1858   :  { %v1762_v55 = vadd.f32 %v1761_v51, %v1758_v18 }
0x185a   :  { %v1764_v57 = vrot.slane %v1762_v55, 4  ;;  %v1873_v58 = vsel %vm629_vm5, %v1872_v56, %v1762_v55  ;;  %v1865_v19 = vrot.slane %v1762_v55, 6 }
0x185c   :  { %1765 = vrot.lane.b32.xlu0 %v1764_v57, %s5015_s8 }
0x18ce   :  { %v1766_v59 = vpop.permute.xlu0 %1765 }
0x18cf   :  { %4045 = vmatmul.mubr.msk.f32.vlgmr.msra.gmra.mrb[12].mxu1 %vm305_vm0, %v1766_v59 }
0x18d0   :  { %4066 = vmatprep.mubr.msk.f32.mxu1 %vm5021_vm10, %v5017_v37  ;;  %4339 = vmatpush3.bf16.msra.mxu1 %v5512_v16 }
0x18d1   :  { %4340 = vmatprep.subr.bf16.mxu1 %v5020_v22 }
0x19a2   :  { %v1835_v60 = vpop.f32.mrb[12].mxu1 }
0x19a3   :  { %v1836_v61 = vadd.f32 %v5372_v2, %v1835_v60  ;;  %v4046_v62 = vpop.f32.mrb[13].mxu1 }
0x19a5   :  { %v1840_v63 = vrot.slane %v1836_v61, 2 }
0x19a7   :  { %1849 = vrot.lane.b32.xlu1 %v1840_v63, %s5023_s24  ;;  %v1842_v0 = vadd.f32 %v1840_v63, %v5389_v53 }
0x19a9   :  { %v3666_v1 = vmul.f32 -1.442695, %v1842_v0 }
0x19ab   :  { %4560 = vpow2.f32 %v3666_v1 }
0x19b5   :  { %v4561_v3 = vpop.eup %4560 }
0x19b6   :  { %v1846_v4 = vadd.f32 1.0, %v4561_v3 }
0x19b8   :  { %4562 = vrcp.f32 %v1846_v4 }
0x19c2   :  { %v4563_v6 = vpop.eup %4562 }
0x19c3   :  { %v1859_v54 = vsub.f32 1.0, %v4563_v6  ;;  %v1867_v21 = vmul.f32 %v4563_v6, %v1865_v19 }
0x1a19   :  { %v1850_v7 = vpop.permute.xlu1 %1849 }
0x1a1a   :  { %v1852_v2 = vmul.f32 %v4563_v6, %v1850_v7 }
0x1a1c   :  { %1854 = vrot.lane.b32.xlu0 %v1852_v2, %s5023_s24 }
0x1a20   :  { %1888 = vrot.lane.b32.xlu0 %v5447_v48, %s5015_s8 }
0x1a8e   :  { %v1855_v5 = vpop.permute.xlu0 %1854 }
0x1a8f   :  { %v1857_v8 = vadd.f32 %v1855_v5, %v5389_v53  ;;  %v5518_v53 = vpack.c.bf16 %v1974_v52, %v1973_v49 }
0x1a91   :  { %4564 = vtanh.f32 %v1857_v8  ;;  %4342 = vmatpush3.bf16.msra.mxu1 %v5518_v53 }
0x1a92   :  { %v5502_v9 = vpop.permute.xlu0 %1888  ;;  %4349 = vmatprep.subr.bf16.mxu1 %v5020_v22 }
0x1a93   :  { %4055 = vmatprep.mubr.msk.f32.mxu0 %vm305_vm0, %v5502_v9 }
0x1a94   :  { %4067 = vmatmul.mubr.f32.vlgmr.msra.gmra.mrb[14].mxu1 %v5017_v37 }
0x1a95   :  { %4351 = vmatpush3.bf16.msra.mxu1 %v5512_v16  ;;  %4088 = vmatprep.mubr.msk.f32.mxu1 %vm5021_vm10, %v5017_v37 }
0x1a96   :  { %4352 = vmatprep.subr.bf16.mxu1 %v5020_v22 }
0x1a99   :  { %4354 = vmatpush3.bf16.msra.mxu1 %v5518_v53 }
0x1a9a   :  { %4361 = vmatprep.subr.bf16.mxu1 %v5020_v22 }
0x1a9b   :  { %v4565_v30 = vpop.eup %4564 }
0x1a9c   :  { %1861 = vrot.lane.b32.xlu1 %v4565_v30, %s5015_s8 }
0x1b0e   :  { %v1862_v20 = vpop.permute.xlu1 %1861 }
0x1b0f   :  { %v1864_v24 = vmul.f32 %v1862_v20, %v1859_v54 }
0x1b11   :  { %v1868_v25 = vadd.f32 %v1867_v21, %v1864_v24 }
0x1b13   :  { %v1874_v26 = vsel %vm396_vm1, %v1873_v58, %v1868_v25 }
0x1b14   :  { %1890 = vrot.lane.b32.xlu1 %v1874_v26, %s5015_s8 }
0x1b67   :  { %v2042_v28 = vpop.f32.mrb[14].mxu1 }
0x1b68   :  { %v4068_v29 = vpop.f32.mrb[15].mxu1 }
0x1b86   :  { %v5533_v27 = vpop.permute.xlu1 %1890 }
0x1b87   :  { %4056 = vmatmul.mubr.msk.f32.vlgmr.msra.gmra.mrb[16].mxu0 %vm305_vm0, %v5533_v27 }
0x1b88   :  { %4345 = vmatpush3.bf16.msra.mxu0 %v5512_v16  ;;  %4077 = vmatprep.mubr.msk.f32.mxu0 %vm5021_vm10, %v5017_v37 }
0x1b89   :  { %4346 = vmatprep.subr.bf16.mxu0 %v5020_v22 }
0x1b8c   :  { %4348 = vmatpush3.bf16.msra.mxu0 %v5518_v53 }
0x1b8d   :  { %4355 = vmatprep.subr.bf16.mxu0 %v5020_v22 }
0x1c5a   :  { %v4057_v32 = vpop.f32.mrb[16].mxu0 }
0x1c5b   :  { %v5543_v33 = vadd.f32 %v4057_v32, %v3667_v31  ;;  %v1962_v34 = vpop.f32.mrb[17].mxu0 }
0x1c5c   :  { %v5545_v35 = vadd.f32 %v3667_v31, %v1962_v34 }
0x1c5e   :  { %v2046_v38 = vadd.f32 %v2042_v28, %v5545_v35 }
0x1c60   :  { %v2053_v39 = vadd.f32 %v5547_v36, %v2046_v38 }
0x1c62   :  { %4566 = vtanh.f32 %v2053_v39  ;;  %v3671_v41 = vmul.f32 -1.442695, %v2053_v39 }
0x1c64   :  { %4568 = vpow2.f32 %v3671_v41 }
0x1c6c   :  { %v4567_v40 = vpop.eup %4566 }
0x1c6d   :  { %2063 = vrot.lane.b32.xlu0 %v4567_v40, %s5023_s24 }
0x1c6e   :  { %v4569_v42 = vpop.eup %4568 }
0x1c6f   :  { %v2057_v43 = vadd.f32 1.0, %v4569_v42 }
0x1c71   :  { %4570 = vrcp.f32 %v2057_v43 }
0x1c7b   :  { %v4571_v44 = vpop.eup %4570 }
0x1c7c   :  { %v2061_v47 = vmul.f32 0.0, %v4571_v44 }
0x1cdf   :  { %v2064_v45 = vpop.permute.xlu0 %2063 }
0x1ce0   :  { %v2066_v46 = vmul.f32 %v4571_v44, %v2064_v45 }
0x1ce2   :  { %2068 = vrot.lane.b32.xlu1 %v2066_v46, %s5018_s26 }
0x1d54   :  { %v2069_v50 = vpop.permute.xlu1 %2068 }
0x1d55   :  { %v2071_v51 = vadd.f32 %v2069_v50, %v2061_v47 }
0x1d57   :  { %4572 = vtanh.f32 %v2071_v51  ;;  %v2166_v2 = vrot.slane %v2071_v51, 6 }
0x1d61   :  { %v4573_v18 = vpop.eup %4572 }
0x1d62   :  { %2074 = vrot.lane.b32.xlu0 %v4573_v18, %s5023_s24 }
0x1dd4   :  { %v2075_v55 = vpop.permute.xlu0 %2074 }
0x1dd5   :  { %v5554_v56 = vmul.f32 %v4571_v44, %v2075_v55 }
0x1dd7   :  { %2079 = vrot.lane.b32.xlu1 %v5554_v56, %s5018_s26 }
0x1e49   :  { %v2080_v57 = vpop.permute.xlu1 %2079 }
0x1e4a   :  { %4078 = vmatmul.mubr.msk.f32.vlgmr.msra.gmra.mrb[18].mxu0 %vm305_vm0, %v2080_v57 }
0x1e4b   :  { %4357 = vmatpush3.bf16.msra.mxu0 %v5512_v16  ;;  %4099 = vmatprep.mubr.msk.f32.mxu0 %vm5021_vm10, %v5017_v37 }
0x1e4c   :  { %4358 = vmatprep.subr.bf16.mxu0 %v5020_v22 }
0x1e4f   :  { %4360 = vmatpush3.bf16.msra.mxu0 %v5518_v53 }
0x1e50   :  { %4367 = vmatprep.subr.bf16.mxu0 %v5020_v22 }
0x1f1d   :  { %v2149_v58 = vpop.f32.mrb[18].mxu0 }
0x1f1e   :  { %v2154_v59 = vrot.slane %v2149_v58, 6  ;;  %v4079_v60 = vpop.f32.mrb[19].mxu0 }
0x1f20   :  { %v2156_v61 = vadd.f32 %v2154_v59, %v5545_v35 }
0x1f22   :  { %v2157_v62 = vadd.f32 %v5547_v36, %v2156_v61 }
0x1f24   :  { %4574 = vtanh.f32 %v2157_v62  ;;  %v3673_v0 = vmul.f32 -1.442695, %v2157_v62 }
0x1f26   :  { %4576 = vpow2.f32 %v3673_v0 }
0x1f2e   :  { %v4575_v63 = vpop.eup %4574 }
0x1f2f   :  { %2170 = vrot.lane.b32.xlu0 %v4575_v63, %s5023_s24 }
0x1f30   :  { %v4577_v1 = vpop.eup %4576 }
0x1f31   :  { %v2161_v3 = vadd.f32 1.0, %v4577_v1 }
0x1f33   :  { %4578 = vrcp.f32 %v2161_v3 }
0x1f3d   :  { %v4579_v4 = vpop.eup %4578 }
0x1f3e   :  { %v2168_v5 = vmul.f32 %v4579_v4, %v2166_v2 }
0x1fa1   :  { %v2171_v6 = vpop.permute.xlu0 %2170 }
0x1fa2   :  { %v2173_v7 = vmul.f32 %v4579_v4, %v2171_v6 }
0x1fa4   :  { %2175 = vrot.lane.b32.xlu1 %v2173_v7, %s5018_s26 }
0x2016   :  { %v2176_v8 = vpop.permute.xlu1 %2175 }
0x2017   :  { %v2178_v10 = vadd.f32 %v2176_v8, %v2168_v5 }
0x2019   :  { %4580 = vtanh.f32 %v2178_v10  ;;  %v2274_v28 = vrot.slane %v2178_v10, 6 }
0x2023   :  { %v4581_v11 = vpop.eup %4580 }
0x2024   :  { %2181 = vrot.lane.b32.xlu0 %v4581_v11, %s5023_s24 }
0x2096   :  { %v2182_v12 = vpop.permute.xlu0 %2181 }
0x2097   :  { %v2184_v13 = vmul.f32 %v4579_v4, %v2182_v12 }
0x2099   :  { %v2186_v14 = vrot.slane %v2184_v13, 2  ;;  %v2829_v40 = vsel %vm389_vm2, %v5554_v56, %v2184_v13 }
0x209b   :  { %2187 = vrot.lane.b32.xlu1 %v2186_v14, %s5018_s26 }
0x210d   :  { %v2188_v15 = vpop.permute.xlu1 %2187 }
0x210e   :  { %4089 = vmatmul.mubr.msk.f32.vlgmr.msra.gmra.mrb[16].mxu1 %vm305_vm0, %v2188_v15 }
0x210f   :  { %4363 = vmatpush3.bf16.msra.mxu1 %v5512_v16  ;;  %4110 = vmatprep.mubr.msk.f32.mxu1 %vm5021_vm10, %v5017_v37 }
0x2110   :  { %4364 = vmatprep.subr.bf16.mxu1 %v5020_v22 }
0x2113   :  { %4366 = vmatpush3.bf16.msra.mxu1 %v5518_v53 }
0x2114   :  { %4373 = vmatprep.subr.bf16.mxu1 %v5020_v22 }
0x21e1   :  { %v2257_v23 = vpop.f32.mrb[16].mxu1 }
0x21e2   :  { %v2262_v17 = vrot.slane %v2257_v23, 4  ;;  %v4090_v49 = vpop.f32.mrb[17].mxu1 }
0x21e4   :  { %v2264_v52 = vadd.f32 %v2262_v17, %v5545_v35 }
0x21e6   :  { %v2265_v30 = vadd.f32 %v5547_v36, %v2264_v52 }
0x21e8   :  { %4582 = vtanh.f32 %v2265_v30  ;;  %v3675_v19 = vmul.f32 -1.442695, %v2265_v30 }
0x21ea   :  { %4584 = vpow2.f32 %v3675_v19 }
0x21f2   :  { %v4583_v54 = vpop.eup %4582 }
0x21f3   :  { %2278 = vrot.lane.b32.xlu0 %v4583_v54, %s5023_s24 }
0x21f4   :  { %v4585_v20 = vpop.eup %4584 }
0x21f5   :  { %v2269_v21 = vadd.f32 1.0, %v4585_v20 }
0x21f7   :  { %4586 = vrcp.f32 %v2269_v21 }
0x2201   :  { %v4587_v24 = vpop.eup %4586 }
0x2202   :  { %v2276_v29 = vmul.f32 %v4587_v24, %v2274_v28 }
0x2265   :  { %v2279_v25 = vpop.permute.xlu0 %2278 }
0x2266   :  { %v2281_v26 = vmul.f32 %v4587_v24, %v2279_v25 }
0x2268   :  { %2283 = vrot.lane.b32.xlu1 %v2281_v26, %s5018_s26 }
0x22da   :  { %v2284_v31 = vpop.permute.xlu1 %2283 }
0x22db   :  { %v2286_v32 = vadd.f32 %v2284_v31, %v2276_v29 }
0x22dd   :  { %4588 = vtanh.f32 %v2286_v32  ;;  %v2382_v60 = vrot.slane %v2286_v32, 6 }
0x22e7   :  { %v4589_v34 = vpop.eup %4588 }
0x22e8   :  { %2289 = vrot.lane.b32.xlu0 %v4589_v34, %s5023_s24 }
0x235a   :  { %v2290_v38 = vpop.permute.xlu0 %2289 }
0x235b   :  { %v2292_v39 = vmul.f32 %v4587_v24, %v2290_v38 }
0x235d   :  { %v2294_v41 = vrot.slane %v2292_v39, 4  ;;  %v2830_v42 = vsel %vm629_vm5, %v2829_v40, %v2292_v39 }
0x235f   :  { %2295 = vrot.lane.b32.xlu1 %v2294_v41, %s5018_s26 }
0x23d1   :  { %v2296_v43 = vpop.permute.xlu1 %2295 }
0x23d2   :  { %4100 = vmatmul.mubr.msk.f32.vlgmr.msra.gmra.mrb[20].mxu0 %vm305_vm0, %v2296_v43 }
0x23d3   :  { %4369 = vmatpush3.bf16.msra.mxu0 %v5512_v16  ;;  %4121 = vmatprep.mubr.msk.f32.mxu0 %vm5021_vm10, %v5017_v37 }
0x23d4   :  { %4370 = vmatprep.subr.bf16.mxu0 %v5020_v22 }
0x23d7   :  { %4372 = vmatpush3.bf16.msra.mxu0 %v5518_v53 }
0x23d8   :  { %4379 = vmatprep.subr.bf16.mxu0 %v5020_v22 }
0x24a5   :  { %v2365_v44 = vpop.f32.mrb[20].mxu0 }
0x24a6   :  { %v2370_v45 = vrot.slane %v2365_v44, 2  ;;  %v4101_v46 = vpop.f32.mrb[21].mxu0 }
0x24a8   :  { %v2372_v47 = vadd.f32 %v2370_v45, %v5545_v35 }
0x24aa   :  { %v2373_v50 = vadd.f32 %v5547_v36, %v2372_v47 }
0x24ac   :  { %4590 = vtanh.f32 %v2373_v50  ;;  %v3677_v18 = vmul.f32 -1.442695, %v2373_v50 }
0x24ae   :  { %4592 = vpow2.f32 %v3677_v18 }
0x24b6   :  { %v4591_v51 = vpop.eup %4590 }
0x24b7   :  { %2386 = vrot.lane.b32.xlu0 %v4591_v51, %s5023_s24 }
0x24b8   :  { %v4593_v55 = vpop.eup %4592 }
0x24b9   :  { %v2377_v56 = vadd.f32 1.0, %v4593_v55 }
0x24bb   :  { %4594 = vrcp.f32 %v2377_v56 }
0x24c5   :  { %v4595_v57 = vpop.eup %4594 }
0x24c6   :  { %v2384_v61 = vmul.f32 %v4595_v57, %v2382_v60 }
0x2529   :  { %v2387_v58 = vpop.permute.xlu0 %2386 }
0x252a   :  { %v2389_v59 = vmul.f32 %v4595_v57, %v2387_v58 }
0x252c   :  { %2391 = vrot.lane.b32.xlu1 %v2389_v59, %s5018_s26 }
0x259e   :  { %v2392_v62 = vpop.permute.xlu1 %2391 }
0x259f   :  { %v2394_v35 = vadd.f32 %v2392_v62, %v2384_v61 }
0x25a1   :  { %4596 = vtanh.f32 %v2394_v35  ;;  %v2487_v17 = vrot.slane %v2394_v35, 6 }
0x25ab   :  { %v4597_v63 = vpop.eup %4596 }
0x25ac   :  { %2397 = vrot.lane.b32.xlu0 %v4597_v63, %s5023_s24 }
0x261e   :  { %v2398_v0 = vpop.permute.xlu0 %2397 }
0x261f   :  { %v2400_v1 = vmul.f32 %v4595_v57, %v2398_v0 }
0x2621   :  { %v2402_v3 = vrot.slane %v2400_v1, 6  ;;  %v5600_v4 = vsel %vm396_vm1, %v2830_v42, %v2400_v1 }
0x2623   :  { %2403 = vrot.lane.b32.xlu1 %v2402_v3, %s5018_s26 }
0x2695   :  { %v2404_v6 = vpop.permute.xlu1 %2403 }
0x2696   :  { %4111 = vmatmul.mubr.msk.f32.vlgmr.msra.gmra.mrb[18].mxu1 %vm305_vm0, %v2404_v6 }
0x2697   :  { %4375 = vmatpush3.bf16.msra.mxu1 %v5512_v16  ;;  %4132 = vmatprep.mubr.msk.f32.mxu1 %vm5021_vm10, %v5017_v37 }
0x2698   :  { %4376 = vmatprep.subr.bf16.mxu1 %v5020_v22 }
0x269b   :  { %4378 = vmatpush3.bf16.msra.mxu1 %v5518_v53 }
0x2769   :  { %v2473_v7 = vpop.f32.mrb[18].mxu1 }
0x276a   :  { %v2477_v2 = vadd.f32 %v2473_v7, %v5543_v33  ;;  %v4112_v5 = vpop.f32.mrb[19].mxu1 }
0x276c   :  { %v2478_v8 = vadd.f32 %v5547_v36, %v2477_v2 }
0x276e   :  { %4598 = vtanh.f32 %v2478_v8  ;;  %v3679_v11 = vmul.f32 -1.442695, %v2478_v8 }
0x2770   :  { %4600 = vpow2.f32 %v3679_v11 }
0x2778   :  { %v4599_v10 = vpop.eup %4598 }
0x2779   :  { %2491 = vrot.lane.b32.xlu0 %v4599_v10, %s5023_s24 }
0x277a   :  { %v4601_v12 = vpop.eup %4600 }
0x277b   :  { %v2482_v13 = vadd.f32 1.0, %v4601_v12 }
0x277d   :  { %4602 = vrcp.f32 %v2482_v13 }
0x2787   :  { %v4603_v14 = vpop.eup %4602 }
0x2788   :  { %v2489_v49 = vmul.f32 %v4603_v14, %v2487_v17 }
0x27eb   :  { %v2492_v15 = vpop.permute.xlu0 %2491 }
0x27ec   :  { %v2494_v23 = vmul.f32 %v4603_v14, %v2492_v15 }
0x27ee   :  { %2496 = vrot.lane.b32.xlu1 %v2494_v23, %s5018_s26 }
0x2860   :  { %v2497_v52 = vpop.permute.xlu1 %2496 }
0x2861   :  { %v2499_v30 = vadd.f32 %v2497_v52, %v2489_v49 }
0x2863   :  { %4604 = vtanh.f32 %v2499_v30 }
0x286d   :  { %v4605_v54 = vpop.eup %4604 }
0x286e   :  { %2502 = vrot.lane.b32.xlu0 %v4605_v54, %s5023_s24 }
0x28e0   :  { %v2503_v19 = vpop.permute.xlu0 %2502 }
0x28e1   :  { %v5614_v20 = vmul.f32 %v4603_v14, %v2503_v19 }
0x28e3   :  { %2507 = vrot.lane.b32.xlu1 %v5614_v20, %s5018_s26 }
0x2955   :  { %v2508_v21 = vpop.permute.xlu1 %2507 }
0x2956   :  { %4122 = vmatmul.mubr.msk.f32.vlgmr.msra.gmra.mrb[22].mxu0 %vm305_vm0, %v2508_v21  ;;  %v2835_v21 = vrot.slane %v5447_v48, 6 }
0x2957   :  { %4381 = vmatpush3.bf16.msra.mxu0 %v5512_v16  ;;  %4143 = vmatprep.mubr.msk.f32.mxu0 %vm5021_vm10, %v5017_v37 }
0x2958   :  { %4382 = vmatprep.subr.bf16.mxu0 %v5020_v22 }
0x295b   :  { %4384 = vmatpush3.bf16.msra.mxu0 %v5518_v53  ;;  %v2594_v53 = vrot.slane %v2499_v30, 6 }
0x2a29   :  { %v2577_v24 = vpop.f32.mrb[22].mxu0 }
0x2a2a   :  { %v2582_v25 = vrot.slane %v2577_v24, 6  ;;  %v4123_v26 = vpop.f32.mrb[23].mxu0 }
0x2a2b   :  { %v2839_v26 = vrot.slane %v5447_v48, 2 }
0x2a2c   :  { %v2584_v28 = vadd.f32 %v2582_v25, %v5543_v33 }
0x2a2e   :  { %v2585_v29 = vadd.f32 %v5547_v36, %v2584_v28 }
0x2a30   :  { %4606 = vtanh.f32 %v2585_v29  ;;  %v3681_v32 = vmul.f32 -1.442695, %v2585_v29 }
0x2a32   :  { %4608 = vpow2.f32 %v3681_v32 }
0x2a3a   :  { %v4607_v31 = vpop.eup %4606 }
0x2a3b   :  { %2598 = vrot.lane.b32.xlu0 %v4607_v31, %s5023_s24 }
0x2a3c   :  { %v4609_v16 = vpop.eup %4608 }
0x2a3d   :  { %v2589_v34 = vadd.f32 1.0, %v4609_v16 }
0x2a3f   :  { %4610 = vrcp.f32 %v2589_v34 }
0x2a49   :  { %v4611_v38 = vpop.eup %4610 }
0x2a4a   :  { %v2596_v41 = vmul.f32 %v4611_v38, %v2594_v53  ;;  %v2847_v53 = vld [vmem:[%s5771_s18 + $0x18] sm:$0xff] }
0x2aad   :  { %v2599_v39 = vpop.permute.xlu0 %2598 }
0x2aae   :  { %v2601_v40 = vmul.f32 %v4611_v38, %v2599_v39  ;;  %v2846_v39 = vld [vmem:[%s5771_s18 + $0x10] sm:$0xff] }
0x2ab0   :  { %2603 = vrot.lane.b32.xlu1 %v2601_v40, %s5018_s26 }
0x2b22   :  { %v2604_v42 = vpop.permute.xlu1 %2603 }
0x2b23   :  { %v2606_v43 = vadd.f32 %v2604_v42, %v2596_v41  ;;  %v4389_v41 = vpack.c.bf16 %v2847_v53, %v2846_v39  ;;  %v3294_v39 = vld [vmem:[%s5777_s29 + $0x10] sm:$0xff]  ;;  %v3295_v53 = vld [vmem:[%s5777_s29 + $0x18] sm:$0xff] }
0x2b25   :  { %4612 = vtanh.f32 %v2606_v43  ;;  %v2702_v0 = vrot.slane %v2606_v43, 6  ;;  %v2944_v43 = vld [vmem:[%s5772_s22] sm:$0xff] }
0x2b2f   :  { %v4613_v44 = vpop.eup %4612 }
0x2b30   :  { %2609 = vrot.lane.b32.xlu0 %v4613_v44, %s5023_s24  ;;  %v2945_v44 = vld [vmem:[%s5772_s22 + $0x8] sm:$0xff] }
0x2ba2   :  { %v2610_v45 = vpop.permute.xlu0 %2609 }
0x2ba3   :  { %v2612_v46 = vmul.f32 %v4611_v38, %v2610_v45  ;;  %v2845_v38 = vld [vmem:[%s5771_s18 + $0x8] sm:$0xff]  ;;  %v4393_v45 = vpack.c.bf16 %v2945_v44, %v2944_v43 }
0x2ba5   :  { %v2614_v47 = vrot.slane %v2612_v46, 2  ;;  %v2832_v8 = vsel %vm389_vm2, %v5614_v20, %v2612_v46  ;;  %4394 = vmatprep.subr.bf16.mxu0 %v4393_v45 }
0x2ba7   :  { %2615 = vrot.lane.b32.xlu1 %v2614_v47, %s5018_s26 }
0x2c19   :  { %v2616_v50 = vpop.permute.xlu1 %2615 }
0x2c1a   :  { %4133 = vmatmul.mubr.msk.f32.vlgmr.msra.gmra.mrb[20].mxu1 %vm305_vm0, %v2616_v50 }
0x2ced   :  { %v2685_v51 = vpop.f32.mrb[20].mxu1 }
0x2cee   :  { %v2690_v18 = vrot.slane %v2685_v51, 4  ;;  %v4134_v55 = vpop.f32.mrb[21].mxu1 }
0x2cef   :  { %v2947_v55 = vld [vmem:[%s5772_s22 + $0x18] sm:$0xff] }
0x2cf0   :  { %v2692_v56 = vadd.f32 %v2690_v18, %v5543_v33  ;;  %v2946_v18 = vld [vmem:[%s5772_s22 + $0x10] sm:$0xff] }
0x2cf2   :  { %v2693_v57 = vadd.f32 %v5547_v36, %v2692_v56  ;;  %v4397_v56 = vpack.c.bf16 %v2947_v55, %v2946_v18 }
0x2cf4   :  { %4614 = vtanh.f32 %v2693_v57  ;;  %v3683_v59 = vmul.f32 -1.442695, %v2693_v57  ;;  %v2940_v57 = vld [vmem:[%s5773_s10] sm:$0xff] }
0x2cf6   :  { %4616 = vpow2.f32 %v3683_v59 }
0x2cfe   :  { %v4615_v58 = vpop.eup %4614 }
0x2cff   :  { %2706 = vrot.lane.b32.xlu0 %v4615_v58, %s5023_s24  ;;  %v2941_v58 = vld [vmem:[%s5773_s10 + $0x8] sm:$0xff] }
0x2d00   :  { %v4617_v60 = vpop.eup %4616  ;;  %v4401_v59 = vpack.c.bf16 %v2941_v58, %v2940_v57 }
0x2d01   :  { %v2697_v61 = vadd.f32 1.0, %v4617_v60  ;;  %v3686_v60 = vld [vmem:[#allocation22] ss:$0 sm:$0xff] }
0x2d03   :  { %4618 = vrcp.f32 %v2697_v61 }
0x2d0d   :  { %v4619_v62 = vpop.eup %4618 }
0x2d0e   :  { %v2704_v1 = vmul.f32 %v4619_v62, %v2702_v0 }
0x2d71   :  { %v2707_v35 = vpop.permute.xlu0 %2706 }
0x2d72   :  { %v2709_v63 = vmul.f32 %v4619_v62, %v2707_v35  ;;  %v2943_v35 = vld [vmem:[%s5773_s10 + $0x18] sm:$0xff] }
0x2d74   :  { %2711 = vrot.lane.b32.xlu1 %v2709_v63, %s5018_s26 }
0x2de6   :  { %v2712_v3 = vpop.permute.xlu1 %2711 }
0x2de7   :  { %v2714_v6 = vadd.f32 %v2712_v3, %v2704_v1 }
0x2de9   :  { %4620 = vtanh.f32 %v2714_v6  ;;  %v2810_v29 = vrot.slane %v2714_v6, 6 }
0x2df3   :  { %v4621_v7 = vpop.eup %4620 }
0x2df4   :  { %2717 = vrot.lane.b32.xlu0 %v4621_v7, %s5023_s24  ;;  %v3120_v7 = vld [vmem:[%s5774_s27] sm:$0xff] }
0x2e66   :  { %v2718_v2 = vpop.permute.xlu0 %2717 }
0x2e67   :  { %v2720_v5 = vmul.f32 %v4619_v62, %v2718_v2  ;;  %v2942_v62 = vld [vmem:[%s5773_s10 + $0x10] sm:$0xff]  ;;  %v3121_v2 = vld [vmem:[%s5774_s27 + $0x8] sm:$0xff] }
0x2e68   :  { %v4405_v3 = vpack.c.bf16 %v2943_v35, %v2942_v62 }
0x2e69   :  { %v2722_v10 = vrot.slane %v2720_v5, 4  ;;  %v2833_v11 = vsel %vm629_vm5, %v2832_v8, %v2720_v5  ;;  %v4409_v5 = vpack.c.bf16 %v3121_v2, %v3120_v7  ;;  %v3693_v8 = vld [vmem:[%s5775_s11] ss:$0 sm:$0xff] }
0x2e6b   :  { %2723 = vrot.lane.b32.xlu1 %v2722_v10, %s5018_s26 }
0x2edd   :  { %v2724_v12 = vpop.permute.xlu1 %2723 }
0x2ede   :  { %4144 = vmatmul.mubr.msk.f32.vlgmr.msra.gmra.mrb[24].mxu0 %vm305_vm0, %v2724_v12 }
0x2edf   :  { %4396 = vmatpush3.bf16.msra.mxu0 %v4393_v45 }
0x2ee0   :  { %4398 = vmatprep.subr.bf16.mxu0 %v4397_v56 }
0x2ee3   :  { %4400 = vmatpush3.bf16.msra.mxu0 %v4397_v56 }
0x2ee4   :  { %4402 = vmatprep.subr.bf16.mxu0 %v4401_v59 }
0x2fb1   :  { %v2793_v13 = vpop.f32.mrb[24].mxu0 }
0x2fb2   :  { %v2798_v14 = vrot.slane %v2793_v13, 2  ;;  %v4145_v15 = vpop.f32.mrb[25].mxu0 }
0x2fb4   :  { %v2800_v23 = vadd.f32 %v2798_v14, %v5543_v33  ;;  %v2837_v33 = vrot.slane %v5447_v48, 4 }
0x2fb6   :  { %v2801_v17 = vadd.f32 %v5547_v36, %v2800_v23  ;;  %v2841_v36 = vsel %vm389_vm2, %v5447_v48, %v2835_v21 }
0x2fb7   :  { %v2842_v25 = vsel %vm629_vm5, %v2841_v36, %v2837_v33 }
0x2fb8   :  { %4622 = vtanh.f32 %v2801_v17  ;;  %v3685_v52 = vmul.f32 -1.442695, %v2801_v17  ;;  %v5654_v28 = vsel %vm396_vm1, %v2842_v25, %v2839_v26 }
0x2fba   :  { %4624 = vpow2.f32 %v3685_v52 }
0x2fc2   :  { %v4623_v49 = vpop.eup %4622 }
0x2fc3   :  { %2814 = vrot.lane.b32.xlu0 %v4623_v49, %s5023_s24 }
0x2fc4   :  { %v4625_v30 = vpop.eup %4624 }
0x2fc5   :  { %v2805_v54 = vadd.f32 1.0, %v4625_v30  ;;  %v5025_v30 = vmov 0  }
0x2fc6   :  { %4501 = vset.pattern.permute.xlu1 %v5025_v30  ;;  %4500 = vset.pattern.permute.xlu0 %v5025_v30 }
0x2fc7   :  { %4626 = vrcp.f32 %v2805_v54 }
0x2fd1   :  { %v4627_v19 = vpop.eup %4626 }
0x2fd2   :  { %v2812_v31 = vmul.f32 %v4627_v19, %v2810_v29 }
0x3035   :  { %v2815_v20 = vpop.permute.xlu0 %2814 }
0x3036   :  { %v2817_v24 = vmul.f32 %v4627_v19, %v2815_v20 }
0x3038   :  { %2819 = vrot.lane.b32.xlu1 %v2817_v24, %s5018_s26 }
0x303c   :  { %2857 = vrot.lane.b32.xlu1 %v5600_v4, %s5018_s26  ;;  %v2844_v4 = vld [vmem:[%s5771_s18] sm:$0xff] }
0x303d   :  { %v4385_v40 = vpack.c.bf16 %v2845_v38, %v2844_v4  ;;  %v3292_v4 = vld [vmem:[%s5777_s29] sm:$0xff]  ;;  %v3293_v38 = vld [vmem:[%s5777_s29 + $0x8] sm:$0xff] }
0x303f   :  { %4386 = vmatprep.subr.bf16.mxu1 %v4385_v40 }
0x3040   :  { %3030 = vrot.lane.b32.xlu1 %v5654_v28, %s5015_s8  ;;  %4388 = vmatpush3.bf16.msra.mxu1 %v4385_v40  ;;  %v4413_v40 = vpack.c.bf16 %v3293_v38, %v3292_v4 }
0x3041   :  { %4390 = vmatprep.subr.bf16.mxu1 %v4389_v41 }
0x3044   :  { %4392 = vmatpush3.bf16.msra.mxu1 %v4389_v41 }
0x3045   :  { %4410 = vmatprep.subr.bf16.mxu1 %v4409_v5 }
0x30aa   :  { %v2820_v32 = vpop.permute.xlu1 %2819 }
0x30ab   :  { %v2822_v16 = vadd.f32 %v2820_v32, %v2812_v31 }
0x30ad   :  { %4628 = vtanh.f32 %v2822_v16 }
0x30ae   :  { %v2858_v34 = vpop.permute.xlu1 %2857 }
0x30af   :  { %4154 = vmatprep.mubr.msk.f32.mxu1 %vm305_vm0, %v2858_v34 }
0x30b2   :  { %v3031_v6 = vpop.permute.xlu1 %3030 }
0x30b7   :  { %v4629_v42 = vpop.eup %4628 }
0x30b8   :  { %2825 = vrot.lane.b32.xlu0 %v4629_v42, %s5023_s24  ;;  %v4417_v42 = vpack.c.bf16 %v3295_v53, %v3294_v39 }
0x312a   :  { %v2826_v46 = vpop.permute.xlu0 %2825 }
0x312b   :  { %v2828_v47 = vmul.f32 %v4627_v19, %v2826_v46  ;;  %v3277_v46 = vld [vmem:[#allocation5 + $0x8] sm:$0xff] }
0x312d   :  { %v2834_v50 = vsel %vm396_vm1, %v2833_v11, %v2828_v47  ;;  %v3276_v47 = vld [vmem:[#allocation5] sm:$0xff] }
0x312e   :  { %2859 = vrot.lane.b32.xlu0 %v2834_v50, %s5018_s26  ;;  %v3288_v50 = vld [vmem:[%s5778_s15] sm:$0xff] }
0x31a0   :  { %v2860_v51 = vpop.permute.xlu0 %2859 }
0x31a1   :  { %4155 = vmatmul.mubr.msk.f32.vlgmr.msra.gmra.mrb[22].mxu1 %vm305_vm0, %v2860_v51  ;;  %v3289_v51 = vld [vmem:[%s5778_s15 + $0x8] sm:$0xff] }
0x31a2   :  { %4412 = vmatpush3.bf16.msra.mxu1 %v4409_v5  ;;  %v4421_v18 = vpack.c.bf16 %v3289_v51, %v3288_v50  ;;  %v3291_v5 = vld [vmem:[%s5778_s15 + $0x18] sm:$0xff] }
0x31a3   :  { %4414 = vmatprep.subr.bf16.mxu1 %v4413_v40 }
0x3274   :  { %v4156_v61 = vpop.f32.mrb[22].mxu1 }
0x3275   :  { %v2931_v63 = vpop.f32.mrb[23].mxu1  ;;  %v5677_v1 = vadd.f32 %v4156_v61, %v3686_v60 }
0x3276   :  { %v5675_v0 = vadd.f32 %v3686_v60, %v2931_v63 }
0x3278   :  { %4165 = vmatprep.mubr.msk.f32.mxu0 %vm305_vm0, %v5675_v0 }
0x3279   :  { %4166 = vmatmul.mubr.msk.f32.vlgmr.msra.gmra.mrb[26].mxu0 %vm305_vm0, %v5677_v1 }
0x327a   :  { %4404 = vmatpush3.bf16.msra.mxu0 %v4401_v59  ;;  %4176 = vmatprep.mubr.msk.f32.mxu0 %vm305_vm0, %v3031_v6 }
0x327b   :  { %4406 = vmatprep.subr.bf16.mxu0 %v4405_v3 }
0x327e   :  { %4408 = vmatpush3.bf16.msra.mxu0 %v4405_v3 }
0x327f   :  { %4429 = vmatprep.subr.bf16.mxu0 %v5020_v22 }
0x3281   :  { %4177 = vmatmul.mubr.msk.f32.vlgmr.msra.gmra.mrb[26].mxu0 %vm305_vm0, %v3031_v6 }
0x3282   :  { %4216 = vmatprep.mubr.msk.f32.mxu0 %vm5021_vm10, %v5017_v37  ;;  %v3694_v37 = vld [vmem:[%s5776_s19] ss:$0 sm:$0xff] }
0x3354   :  { %v4178_v10 = vpop.f32.mrb[26].mxu0 }
0x3355   :  { %v3117_v11 = vadd.f32 %v4178_v10, %v3693_v8  ;;  %v3100_v12 = vpop.f32.mrb[27].mxu0 }
0x3356   :  { %v3116_v13 = vadd.f32 %v3693_v8, %v3100_v12  ;;  %v3487_v12 = vld [vmem:[%s5190_s14 + $0x8] sm:$0xff] }
0x3358   :  { %4630 = vtanh.f32 %v3116_v13 }
0x3359   :  { %4632 = vtanh.f32 %v3117_v11 }
0x3362   :  { %v4631_v14 = vpop.eup %4630 }
0x3363   :  { %v4633_v15 = vpop.eup %4632  ;;  %4183 = vmatprep.mubr.msk.f32.mxu1 %vm425_vm3, %v4631_v14  ;;  %v3488_v14 = vld [vmem:[%s5190_s14 + $0x10] sm:$0xff] }
0x3364   :  { %4184 = vmatmul.mubr.msk.f32.vlgmr.msra.gmra.mrb[24].mxu1 %vm425_vm3, %v4633_v15  ;;  %v3489_v15 = vld [vmem:[%s5190_s14 + $0x18] sm:$0xff] }
0x3365   :  { %4416 = vmatpush3.bf16.msra.mxu1 %v4413_v40 }
0x3366   :  { %4418 = vmatprep.subr.bf16.mxu1 %v4417_v42 }
0x3369   :  { %4420 = vmatpush3.bf16.msra.mxu1 %v4417_v42 }
0x336a   :  { %4422 = vmatprep.subr.bf16.mxu1 %v4421_v18 }
0x3437   :  { %v4185_v23 = vpop.f32.mrb[24].mxu1 }
0x3438   :  { %v3207_v17 = vadd.f32 %v4185_v23, %v3694_v37  ;;  %v3201_v49 = vpop.f32.mrb[25].mxu1  ;;  %v3703_v23 = vld [vmem:[%s5185_s13] ss:$0 sm:$0xff]  ;;  %s5026_s13 = smov [#allocation23]  }
0x3439   :  { %v3202_v52 = vadd.f32 %v3694_v37, %v3201_v49  ;;  %v4433_v37 = vpack.c.bf16 %v3489_v15, %v3488_v14 }
0x343a   :  { %3214 = vrot.lane.b32.xlu1 %v3207_v17, %s5024_s0 }
0x343b   :  { %3212 = vrot.lane.b32.xlu0 %v3202_v52, %s5024_s0 }
0x34ac   :  { %v3215_v54 = vpop.permute.xlu1 %3214 }
0x34ad   :  { %v3219_v19 = vsub.f32 %v3207_v17, %v3215_v54  ;;  %v3213_v20 = vpop.permute.xlu0 %3212 }
0x34ae   :  { %v3218_v21 = vsub.f32 %v3202_v52, %v3213_v20 }
0x34af   :  { %v3698_v24 = vmul.f32 -1.442695, %v3219_v19 }
0x34b0   :  { %v3697_v33 = vmul.f32 -1.442695, %v3218_v21 }
0x34b1   :  { %4634 = vpow2.f32 %v3698_v24 }
0x34b2   :  { %4636 = vpow2.f32 %v3697_v33 }
0x34bb   :  { %v4635_v36 = vpop.eup %4634 }
0x34bc   :  { %v4637_v25 = vpop.eup %4636  ;;  %v3227_v26 = vadd.f32 1.0, %v4635_v36 }
0x34bd   :  { %v3226_v29 = vadd.f32 1.0, %v4637_v25 }
0x34be   :  { %4638 = vrcp.f32 %v3227_v26 }
0x34bf   :  { %4640 = vrcp.f32 %v3226_v29 }
0x34c8   :  { %v4639_v31 = vpop.eup %4638 }
0x34c9   :  { %v4641_v32 = vpop.eup %4640  ;;  %v3245_v16 = vsub.f32 1.0, %v4639_v31 }
0x34ca   :  { %v3244_v34 = vsub.f32 1.0, %v4641_v32 }
0x34cb   :  { %3253 = vperm.xlu1 %4501, %v3245_v16  }
0x34cc   :  { %3248 = vperm.xlu0 %4500, %v3244_v34  }
0x34cf   :  { %3234 = vperm.xlu1 %4501, %v4641_v32  }
0x34d0   :  { %3239 = vperm.xlu0 %4500, %v4639_v31   ;;  %v3704_v31 = vld [vmem:[%s5195_s25] ss:$0 sm:$0xff] }
0x354a   :  { %v3254_v41 = vpop.permute.xlu1 %3253 }
0x354b   :  { %v3257_v43 = vmul.f32 %v3254_v41, %v5677_v1  ;;  %v3249_v44 = vpop.permute.xlu0 %3248 }
0x354c   :  { %v3256_v45 = vmul.f32 %v3249_v44, %v5675_v0 }
0x354d   :  { %3262 = vrot.lane.b32.xlu0 %v3257_v43, %s5018_s26 }
0x354e   :  { %3260 = vrot.lane.b32.xlu1 %v3256_v45, %s5018_s26  ;;  %v3235_v56 = vpop.permute.xlu1 %3234 }
0x354f   :  { %v3240_v55 = vpop.permute.xlu0 %3239  ;;  %v3242_v58 = vmul.f32 %v3235_v56, %v5654_v28 }
0x3550   :  { %v3243_v57 = vmul.f32 %v3240_v55, %v5654_v28  ;;  %v3290_v28 = vld [vmem:[%s5778_s15 + $0x10] sm:$0xff] }
0x3551   :  { %3282 = vrot.lane.b32.xlu0 %v3277_v46, %s5018_s26  ;;  %v4425_v11 = vpack.c.bf16 %v3291_v5, %v3290_v28 }
0x3552   :  { %3280 = vrot.lane.b32.xlu1 %v3276_v47, %s5018_s26 }
0x35bf   :  { %v3263_v59 = vpop.permute.xlu0 %3262 }
0x35c0   :  { %v3267_v60 = vadd.f32 %v3263_v59, %v3243_v57  ;;  %v3261_v61 = vpop.permute.xlu1 %3260 }
0x35c1   :  { %v3266_v62 = vadd.f32 %v3261_v61, %v3242_v58 }
0x35c2   :  { %v3271_v35 = vrot.slane %v3267_v60, 6 }
0x35c3   :  { %v3270_v63 = vrot.slane %v3266_v62, 6  ;;  %v3283_v0 = vpop.permute.xlu0 %3282 }
0x35c4   :  { %v3281_v1 = vpop.permute.xlu1 %3280 }
0x35c5   :  { %v3275_v3 = vsel %vm389_vm2, %v5447_v48, %v3270_v63  ;;  %v3272_v6 = vsel %vm389_vm2, %v3270_v63, %v3271_v35  ;;  %v3486_v48 = vld [vmem:[%s5190_s14] sm:$0xff]  ;;  %s3578_s14 = sshll.u32 %s5026_s13, 4  ;;  %s3579_s14 = int_to_ptr.vmem [resolvable:$true] %s3578_s14 }
0x35c6   :  { %v3286_v7 = vadd.f32 %v3281_v1, %v3275_v3  ;;  %v3287_v2 = vadd.f32 %v3283_v0, %v3272_v6  ;;  %v4430_v13 = vpack.c.bf16 %v3487_v12, %v3486_v48  ;;  %s4928_s30 = scalar_lea.vmem %s3579_s14, 32  ;;  %p4933_p7 = scmp.lt.s32.totalorder %s3579_s14, %s3579_s14 }
0x35c7   :  { %p4929_p6 = scmp.ne.s32.totalorder %s3579_s14, %s4928_s30  ;;  %p4934_p8 = scmp.lt.s32.totalorder %s4928_s30, %s4928_s30 }
0x35c8   :  { %3298 = vrot.lane.b32.xlu1 %v3286_v7, %s5015_s8  ;;  %3300 = vrot.lane.b32.xlu0 %v3287_v2, %s5015_s8 }
0x35c9   :  { %4431 = vmatpush3.bf16.msra.mxu0 %v4430_v13  ;;  %p4935_p9 = por %p4934_p8, %p4933_p7 }
0x35ca   :  { %4432 = vmatprep.subr.bf16.mxu0 %v5020_v22 }
0x35cb   :  { %p4936_p10 = pnand %p4935_p9, %p4929_p6 }
0x35cd   :  { %4434 = vmatpush3.bf16.msra.mxu0 %v4433_v37 }
0x363a   :  { %v3299_v8 = vpop.permute.xlu1 %3298  ;;  %v3301_v10 = vpop.permute.xlu0 %3300 }
0x363b   :  { %4194 = vmatprep.mubr.msk.f32.mxu1 %vm305_vm0, %v3299_v8 }
0x363c   :  { %4195 = vmatmul.mubr.msk.f32.vlgmr.msra.gmra.mrb[26].mxu1 %vm305_vm0, %v3301_v10 }
0x363d   :  { %4424 = vmatpush3.bf16.msra.mxu1 %v4421_v18  ;;  %4205 = vmatprep.mubr.msk.f32.mxu1 %vm305_vm0, %v5502_v9 }
0x363e   :  { %4426 = vmatprep.subr.bf16.mxu1 %v4425_v11 }
0x3641   :  { %4428 = vmatpush3.bf16.msra.mxu1 %v4425_v11 }
0x3644   :  { %4206 = vmatmul.mubr.msk.f32.vlgmr.msra.gmra.mrb[26].mxu1 %vm305_vm0, %v5533_v27 }
0x3717   :  { %v4207_v17 = vpop.f32.mrb[26].mxu1 }
0x3718   :  { %v3447_v49 = vpop.f32.mrb[27].mxu1  ;;  %v3464_v19 = vadd.f32 %v4207_v17, %v3703_v23 }
0x3719   :  { %v3463_v52 = vadd.f32 %v3703_v23, %v3447_v49 }
0x371a   :  { %v3477_v24 = vrot.slane %v3464_v19, 2  ;;  %v3480_v36 = vrot.slane %v3464_v19, 4  ;;  %v3483_v25 = vrot.slane %v3464_v19, 6 }
0x371b   :  { %v3466_v9 = vrot.slane %v3463_v52, 2  ;;  %v3469_v54 = vrot.slane %v3463_v52, 4  ;;  %v3472_v20 = vrot.slane %v3463_v52, 6 }
0x371d   :  { %v3468_v30 = vmax.f32 %v3463_v52, %v3466_v9 }
0x371f   :  { %v3471_v27 = vmax.f32 %v3468_v30, %v3469_v54 }
0x3721   :  { %v3474_v21 = vmax.f32 %v3471_v27, %v3472_v20 }
0x3723   :  { %v3475_v33 = vmax.f32 %v3474_v21, %v3464_v19 }
0x3725   :  { %v3479_v22 = vmax.f32 %v3475_v33, %v3477_v24 }
0x3727   :  { %v3482_v26 = vmax.f32 %v3479_v22, %v3480_v36 }
0x3729   :  { %v3485_v29 = vmax.f32 %v3482_v26, %v3483_v25 }
0x372b   :  { %4217 = vmatmul.mubr.msk.f32.vlgmr.msra.gmra.mrb[28].mxu0 %vm305_vm0, %v3485_v29 }
0x37fe   :  { %v3566_v32 = vpop.f32.mrb[28].mxu0 }
0x37ff   :  { %v3567_v16 = vadd.f32 %v3704_v31, %v3566_v32  ;;  %v4218_v34 = vpop.f32.mrb[29].mxu0 }
0x3801   :  { %3571 = vst.msk [vmem:[#allocation23] sm:$0x3] %vm3570_vm12, %v3567_v16 }
0x3802   :  { %4939 = shalt.err (!%p4936_p10)
}
0x3803   :  { %s4940_s12 = scalar_lea.hbm %s5200_s4, 32 }
0x3804   :  { %p4941_p11 = scmp.ne.s32.totalorder %s5200_s4, %s4940_s12  ;;  %p4944_p12 = scmp.lt.u32.totalorder %s4940_s12, %s5200_s4 }
0x3806   :  { %p4946_p13 = pnand %p4944_p12, %p4941_p11 }
0x3808   :  { %4949 = shalt.err (!%p4946_p13)
}
0x3809   :  { %3581 = dma.vmem_to_hbm [thread:$0]  %s3579_s14, 32, %s5200_s4, [#allocation4]  }
0x380a   :  { %4964 = dma.done.wait [#allocation4], 32  }
0x380b   :  { %4965 = vsyncadd [#allocation4], 4294967264 }
0x380c   :  { %3585 = vsyncpa [#allocation3], 1 }
0x380d   :  { %3586 = vsyncpa [#allocation6], 1 }
0x380e   :  { %3587 = vsyncpa [#allocation9], 1 }
0x380f   :  { %3588 = vsyncpa [#allocation12], 1 }
0x3810   :  { %3589 = vsyncpa [#allocation15], 1 }
0x3811   :  { %3590 = vsyncpa [#allocation18], 1 }
0x3812   :  { %3591 = vsyncpa [#allocation21], 1 }
0x3813   :  { %3592 = vsyncpa [#allocation4], 1 }

</bundles_post_ra>
